<compile_context>
chip_gen: v6e
topology: v6e:2x2x1
jax: 0.10.0
libtpu: 0.0.40
codegen_flags: <defaults>
</compile_context>

<pallas_src>
import functools

import jax
import jax.numpy as jnp
from jax import lax
from jax.experimental import pallas as pl
from jax.experimental.pallas import tpu as pltpu

NHF = 96      # hidden channel count of the PyTorch module
CMID = 128    # 96 zero-padded to a lane-dense 128


# ----------------------------- in-kernel helper -----------------------------

def _im2col_3x3(xpad, H, W, dtype):
    """xpad: (H+2, W+2, C) -> (H*W, 9*C).

    Tap order is (kh, kw) row-major with channels fastest, matching an HWIO
    weight reshaped to (9*C, Cout).  Slices are taken in f32 and cast to the
    matmul dtype per 128-lane piece so the lane-axis concatenate stays aligned.
    """
    cols = []
    for kh in range(3):
        for kw in range(3):
            cols.append(xpad[kh:kh + H, kw:kw + W, :].astype(dtype))
    return jnp.concatenate(cols, axis=-1).reshape(H * W, 9 * xpad.shape[-1])


# ----------------------------- Pallas kernels -----------------------------

def _conv12_kernel(p1_ref, w1_ref, b1_ref, w2_ref, b2_ref,
                   c2_ref, sum_ref, ssq_ref, e1p_ref, *, H, W, cmid, slope):
    # p1_ref : (1, H*W, 9*cin) bf16   im2col patches of the (tiny) network input
    # w1_ref : (9*cin, cmid)   bf16
    # w2_ref : (9*cmid, cmid)  bf16
    # b*_ref : (1, cmid)       f32
    # c2_ref : (1, H, W, cmid) f32    conv2 pre-BN output
    # sum/ssq: (1, 1, cmid)    f32    per-image partial sums for BatchNorm stats
    # e1p_ref: (H+2, W+2, cmid) f32   VMEM scratch: zero-padded e1 (never hits HBM)

    # ---- conv1: one im2col GEMM + bias + LeakyReLU (f32 elementwise) ----
    a1 = jnp.dot(p1_ref[0], w1_ref[...], preferred_element_type=jnp.float32)
    a1 = a1 + b1_ref[...]
    e1 = jnp.where(a1 >= 0, a1, slope * a1)            # (H*W, cmid) f32

    # ---- keep zero-padded e1 resident in VMEM ----
    e1p_ref[...] = jnp.zeros((H + 2, W + 2, cmid), jnp.float32)
    e1p_ref[1:H + 1, 1:W + 1, :] = e1.reshape(H, W, cmid)

    # ---- conv2: single im2col GEMM, K = 9*cmid, bf16 operands / f32 accumulate ----
    p2 = _im2col_3x3(e1p_ref[...], H, W, jnp.bfloat16)   # (H*W, 9*cmid) bf16
    a2 = jnp.dot(p2, w2_ref[...], preferred_element_type=jnp.float32)
    a2 = a2 + b2_ref[...]                               # (H*W, cmid) f32

    c2_ref[...] = a2.reshape(1, H, W, cmid).astype(c2_ref.dtype)
    # per-image partial sums -> BatchNorm batch statistics only reduce (N,128) in XLA
    sum_ref[...] = jnp.sum(a2, axis=0).reshape(1, 1, cmid)
    ssq_ref[...] = jnp.sum(a2 * a2, axis=0).reshape(1, 1, cmid)


def _bn_conv3_kernel(c2_ref, scale_ref, shift_ref, w34_ref, b34_ref,
                     out_ref, e2p_ref, *, H, W, cmid, cout, slope):
    # Folded BatchNorm affine + LeakyReLU prologue (f32), then the composed
    # (conv3 o 1x1-conv) 3x3 convolution as a single im2col GEMM.
    c2 = c2_ref[0].reshape(H * W, cmid)                  # f32
    y = c2 * scale_ref[...] + shift_ref[...]             # per-channel affine
    e2 = jnp.where(y >= 0, y, slope * y)

    e2p_ref[...] = jnp.zeros((H + 2, W + 2, cmid), jnp.float32)
    e2p_ref[1:H + 1, 1:W + 1, :] = e2.reshape(H, W, cmid)

    p3 = _im2col_3x3(e2p_ref[...], H, W, jnp.bfloat16)   # (H*W, 9*cmid) bf16
    a3 = jnp.dot(p3, w34_ref[...], preferred_element_type=jnp.float32)
    out_ref[...] = (a3 + b34_ref[...]).reshape(1, H, W, cout).astype(out_ref.dtype)


# ----------------------------- wrappers -----------------------------

def conv1_conv2(p1, w1m, b1, w2m, b2, *, H, W):
    """Fused conv1(+LReLU)+conv2; returns (c2, per-image sums, per-image sumsq)."""
    N = p1.shape[0]
    cmid = w1m.shape[-1]
    kernel = functools.partial(_conv12_kernel, H=H, W=W, cmid=cmid, slope=0.2)
    return pl.pallas_call(
        kernel,
        out_shape=(
            jax.ShapeDtypeStruct((N, H, W, cmid), jnp.float32),
            jax.ShapeDtypeStruct((N, 1, cmid), jnp.float32),
            jax.ShapeDtypeStruct((N, 1, cmid), jnp.float32),
        ),
        grid=(N,),
        in_specs=[
            pl.BlockSpec((1, H * W, p1.shape[-1]), lambda n: (n, 0, 0)),
            pl.BlockSpec(w1m.shape, lambda n: (0, 0)),
            pl.BlockSpec((1, cmid), lambda n: (0, 0)),
            pl.BlockSpec(w2m.shape, lambda n: (0, 0)),
            pl.BlockSpec((1, cmid), lambda n: (0, 0)),
        ],
        out_specs=(
            pl.BlockSpec((1, H, W, cmid), lambda n: (n, 0, 0, 0)),
            pl.BlockSpec((1, 1, cmid), lambda n: (n, 0, 0)),
            pl.BlockSpec((1, 1, cmid), lambda n: (n, 0, 0)),
        ),
        scratch_shapes=[pltpu.VMEM((H + 2, W + 2, cmid), jnp.float32)],
        compiler_params=pltpu.CompilerParams(dimension_semantics=("parallel",)),
    )(p1, w1m, b1.reshape(1, cmid), w2m, b2.reshape(1, cmid))


def bn_conv3(c2, scale, shift, w34m, b34):
    """Fused (folded BatchNorm affine + LReLU) + composed conv3/1x1 conv."""
    N, H, W, cmid = c2.shape
    cout = w34m.shape[-1]
    kernel = functools.partial(_bn_conv3_kernel, H=H, W=W, cmid=cmid,
                               cout=cout, slope=0.2)
    return pl.pallas_call(
        kernel,
        out_shape=jax.ShapeDtypeStruct((N, H, W, cout), jnp.float32),
        grid=(N,),
        in_specs=[
            pl.BlockSpec((1, H, W, cmid), lambda n: (n, 0, 0, 0)),
            pl.BlockSpec((1, cmid), lambda n: (0, 0)),
            pl.BlockSpec((1, cmid), lambda n: (0, 0)),
            pl.BlockSpec(w34m.shape, lambda n: (0, 0)),
            pl.BlockSpec((1, cout), lambda n: (0, 0)),
        ],
        out_specs=pl.BlockSpec((1, H, W, cout), lambda n: (n, 0, 0, 0)),
        scratch_shapes=[pltpu.VMEM((H + 2, W + 2, cmid), jnp.float32)],
        compiler_params=pltpu.CompilerParams(dimension_semantics=("parallel",)),
    )(c2, scale.reshape(1, cmid), shift.reshape(1, cmid), w34m, b34.reshape(1, cout))


# ----------------------------- parameter prep -----------------------------

def init_params(key, input_nc, output_nc, nhf=NHF):
    ks = jax.random.split(key, 10)

    def u(k, shape, fan_in):
        bound = 1.0 / jnp.sqrt(fan_in)
        return jax.random.uniform(k, shape, jnp.float32, -bound, bound)

    p = {}
    # OIHW weights (PyTorch convention).
    p["w1"] = u(ks[0], (nhf, input_nc, 3, 3), input_nc * 9)
    p["b1"] = u(ks[1], (nhf,), input_nc * 9)
    p["w2"] = u(ks[2], (nhf, nhf, 3, 3), nhf * 9)
    p["b2"] = u(ks[3], (nhf,), nhf * 9)
    p["gamma"] = jax.random.uniform(ks[4], (nhf,), jnp.float32, 0.5, 1.5)
    p["beta"] = jax.random.uniform(ks[5], (nhf,), jnp.float32, -0.5, 0.5)
    p["w3"] = u(ks[6], (nhf, nhf, 3, 3), nhf * 9)
    p["b3"] = u(ks[7], (nhf,), nhf * 9)
    p["w4"] = u(ks[8], (output_nc, nhf, 1, 1), nhf)
    p["b4"] = u(ks[9], (output_nc,), nhf)
    return p


def _oihw_to_hwio(w):
    return jnp.transpose(w, (2, 3, 1, 0))


def _prep_params(p):
    """OIHW -> im2col GEMM matrices, channel-padded to 128, matmul weights in bf16."""
    pad = CMID - NHF

    w1 = _oihw_to_hwio(p["w1"])                                   # (3,3,cin,96)
    cin = w1.shape[2]
    w1 = jnp.pad(w1, ((0, 0), (0, 0), (0, 0), (0, pad)))
    w1m = w1.reshape(9 * cin, CMID).astype(jnp.bfloat16)
    b1 = jnp.pad(p["b1"], (0, pad))

    w2 = _oihw_to_hwio(p["w2"])                                   # (3,3,96,96)
    w2 = jnp.pad(w2, ((0, 0), (0, 0), (0, pad), (0, pad)))
    w2m = w2.reshape(9 * CMID, CMID).astype(jnp.bfloat16)
    b2 = jnp.pad(p["b2"], (0, pad))

    gamma = jnp.pad(p["gamma"], (0, pad))
    beta = jnp.pad(p["beta"], (0, pad))

    # Compose conv3 (3x3) with the final 1x1 conv (exact: no activation between).
    w3 = _oihw_to_hwio(p["w3"])                                   # (3,3,96,96)
    w4 = p["w4"][:, :, 0, 0].T                                    # (96, output_nc)
    w34 = jnp.einsum("hwic,co->hwio", w3, w4)                     # (3,3,96,out)
    b34 = p["b3"] @ w4 + p["b4"]                                  # (out,)
    w34 = jnp.pad(w34, ((0, 0), (0, 0), (0, pad), (0, 0)))
    w34m = w34.reshape(9 * CMID, w34.shape[-1]).astype(jnp.bfloat16)

    return dict(w1m=w1m, b1=b1, w2m=w2m, b2=b2, gamma=gamma, beta=beta,
                w34m=w34m, b34=b34)


def _im2col_input(x, H, W):
    """x: (N, H, W, C) NHWC -> (N, H*W, 9*C) patches for the (tiny) first conv."""
    xp = jnp.pad(x, ((0, 0), (1, 1), (1, 1), (0, 0)))
    cols = [xp[:, kh:kh + H, kw:kw + W, :] for kh in range(3) for kw in range(3)]
    return jnp.concatenate(cols, axis=-1).reshape(x.shape[0], H * W, 9 * x.shape[-1])


# ----------------------------- Filter_net forward -----------------------------

def filter_net_forward(x_nchw, p, eps=1e-5):
    q = _prep_params(p)
    x = jnp.transpose(x_nchw, (0, 2, 3, 1))              # NCHW -> NHWC
    N, H, W, _ = x.shape

    p1 = _im2col_input(x, H, W).astype(jnp.bfloat16)     # (N, H*W, 9*cin)

    # Kernel 1: conv1 + LReLU + conv2 (e1 stays in VMEM) + BN partial sums.
    c2, psum, pssq = conv1_conv2(p1, q["w1m"], q["b1"], q["w2m"], q["b2"], H=H, W=W)

    # BatchNorm2d batch statistics (training semantics: biased variance),
    # folded into a per-channel affine (scale, shift).
    count = N * H * W
    mean = jnp.sum(psum, axis=(0, 1)) / count
    var = jnp.maximum(jnp.sum(pssq, axis=(0, 1)) / count - mean * mean, 0.0)
    scale = q["gamma"] * lax.rsqrt(var + eps)
    shift = q["beta"] - mean * scale

    # Kernel 2: BN affine + LReLU prologue, then composed conv3/1x1 conv.
    out = bn_conv3(c2, scale, shift, q["w34m"], q["b34"])
    # self.active (sigmoid) is NOT applied in the reference forward().
    return jnp.transpose(out, (0, 3, 1, 2))              # NHWC -> NCHW


# ----------------------------- reference (mixed precision, un-fused) ------------

def _ref_conv(x, w_oihw, b, padding):
    w = _oihw_to_hwio(w_oihw)
    y = lax.conv_general_dilated(
        x.astype(jnp.bfloat16), w.astype(jnp.bfloat16), (1, 1), padding,
        dimension_numbers=("NHWC", "HWIO", "NHWC"),
        preferred_element_type=jnp.float32)
    return y + b


def ref_forward(x_nchw, p, eps=1e-5):
    x = jnp.transpose(x_nchw, (0, 2, 3, 1))
    same = [(1, 1), (1, 1)]
    e1 = _ref_conv(x, p["w1"], p["b1"], same)
    e1 = jnp.where(e1 >= 0, e1, 0.2 * e1)
    c2 = _ref_conv(e1, p["w2"], p["b2"], same)
    mean = jnp.mean(c2, axis=(0, 1, 2))
    var = jnp.var(c2, axis=(0, 1, 2))
    y = (c2 - mean) / jnp.sqrt(var + eps) * p["gamma"] + p["beta"]
    e2 = jnp.where(y >= 0, y, 0.2 * y)
    e3 = _ref_conv(e2, p["w3"], p["b3"], same)
    out = _ref_conv(e3, p["w4"], p["b4"], [(0, 0), (0, 0)])
    return jnp.transpose(out, (0, 3, 1, 2))


# ----------------------------- main -----------------------------

if __name__ == "__main__":
    key = jax.random.PRNGKey(0)
    k_x, k_p = jax.random.split(key)

    N, input_nc, output_nc, H, W = 2, 4, 3, 16, 16
    x = jax.random.normal(k_x, (N, input_nc, H, W), jnp.float32)
    params = init_params(k_p, input_nc, output_nc)

    out = jax.block_until_ready(jax.jit(filter_net_forward)(x, params))
    ref = jax.block_until_ready(jax.jit(ref_forward)(x, params))

    assert out.shape == (N, output_nc, H, W), out.shape
    max_err = float(jnp.max(jnp.abs(out - ref)))
    assert jnp.allclose(out, ref, atol=2e-2, rtol=2e-2), max_err
    print("KERNEL_OK")
</pallas_src>

<mosaic_0001>
module attributes {stable_mosaic.version = 11 : i64} {
  func.func @_conv12_kernel(%arg0: i32, %arg1: memref<1x256x36xbf16, #tpu.memory_space<vmem>>, %arg2: memref<36x128xbf16, #tpu.memory_space<vmem>>, %arg3: memref<1x128xf32, #tpu.memory_space<vmem>>, %arg4: memref<1152x128xbf16, #tpu.memory_space<vmem>>, %arg5: memref<1x128xf32, #tpu.memory_space<vmem>>, %arg6: memref<1x16x16x128xf32, #tpu.memory_space<vmem>>, %arg7: memref<1x1x128xf32, #tpu.memory_space<vmem>>, %arg8: memref<1x1x128xf32, #tpu.memory_space<vmem>>, %arg9: memref<18x18x128xf32, #tpu.memory_space<vmem>>) attributes {dimension_semantics = [#tpu.dimension_semantics<parallel>], iteration_bounds = array<i64: 2>, scalar_prefetch = 0 : i64, scratch_operands = 1 : i64, tpu.core_type = #tpu.core_type<tc>, window_params = [{transform_indices = @transform_0, window_bounds = array<i64: 1, 256, 36>}, {pipeline_mode = #tpu.pipeline_mode<synchronous>, transform_indices = @transform_1, window_bounds = array<i64: 36, 128>}, {pipeline_mode = #tpu.pipeline_mode<synchronous>, transform_indices = @transform_2, window_bounds = array<i64: 1, 128>}, {pipeline_mode = #tpu.pipeline_mode<synchronous>, transform_indices = @transform_3, window_bounds = array<i64: 1152, 128>}, {pipeline_mode = #tpu.pipeline_mode<synchronous>, transform_indices = @transform_4, window_bounds = array<i64: 1, 128>}, {transform_indices = @transform_5, window_bounds = array<i64: 1, 16, 16, 128>}, {transform_indices = @transform_6, window_bounds = array<i64: 1, 1, 128>}, {transform_indices = @transform_7, window_bounds = array<i64: 1, 1, 128>}]} {
    %c0 = arith.constant 0 : index
    %c0_0 = arith.constant 0 : index
    %c0_1 = arith.constant 0 : index
    %0 = vector.load %arg1[%c0, %c0_0, %c0_1] : memref<1x256x36xbf16, #tpu.memory_space<vmem>>, vector<1x256x36xbf16>
    %1 = vector.shape_cast %0 : vector<1x256x36xbf16> to vector<256x36xbf16>
    %c0_2 = arith.constant 0 : index
    %c0_3 = arith.constant 0 : index
    %2 = vector.load %arg2[%c0_2, %c0_3] : memref<36x128xbf16, #tpu.memory_space<vmem>>, vector<36x128xbf16>
    %cst = arith.constant dense<0.000000e+00> : vector<256x128xf32>
    %3 = tpu.matmul %1, %2, %cst {dimension_numbers = #tpu.dot_dimension_numbers<[1], [0], [0], [1], [0, 0, 1, 1], [], []>} : vector<256x36xbf16>, vector<36x128xbf16>, vector<256x128xf32> -> vector<256x128xf32>
    %c0_4 = arith.constant 0 : index
    %c0_5 = arith.constant 0 : index
    %4 = vector.load %arg3[%c0_4, %c0_5] : memref<1x128xf32, #tpu.memory_space<vmem>>, vector<1x128xf32>
    %5 = vector.broadcast %4 : vector<1x128xf32> to vector<256x128xf32>
    %6 = arith.addf %3, %5 : vector<256x128xf32>
    %cst_6 = arith.constant 0.000000e+00 : f32
    %7 = vector.broadcast %cst_6 : f32 to vector<256x128xf32>
    %8 = arith.cmpf oge, %6, %7 : vector<256x128xf32>
    %cst_7 = arith.constant 2.000000e-01 : f32
    %9 = vector.broadcast %cst_7 : f32 to vector<256x128xf32>
    %10 = arith.mulf %9, %6 : vector<256x128xf32>
    %11 = arith.select %8, %6, %10 : vector<256x128xi1>, vector<256x128xf32>
    %cst_8 = arith.constant 0.000000e+00 : f32
    %12 = vector.broadcast %cst_8 : f32 to vector<18x18x128xf32>
    %c0_9 = arith.constant 0 : index
    %c0_10 = arith.constant 0 : index
    %c0_11 = arith.constant 0 : index
    %13 = vector.load %arg9[%c0_9, %c0_10, %c0_11] : memref<18x18x128xf32, #tpu.memory_space<vmem>>, vector<18x18x128xf32>
    tpu.vector_store %arg9[%c0_9, %c0_10, %c0_11], %12 {strides = array<i32>} : memref<18x18x128xf32, #tpu.memory_space<vmem>>, vector<18x18x128xf32>,
    %14 = vector.shape_cast %11 : vector<256x128xf32> to vector<16x16x128xf32>
    %c1 = arith.constant 1 : index
    %c1_12 = arith.constant 1 : index
    %c0_13 = arith.constant 0 : index
    %15 = vector.load %arg9[%c1, %c1_12, %c0_13] : memref<18x18x128xf32, #tpu.memory_space<vmem>>, vector<16x16x128xf32>
    tpu.vector_store %arg9[%c1, %c1_12, %c0_13], %14 {strides = array<i32>} : memref<18x18x128xf32, #tpu.memory_space<vmem>>, vector<16x16x128xf32>,
    %c0_14 = arith.constant 0 : index
    %c0_15 = arith.constant 0 : index
    %c0_16 = arith.constant 0 : index
    %16 = vector.load %arg9[%c0_14, %c0_15, %c0_16] : memref<18x18x128xf32, #tpu.memory_space<vmem>>, vector<18x18x128xf32>
    %17 = vector.extract_strided_slice %16 {offsets = [0, 0, 0], sizes = [16, 16, 128], strides = [1, 1, 1]} : vector<18x18x128xf32> to vector<16x16x128xf32>
    %18 = arith.truncf %17 : vector<16x16x128xf32> to vector<16x16x128xbf16>
    %19 = vector.extract_strided_slice %16 {offsets = [0, 1, 0], sizes = [16, 16, 128], strides = [1, 1, 1]} : vector<18x18x128xf32> to vector<16x16x128xf32>
    %20 = arith.truncf %19 : vector<16x16x128xf32> to vector<16x16x128xbf16>
    %21 = vector.extract_strided_slice %16 {offsets = [0, 2, 0], sizes = [16, 16, 128], strides = [1, 1, 1]} : vector<18x18x128xf32> to vector<16x16x128xf32>
    %22 = arith.truncf %21 : vector<16x16x128xf32> to vector<16x16x128xbf16>
    %23 = vector.extract_strided_slice %16 {offsets = [1, 0, 0], sizes = [16, 16, 128], strides = [1, 1, 1]} : vector<18x18x128xf32> to vector<16x16x128xf32>
    %24 = arith.truncf %23 : vector<16x16x128xf32> to vector<16x16x128xbf16>
    %25 = vector.extract_strided_slice %16 {offsets = [1, 1, 0], sizes = [16, 16, 128], strides = [1, 1, 1]} : vector<18x18x128xf32> to vector<16x16x128xf32>
    %26 = arith.truncf %25 : vector<16x16x128xf32> to vector<16x16x128xbf16>
    %27 = vector.extract_strided_slice %16 {offsets = [1, 2, 0], sizes = [16, 16, 128], strides = [1, 1, 1]} : vector<18x18x128xf32> to vector<16x16x128xf32>
    %28 = arith.truncf %27 : vector<16x16x128xf32> to vector<16x16x128xbf16>
    %29 = vector.extract_strided_slice %16 {offsets = [2, 0, 0], sizes = [16, 16, 128], strides = [1, 1, 1]} : vector<18x18x128xf32> to vector<16x16x128xf32>
    %30 = arith.truncf %29 : vector<16x16x128xf32> to vector<16x16x128xbf16>
    %31 = vector.extract_strided_slice %16 {offsets = [2, 1, 0], sizes = [16, 16, 128], strides = [1, 1, 1]} : vector<18x18x128xf32> to vector<16x16x128xf32>
    %32 = arith.truncf %31 : vector<16x16x128xf32> to vector<16x16x128xbf16>
    %33 = vector.extract_strided_slice %16 {offsets = [2, 2, 0], sizes = [16, 16, 128], strides = [1, 1, 1]} : vector<18x18x128xf32> to vector<16x16x128xf32>
    %34 = arith.truncf %33 : vector<16x16x128xf32> to vector<16x16x128xbf16>
    %35 = tpu.concatenate %18, %20, %22, %24, %26, %28, %30, %32, %34 in 2 : vector<16x16x128xbf16>, vector<16x16x128xbf16>, vector<16x16x128xbf16>, vector<16x16x128xbf16>, vector<16x16x128xbf16>, vector<16x16x128xbf16>, vector<16x16x128xbf16>, vector<16x16x128xbf16>, vector<16x16x128xbf16> -> vector<16x16x1152xbf16>
    %36 = vector.shape_cast %35 : vector<16x16x1152xbf16> to vector<256x1152xbf16>
    %c0_17 = arith.constant 0 : index
    %c0_18 = arith.constant 0 : index
    %37 = vector.load %arg4[%c0_17, %c0_18] : memref<1152x128xbf16, #tpu.memory_space<vmem>>, vector<1152x128xbf16>
    %cst_19 = arith.constant dense<0.000000e+00> : vector<256x128xf32>
    %38 = tpu.matmul %36, %37, %cst_19 {dimension_numbers = #tpu.dot_dimension_numbers<[1], [0], [0], [1], [0, 0, 1, 1], [], []>} : vector<256x1152xbf16>, vector<1152x128xbf16>, vector<256x128xf32> -> vector<256x128xf32>
    %c0_20 = arith.constant 0 : index
    %c0_21 = arith.constant 0 : index
    %39 = vector.load %arg5[%c0_20, %c0_21] : memref<1x128xf32, #tpu.memory_space<vmem>>, vector<1x128xf32>
    %40 = vector.broadcast %39 : vector<1x128xf32> to vector<256x128xf32>
    %41 = arith.addf %38, %40 : vector<256x128xf32>
    %42 = vector.shape_cast %41 : vector<256x128xf32> to vector<1x16x16x128xf32>
    %c0_22 = arith.constant 0 : index
    %c0_23 = arith.constant 0 : index
    %c0_24 = arith.constant 0 : index
    %c0_25 = arith.constant 0 : index
    %43 = vector.load %arg6[%c0_22, %c0_23, %c0_24, %c0_25] : memref<1x16x16x128xf32, #tpu.memory_space<vmem>>, vector<1x16x16x128xf32>
    tpu.vector_store %arg6[%c0_22, %c0_23, %c0_24, %c0_25], %42 {strides = array<i32>} : memref<1x16x16x128xf32, #tpu.memory_space<vmem>>, vector<1x16x16x128xf32>,
    %cst_26 = arith.constant dense<0.000000e+00> : vector<128xf32>
    %44 = vector.multi_reduction <add>, %41, %cst_26 [0] : vector<256x128xf32> to vector<128xf32>
    %45 = vector.shape_cast %44 : vector<128xf32> to vector<1x1x128xf32>
    %c0_27 = arith.constant 0 : index
    %c0_28 = arith.constant 0 : index
    %c0_29 = arith.constant 0 : index
    %46 = vector.load %arg7[%c0_27, %c0_28, %c0_29] : memref<1x1x128xf32, #tpu.memory_space<vmem>>, vector<1x1x128xf32>
    tpu.vector_store %arg7[%c0_27, %c0_28, %c0_29], %45 {strides = array<i32>} : memref<1x1x128xf32, #tpu.memory_space<vmem>>, vector<1x1x128xf32>,
    %47 = arith.mulf %41, %41 : vector<256x128xf32>
    %cst_30 = arith.constant dense<0.000000e+00> : vector<128xf32>
    %48 = vector.multi_reduction <add>, %47, %cst_30 [0] : vector<256x128xf32> to vector<128xf32>
    %49 = vector.shape_cast %48 : vector<128xf32> to vector<1x1x128xf32>
    %c0_31 = arith.constant 0 : index
    %c0_32 = arith.constant 0 : index
    %c0_33 = arith.constant 0 : index
    %50 = vector.load %arg8[%c0_31, %c0_32, %c0_33] : memref<1x1x128xf32, #tpu.memory_space<vmem>>, vector<1x1x128xf32>
    tpu.vector_store %arg8[%c0_31, %c0_32, %c0_33], %49 {strides = array<i32>} : memref<1x1x128xf32, #tpu.memory_space<vmem>>, vector<1x1x128xf32>,
    return
  }
  func.func @transform_0(%arg0: i32) -> (i32, i32, i32) {
    %c0_i32 = arith.constant 0 : i32
    %c0_i32_0 = arith.constant 0 : i32
    %c0_i32_1 = arith.constant 0 : i32
    return %arg0, %c0_i32, %c0_i32_0 : i32, i32, i32
  }
  func.func @transform_1(%arg0: i32) -> (i32, i32) {
    %c0_i32 = arith.constant 0 : i32
    %c0_i32_0 = arith.constant 0 : i32
    %c0_i32_1 = arith.constant 0 : i32
    return %c0_i32, %c0_i32_0 : i32, i32
  }
  func.func @transform_2(%arg0: i32) -> (i32, i32) {
    %c0_i32 = arith.constant 0 : i32
    %c0_i32_0 = arith.constant 0 : i32
    %c0_i32_1 = arith.constant 0 : i32
    return %c0_i32, %c0_i32_0 : i32, i32
  }
  func.func @transform_3(%arg0: i32) -> (i32, i32) {
    %c0_i32 = arith.constant 0 : i32
    %c0_i32_0 = arith.constant 0 : i32
    %c0_i32_1 = arith.constant 0 : i32
    return %c0_i32, %c0_i32_0 : i32, i32
  }
  func.func @transform_4(%arg0: i32) -> (i32, i32) {
    %c0_i32 = arith.constant 0 : i32
    %c0_i32_0 = arith.constant 0 : i32
    %c0_i32_1 = arith.constant 0 : i32
    return %c0_i32, %c0_i32_0 : i32, i32
  }
  func.func @transform_5(%arg0: i32) -> (i32, i32, i32, i32) {
    %c0_i32 = arith.constant 0 : i32
    %c0_i32_0 = arith.constant 0 : i32
    %c0_i32_1 = arith.constant 0 : i32
    %c0_i32_2 = arith.constant 0 : i32
    return %arg0, %c0_i32, %c0_i32_0, %c0_i32_1 : i32, i32, i32, i32
  }
  func.func @transform_6(%arg0: i32) -> (i32, i32, i32) {
    %c0_i32 = arith.constant 0 : i32
    %c0_i32_0 = arith.constant 0 : i32
    %c0_i32_1 = arith.constant 0 : i32
    return %arg0, %c0_i32, %c0_i32_0 : i32, i32, i32
  }
  func.func @transform_7(%arg0: i32) -> (i32, i32, i32) {
    %c0_i32 = arith.constant 0 : i32
    %c0_i32_0 = arith.constant 0 : i32
    %c0_i32_1 = arith.constant 0 : i32
    return %arg0, %c0_i32, %c0_i32_0 : i32, i32, i32
  }
}

module attributes {stable_mosaic.version = 11 : i64} {
  func.func @_bn_conv3_kernel(%arg0: i32, %arg1: memref<1x16x16x128xf32, #tpu.memory_space<vmem>>, %arg2: memref<1x128xf32, #tpu.memory_space<vmem>>, %arg3: memref<1x128xf32, #tpu.memory_space<vmem>>, %arg4: memref<1152x3xbf16, #tpu.memory_space<vmem>>, %arg5: memref<1x3xf32, #tpu.memory_space<vmem>>, %arg6: memref<1x16x16x3xf32, #tpu.memory_space<vmem>>, %arg7: memref<18x18x128xf32, #tpu.memory_space<vmem>>) attributes {dimension_semantics = [#tpu.dimension_semantics<parallel>], iteration_bounds = array<i64: 2>, scalar_prefetch = 0 : i64, scratch_operands = 1 : i64, tpu.core_type = #tpu.core_type<tc>, window_params = [{transform_indices = @transform_0, window_bounds = array<i64: 1, 16, 16, 128>}, {pipeline_mode = #tpu.pipeline_mode<synchronous>, transform_indices = @transform_1, window_bounds = array<i64: 1, 128>}, {pipeline_mode = #tpu.pipeline_mode<synchronous>, transform_indices = @transform_2, window_bounds = array<i64: 1, 128>}, {pipeline_mode = #tpu.pipeline_mode<synchronous>, transform_indices = @transform_3, window_bounds = array<i64: 1152, 3>}, {pipeline_mode = #tpu.pipeline_mode<synchronous>, transform_indices = @transform_4, window_bounds = array<i64: 1, 3>}, {transform_indices = @transform_5, window_bounds = array<i64: 1, 16, 16, 3>}]} {
    %c0 = arith.constant 0 : index
    %c0_0 = arith.constant 0 : index
    %c0_1 = arith.constant 0 : index
    %c0_2 = arith.constant 0 : index
    %0 = vector.load %arg1[%c0, %c0_0, %c0_1, %c0_2] : memref<1x16x16x128xf32, #tpu.memory_space<vmem>>, vector<1x16x16x128xf32>
    %1 = vector.shape_cast %0 : vector<1x16x16x128xf32> to vector<16x16x128xf32>
    %2 = vector.shape_cast %1 : vector<16x16x128xf32> to vector<256x128xf32>
    %c0_3 = arith.constant 0 : index
    %c0_4 = arith.constant 0 : index
    %3 = vector.load %arg2[%c0_3, %c0_4] : memref<1x128xf32, #tpu.memory_space<vmem>>, vector<1x128xf32>
    %4 = vector.broadcast %3 : vector<1x128xf32> to vector<256x128xf32>
    %5 = arith.mulf %2, %4 : vector<256x128xf32>
    %c0_5 = arith.constant 0 : index
    %c0_6 = arith.constant 0 : index
    %6 = vector.load %arg3[%c0_5, %c0_6] : memref<1x128xf32, #tpu.memory_space<vmem>>, vector<1x128xf32>
    %7 = vector.broadcast %6 : vector<1x128xf32> to vector<256x128xf32>
    %8 = arith.addf %5, %7 : vector<256x128xf32>
    %cst = arith.constant 0.000000e+00 : f32
    %9 = vector.broadcast %cst : f32 to vector<256x128xf32>
    %10 = arith.cmpf oge, %8, %9 : vector<256x128xf32>
    %cst_7 = arith.constant 2.000000e-01 : f32
    %11 = vector.broadcast %cst_7 : f32 to vector<256x128xf32>
    %12 = arith.mulf %11, %8 : vector<256x128xf32>
    %13 = arith.select %10, %8, %12 : vector<256x128xi1>, vector<256x128xf32>
    %cst_8 = arith.constant 0.000000e+00 : f32
    %14 = vector.broadcast %cst_8 : f32 to vector<18x18x128xf32>
    %c0_9 = arith.constant 0 : index
    %c0_10 = arith.constant 0 : index
    %c0_11 = arith.constant 0 : index
    %15 = vector.load %arg7[%c0_9, %c0_10, %c0_11] : memref<18x18x128xf32, #tpu.memory_space<vmem>>, vector<18x18x128xf32>
    tpu.vector_store %arg7[%c0_9, %c0_10, %c0_11], %14 {strides = array<i32>} : memref<18x18x128xf32, #tpu.memory_space<vmem>>, vector<18x18x128xf32>,
    %16 = vector.shape_cast %13 : vector<256x128xf32> to vector<16x16x128xf32>
    %c1 = arith.constant 1 : index
    %c1_12 = arith.constant 1 : index
    %c0_13 = arith.constant 0 : index
    %17 = vector.load %arg7[%c1, %c1_12, %c0_13] : memref<18x18x128xf32, #tpu.memory_space<vmem>>, vector<16x16x128xf32>
    tpu.vector_store %arg7[%c1, %c1_12, %c0_13], %16 {strides = array<i32>} : memref<18x18x128xf32, #tpu.memory_space<vmem>>, vector<16x16x128xf32>,
    %c0_14 = arith.constant 0 : index
    %c0_15 = arith.constant 0 : index
    %c0_16 = arith.constant 0 : index
    %18 = vector.load %arg7[%c0_14, %c0_15, %c0_16] : memref<18x18x128xf32, #tpu.memory_space<vmem>>, vector<18x18x128xf32>
    %19 = vector.extract_strided_slice %18 {offsets = [0, 0, 0], sizes = [16, 16, 128], strides = [1, 1, 1]} : vector<18x18x128xf32> to vector<16x16x128xf32>
    %20 = arith.truncf %19 : vector<16x16x128xf32> to vector<16x16x128xbf16>
    %21 = vector.extract_strided_slice %18 {offsets = [0, 1, 0], sizes = [16, 16, 128], strides = [1, 1, 1]} : vector<18x18x128xf32> to vector<16x16x128xf32>
    %22 = arith.truncf %21 : vector<16x16x128xf32> to vector<16x16x128xbf16>
    %23 = vector.extract_strided_slice %18 {offsets = [0, 2, 0], sizes = [16, 16, 128], strides = [1, 1, 1]} : vector<18x18x128xf32> to vector<16x16x128xf32>
    %24 = arith.truncf %23 : vector<16x16x128xf32> to vector<16x16x128xbf16>
    %25 = vector.extract_strided_slice %18 {offsets = [1, 0, 0], sizes = [16, 16, 128], strides = [1, 1, 1]} : vector<18x18x128xf32> to vector<16x16x128xf32>
    %26 = arith.truncf %25 : vector<16x16x128xf32> to vector<16x16x128xbf16>
    %27 = vector.extract_strided_slice %18 {offsets = [1, 1, 0], sizes = [16, 16, 128], strides = [1, 1, 1]} : vector<18x18x128xf32> to vector<16x16x128xf32>
    %28 = arith.truncf %27 : vector<16x16x128xf32> to vector<16x16x128xbf16>
    %29 = vector.extract_strided_slice %18 {offsets = [1, 2, 0], sizes = [16, 16, 128], strides = [1, 1, 1]} : vector<18x18x128xf32> to vector<16x16x128xf32>
    %30 = arith.truncf %29 : vector<16x16x128xf32> to vector<16x16x128xbf16>
    %31 = vector.extract_strided_slice %18 {offsets = [2, 0, 0], sizes = [16, 16, 128], strides = [1, 1, 1]} : vector<18x18x128xf32> to vector<16x16x128xf32>
    %32 = arith.truncf %31 : vector<16x16x128xf32> to vector<16x16x128xbf16>
    %33 = vector.extract_strided_slice %18 {offsets = [2, 1, 0], sizes = [16, 16, 128], strides = [1, 1, 1]} : vector<18x18x128xf32> to vector<16x16x128xf32>
    %34 = arith.truncf %33 : vector<16x16x128xf32> to vector<16x16x128xbf16>
    %35 = vector.extract_strided_slice %18 {offsets = [2, 2, 0], sizes = [16, 16, 128], strides = [1, 1, 1]} : vector<18x18x128xf32> to vector<16x16x128xf32>
    %36 = arith.truncf %35 : vector<16x16x128xf32> to vector<16x16x128xbf16>
    %37 = tpu.concatenate %20, %22, %24, %26, %28, %30, %32, %34, %36 in 2 : vector<16x16x128xbf16>, vector<16x16x128xbf16>, vector<16x16x128xbf16>, vector<16x16x128xbf16>, vector<16x16x128xbf16>, vector<16x16x128xbf16>, vector<16x16x128xbf16>, vector<16x16x128xbf16>, vector<16x16x128xbf16> -> vector<16x16x1152xbf16>
    %38 = vector.shape_cast %37 : vector<16x16x1152xbf16> to vector<256x1152xbf16>
    %c0_17 = arith.constant 0 : index
    %c0_18 = arith.constant 0 : index
    %39 = vector.load %arg4[%c0_17, %c0_18] : memref<1152x3xbf16, #tpu.memory_space<vmem>>, vector<1152x3xbf16>
    %cst_19 = arith.constant dense<0.000000e+00> : vector<256x3xf32>
    %40 = tpu.matmul %38, %39, %cst_19 {dimension_numbers = #tpu.dot_dimension_numbers<[1], [0], [0], [1], [0, 0, 1, 1], [], []>} : vector<256x1152xbf16>, vector<1152x3xbf16>, vector<256x3xf32> -> vector<256x3xf32>
    %c0_20 = arith.constant 0 : index
    %c0_21 = arith.constant 0 : index
    %41 = vector.load %arg5[%c0_20, %c0_21] : memref<1x3xf32, #tpu.memory_space<vmem>>, vector<1x3xf32>
    %42 = vector.broadcast %41 : vector<1x3xf32> to vector<256x3xf32>
    %43 = arith.addf %40, %42 : vector<256x3xf32>
    %44 = vector.shape_cast %43 : vector<256x3xf32> to vector<1x16x16x3xf32>
    %c0_22 = arith.constant 0 : index
    %c0_23 = arith.constant 0 : index
    %c0_24 = arith.constant 0 : index
    %c0_25 = arith.constant 0 : index
    %45 = vector.load %arg6[%c0_22, %c0_23, %c0_24, %c0_25] : memref<1x16x16x3xf32, #tpu.memory_space<vmem>>, vector<1x16x16x3xf32>
    tpu.vector_store %arg6[%c0_22, %c0_23, %c0_24, %c0_25], %44 {strides = array<i32>} : memref<1x16x16x3xf32, #tpu.memory_space<vmem>>, vector<1x16x16x3xf32>,
    return
  }
  func.func @transform_0(%arg0: i32) -> (i32, i32, i32, i32) {
    %c0_i32 = arith.constant 0 : i32
    %c0_i32_0 = arith.constant 0 : i32
    %c0_i32_1 = arith.constant 0 : i32
    %c0_i32_2 = arith.constant 0 : i32
    return %arg0, %c0_i32, %c0_i32_0, %c0_i32_1 : i32, i32, i32, i32
  }
  func.func @transform_1(%arg0: i32) -> (i32, i32) {
    %c0_i32 = arith.constant 0 : i32
    %c0_i32_0 = arith.constant 0 : i32
    %c0_i32_1 = arith.constant 0 : i32
    return %c0_i32, %c0_i32_0 : i32, i32
  }
  func.func @transform_2(%arg0: i32) -> (i32, i32) {
    %c0_i32 = arith.constant 0 : i32
    %c0_i32_0 = arith.constant 0 : i32
    %c0_i32_1 = arith.constant 0 : i32
    return %c0_i32, %c0_i32_0 : i32, i32
  }
  func.func @transform_3(%arg0: i32) -> (i32, i32) {
    %c0_i32 = arith.constant 0 : i32
    %c0_i32_0 = arith.constant 0 : i32
    %c0_i32_1 = arith.constant 0 : i32
    return %c0_i32, %c0_i32_0 : i32, i32
  }
  func.func @transform_4(%arg0: i32) -> (i32, i32) {
    %c0_i32 = arith.constant 0 : i32
    %c0_i32_0 = arith.constant 0 : i32
    %c0_i32_1 = arith.constant 0 : i32
    return %c0_i32, %c0_i32_0 : i32, i32
  }
  func.func @transform_5(%arg0: i32) -> (i32, i32, i32, i32) {
    %c0_i32 = arith.constant 0 : i32
    %c0_i32_0 = arith.constant 0 : i32
    %c0_i32_1 = arith.constant 0 : i32
    %c0_i32_2 = arith.constant 0 : i32
    return %arg0, %c0_i32, %c0_i32_0, %c0_i32_1 : i32, i32, i32, i32
  }
}

</mosaic_0001>

<bundles_post_ra>
// kernel: filter_net_forward.3
= control target key start
LH: loop header
LB: loop body
LE: loop exit
PB: predicated region body
PF: predicated region fallthrough
CT: control target
= control target key end

     0   :  { %s3178_s18 = smov 0   ;;  %s4474_s0 = inlined_call_operand.vmem [shape: f32[2,16,16,128], index: 0, kind: input, shape index: {}]   ;;  %s4475_s1 = inlined_call_operand.vmem [shape: f32[1,128], index: 1, kind: input, shape index: {}]   ;;  %s4476_s2 = inlined_call_operand.vmem [shape: f32[1,128], index: 2, kind: input, shape index: {}]   ;;  %s4477_s3 = inlined_call_operand.vmem [shape: bf16[1152,3], index: 3, kind: input, shape index: {}]   ;;  %s4478_s4 = inlined_call_operand.vmem [shape: f32[1,3], index: 4, kind: input, shape index: {}]   ;;  %s4479_s5 = inlined_call_operand.vmem [shape: f32[2,16,16,3], index: 5, kind: output, shape index: {}]  }
   0x1 LB: > { %s2429_s19 = sadd.s32 4294967295, %s3143_s18   ;;  %p2433_p0 = scmp.ge.s32.totalorder %s3143_s18, 1  ;;  %s3143_s18 = sphi %s3178_s18, %s15_s18  }
   0x2   : > { %p187_p1 = scmp.lt.s32.totalorder %s3143_s18, 3 }
   0x4   : > { %p188_p2 = pnand %p2433_p0, %p187_p1 }
   0x6   : > { %191 = sbr.rel (%p188_p2) target bundleno = 542 (0x21e), region = 40 }
   0xb   : > { %v3062_v0 = vld [vmem:[%s4477_s3 + $0x78] sm:$0xff]   ;;  %v3145_v2 = vmov 0.0   ;;  %v3064_v3 = vld [vmem:[%s4477_s3 + $0x70] sm:$0xff]   ;;  %p215_p3 = scmp.lt.s32.totalorder %s2429_s19, 1  ;;  %v3066_v5 = vld [vmem:[%s4477_s3 + $0x68] sm:$0xff]   ;;  %v3146_v12 = vmov 0  }
   0xc   : > { %v3063_v1 = vld [vmem:[%s4477_s3 + $0x38] sm:$0xff]   ;;  %432 = vst [vmem:[#allocation2] sm:$0xff] %v3145_v2  ;;  %434 = vst [vmem:[#allocation2 + $0x10] sm:$0x3] %v3145_v2  ;;  %2517 = vmatprep.subr.bf16.mxu0 %v3062_v0  ;;  %3037 = vmatprep.subr.bf16.mxu1 %v3062_v0  ;;  %v3065_v4 = vld [vmem:[%s4477_s3 + $0x30] sm:$0xff]   ;;  %v615_v13 = vrot.slane %v3146_v12, 1 }
   0xd   : > { %435 = vst [vmem:[#allocation2 + $0x18] sm:$0xff] %v3145_v2  ;;  %436 = vst [vmem:[#allocation2 + $0x20] sm:$0xff] %v3145_v2  ;;  %2518 = vmatpush3.bf16.msra.mxu0 %v3063_v1  ;;  %3045 = vmatpush3.bf16.msra.mxu1 %v3063_v1  ;;  %s4505_s19 = smov (!%p215_p3, %s2429_s19), 1  ;;  %v3067_v6 = vld [vmem:[%s4477_s3 + $0x28] sm:$0xff]   ;;  %v3068_v7 = vld [vmem:[%s4477_s3 + $0x60] sm:$0xff]  }
   0xe   : > { %437 = vst [vmem:[#allocation2 + $0x28] sm:$0x3] %v3145_v2  ;;  %438 = vst [vmem:[#allocation2 + $0x30] sm:$0xff] %v3145_v2  ;;  %2519 = vmatprep.subr.bf16.mxu0 %v3064_v3  ;;  %3038 = vmatprep.subr.bf16.mxu1 %v3064_v3  ;;  %s2515_s9 = sshll.u32 %s4505_s19, 8  ;;  %v3069_v8 = vld [vmem:[%s4477_s3 + $0x20] sm:$0xff]   ;;  %v3070_v9 = vld [vmem:[%s4477_s3 + $0x58] sm:$0xff]  }
   0xf   : > { %439 = vst [vmem:[#allocation2 + $0x38] sm:$0xff] %v3145_v2  ;;  %440 = vst [vmem:[#allocation2 + $0x40] sm:$0x3] %v3145_v2  ;;  %s3225_s16 = scalar_lea.vmem %s4474_s0, %s2515_s9  ;;  %v3071_v10 = vld [vmem:[%s4477_s3 + $0x18] sm:$0xff]   ;;  %v3072_v11 = vld [vmem:[%s4477_s3 + $0x50] sm:$0xff]   ;;  %s4328_s30 = scalar_lea.vmem %s4479_s5, %s2515_s9 }
  0x10   : > { %441 = vst [vmem:[#allocation2 + $0x48] sm:$0xff] %v3145_v2  ;;  %442 = vst [vmem:[#allocation2 + $0x50] sm:$0xff] %v3145_v2  ;;  %v248_v15 = vld [vmem:[%s3225_s16 + $0xb0] sm:$0xff]  ;;  %v249_v16 = vld [vmem:[%s3225_s16 + $0xb8] sm:$0xff]  ;;  %vm609_vm0 = vsmask.f32 7424 }
  0x11   : > { %443 = vst [vmem:[#allocation2 + $0x58] sm:$0x3] %v3145_v2  ;;  %444 = vst [vmem:[#allocation2 + $0x60] sm:$0xff] %v3145_v2  ;;  %2520 = vmatpush3.bf16.msra.mxu0 %v3065_v4  ;;  %3046 = vmatpush3.bf16.msra.mxu1 %v3065_v4  ;;  %v3240_v18 = vld [vmem:[%s4475_s1] ss:$0 sm:$0xff]  ;;  %v3073_v20 = vld [vmem:[%s4477_s3 + $0x10] sm:$0xff]  }
  0x12   : > { %445 = vst [vmem:[#allocation2 + $0x68] sm:$0xff] %v3145_v2  ;;  %446 = vst [vmem:[#allocation2 + $0x70] sm:$0x3] %v3145_v2  ;;  %2521 = vmatprep.subr.bf16.mxu0 %v3066_v5  ;;  %3039 = vmatprep.subr.bf16.mxu1 %v3066_v5  ;;  %v3245_v19 = vld [vmem:[%s4476_s2] ss:$0 sm:$0xff]  ;;  %v287_v21 = vmul.f32 %v3240_v18, %v248_v15  ;;  %v288_v22 = vmul.f32 %v3240_v18, %v249_v16  ;;  %v3074_v23 = vld [vmem:[%s4477_s3 + $0x48] sm:$0xff]  }
  0x13   : > { %447 = vst [vmem:[#allocation2 + $0x78] sm:$0xff] %v3145_v2  ;;  %448 = vst [vmem:[#allocation2 + $0x80] sm:$0xff] %v3145_v2  ;;  %v521_v14 = vld [vmem:[#allocation2 + $0x10] sm:$0x3]  ;;  %v3075_v30 = vld [vmem:[%s4477_s3 + $0x8] sm:$0xff]   ;;  %v3147_v5 = vmov 0.0|0.0  }
  0x14   : > { %449 = vst [vmem:[#allocation2 + $0x88] sm:$0x3] %v3145_v2  ;;  %450 = vst [vmem:[#allocation2 + $0x90] sm:$0xff] %v3145_v2  ;;  %v3235_v17 = vpack.c.bf16 %v521_v14, %v521_v14  ;;  %v326_v25 = vadd.f32 %v3245_v19, %v287_v21  ;;  %v327_v26 = vadd.f32 %v3245_v19, %v288_v22  ;;  %v3076_v32 = vld [vmem:[%s4477_s3 + $0x40] sm:$0xff]   ;;  %v227_v36 = vld [vmem:[%s3225_s16 + $0x8] sm:$0xff] }
  0x15   : > { %451 = vst [vmem:[#allocation2 + $0x98] sm:$0xff] %v3145_v2  ;;  %452 = vst [vmem:[#allocation2 + $0xa0] sm:$0x3] %v3145_v2  ;;  %2522 = vmatpush3.bf16.msra.mxu0 %v3067_v6  ;;  %3047 = vmatpush3.bf16.msra.mxu1 %v3067_v6  ;;  %v226_v35 = vld [vmem:[%s3225_s16] sm:$0xff]  ;;  %v251_v39 = vld [vmem:[%s3225_s16 + $0xc8] sm:$0xff]  ;;  %v266_v41 = vmul.f32 %v3240_v18, %v227_v36 }
  0x16   : > { %453 = vst [vmem:[#allocation2 + $0xa8] sm:$0xff] %v3145_v2  ;;  %454 = vst [vmem:[#allocation2 + $0xb0] sm:$0xff] %v3145_v2  ;;  %2523 = vmatprep.subr.bf16.mxu0 %v3068_v7  ;;  %3040 = vmatprep.subr.bf16.mxu1 %v3068_v7  ;;  %v618_v24 = vshll.u32 %v3235_v17, 16  ;;  %vm358_vm1 = vcmp.ge.f32.partialorder %v326_v25, 0.0  ;;  %vm359_vm2 = vcmp.ge.f32.partialorder %v327_v26, 0.0  ;;  %v265_v37 = vmul.f32 %v3240_v18, %v226_v35  ;;  %v250_v38 = vld [vmem:[%s3225_s16 + $0xc0] sm:$0xff] }
  0x17   : > { %455 = vst [vmem:[#allocation2 + $0xb8] sm:$0x3] %v3145_v2  ;;  %456 = vst [vmem:[#allocation2 + $0xc0] sm:$0xff] %v3145_v2  ;;  %v390_v28 = vmul.f32 0.2, %v326_v25  ;;  %v3077_v40 = vld [vmem:[%s4477_s3] sm:$0xff]   ;;  %v289_v42 = vmul.f32 %v3240_v18, %v250_v38  ;;  %v290_v43 = vmul.f32 %v3240_v18, %v251_v39  ;;  %v305_v47 = vadd.f32 %v3245_v19, %v266_v41 }
  0x18   : > { %457 = vst [vmem:[#allocation2 + $0xc8] sm:$0xff] %v3145_v2  ;;  %458 = vst [vmem:[#allocation2 + $0xd0] sm:$0x3] %v3145_v2  ;;  %v620_v27 = vrot.slane %v618_v24, 1  ;;  %v391_v29 = vmul.f32 0.2, %v327_v26  ;;  %v304_v45 = vadd.f32 %v3245_v19, %v265_v37 }
  0x19   : > { %459 = vst [vmem:[#allocation2 + $0xd8] sm:$0xff] %v3145_v2  ;;  %460 = vst [vmem:[#allocation2 + $0xe0] sm:$0xff] %v3145_v2  ;;  %2524 = vmatpush3.bf16.msra.mxu0 %v3069_v8  ;;  %3048 = vmatpush3.bf16.msra.mxu1 %v3069_v8  ;;  %v422_v33 = vsel %vm358_vm1, %v326_v25, %v390_v28  ;;  %v3078_v44 = vld [vmem:[%s4477_s3 + $0xf8] sm:$0xff]   ;;  %v328_v48 = vadd.f32 %v3245_v19, %v289_v42  ;;  %vm337_vm4 = vcmp.ge.f32.partialorder %v305_v47, 0.0  ;;  %v228_v53 = vld [vmem:[%s3225_s16 + $0x10] sm:$0xff] }
  0x1a   : > { %461 = vst [vmem:[#allocation2 + $0xe8] sm:$0x3] %v3145_v2  ;;  %462 = vst [vmem:[#allocation2 + $0xf0] sm:$0xff] %v3145_v2  ;;  %2525 = vmatprep.subr.bf16.mxu0 %v3070_v9  ;;  %3041 = vmatprep.subr.bf16.mxu1 %v3070_v9  ;;  %v621_v31 = vsel %vm609_vm0, %v615_v13, %v620_v27  ;;  %v423_v34 = vsel %vm359_vm2, %v327_v26, %v391_v29  ;;  %v3081_v46 = vld [vmem:[%s4477_s3 + $0x178] sm:$0xff]   ;;  %vm336_vm3 = vcmp.ge.f32.partialorder %v304_v45, 0.0  ;;  %v252_v3 = vld [vmem:[%s3225_s16 + $0xd0] sm:$0xff] }
  0x1b   : > { %463 = vst [vmem:[#allocation2 + $0xf8] sm:$0xff] %v3145_v2  ;;  %464 = vst [vmem:[#allocation2 + $0x100] sm:$0x3] %v3145_v2  ;;  %1568 = vmatprep.mubr.bf16.mxu0 %v621_v31  ;;  %v329_v49 = vadd.f32 %v3245_v19, %v290_v43  ;;  %v3083_v50 = vld [vmem:[%s4477_s3 + $0x138] sm:$0xff]   ;;  %v368_v51 = vmul.f32 0.2, %v304_v45  ;;  %v267_v57 = vmul.f32 %v3240_v18, %v228_v53 }
  0x1c   : > { %465 = vst [vmem:[#allocation2 + $0x108] sm:$0xff] %v3145_v2  ;;  %466 = vst [vmem:[#allocation2 + $0x110] sm:$0xff] %v3145_v2  ;;  %v369_v52 = vmul.f32 0.2, %v305_v47  ;;  %vm360_vm5 = vcmp.ge.f32.partialorder %v328_v48, 0.0  ;;  %v253_v4 = vld [vmem:[%s3225_s16 + $0xd8] sm:$0xff]  ;;  %v291_v8 = vmul.f32 %v3240_v18, %v252_v3 }
  0x1d   : > { %467 = vst [vmem:[#allocation2 + $0x118] sm:$0x3] %v3145_v2  ;;  %468 = vst [vmem:[#allocation2 + $0x120] sm:$0xff] %v3145_v2  ;;  %2526 = vmatpush3.bf16.msra.mxu0 %v3071_v10  ;;  %3049 = vmatpush3.bf16.msra.mxu1 %v3071_v10  ;;  %vm361_vm6 = vcmp.ge.f32.partialorder %v329_v49, 0.0  ;;  %v400_v54 = vsel %vm336_vm3, %v304_v45, %v368_v51  ;;  %v392_v55 = vmul.f32 0.2, %v328_v48 }
  0x1e   : > { %469 = vst [vmem:[#allocation2 + $0x128] sm:$0xff] %v3145_v2  ;;  %470 = vst [vmem:[#allocation2 + $0x130] sm:$0x3] %v3145_v2  ;;  %2527 = vmatprep.subr.bf16.mxu0 %v3072_v11  ;;  %3042 = vmatprep.subr.bf16.mxu1 %v3072_v11  ;;  %v393_v56 = vmul.f32 0.2, %v329_v49  ;;  %v401_v61 = vsel %vm337_vm4, %v305_v47, %v369_v52  ;;  %v306_v7 = vadd.f32 %v3245_v19, %v267_v57  ;;  %v3089_v13 = vld [vmem:[%s4477_s3 + $0x170] sm:$0xff]  }
  0x1f   : > { %471 = vst [vmem:[#allocation2 + $0x138] sm:$0xff] %v3145_v2  ;;  %472 = vst [vmem:[#allocation2 + $0x140] sm:$0xff] %v3145_v2  ;;  %v424_v0 = vsel %vm360_vm5, %v328_v48, %v392_v55  ;;  %v292_v9 = vmul.f32 %v3240_v18, %v253_v4  ;;  %v330_v16 = vadd.f32 %v3245_v19, %v291_v8  ;;  %v3080_v27 = vld [vmem:[%s4477_s3 + $0xf0] sm:$0xff]   ;;  %v3084_v52 = vld [vmem:[%s4477_s3 + $0xe8] sm:$0xff]   ;;  %vm850_vm4 = vcmask 1046528  }
  0x20   : > { %473 = vst [vmem:[#allocation2 + $0x148] sm:$0x3] %v3145_v2  ;;  %474 = vst [vmem:[#allocation2 + $0x150] sm:$0xff] %v3145_v2  ;;  %v425_v1 = vsel %vm361_vm6, %v329_v49, %v393_v56  ;;  %vm338_vm7 = vcmp.ge.f32.partialorder %v306_v7, 0.0  ;;  %v370_v15 = vmul.f32 0.2, %v306_v7 }
  0x21   : > { %475 = vst [vmem:[#allocation2 + $0x158] sm:$0xff] %v3145_v2  ;;  %476 = vst [vmem:[#allocation2 + $0x160] sm:$0x3] %v3145_v2  ;;  %2528 = vmatpush3.bf16.msra.mxu0 %v3073_v20  ;;  %3050 = vmatpush3.bf16.msra.mxu1 %v3073_v20  ;;  %v331_v22 = vadd.f32 %v3245_v19, %v292_v9  ;;  %vm362_vm9 = vcmp.ge.f32.partialorder %v330_v16, 0.0  ;;  %v394_v29 = vmul.f32 0.2, %v330_v16 }
  0x22   : > { %477 = vst [vmem:[#allocation2 + $0x168] sm:$0xff] %v3145_v2  ;;  %478 = vst [vmem:[#allocation2 + $0x170] sm:$0xff] %v3145_v2  ;;  %2529 = vmatprep.subr.bf16.mxu0 %v3074_v23  ;;  %3043 = vmatprep.subr.bf16.mxu1 %v3074_v23  ;;  %v3079_v23 = vld [vmem:[%s4477_s3 + $0xb8] sm:$0xff]   ;;  %v402_v25 = vsel %vm338_vm7, %v306_v7, %v370_v15  ;;  %v3082_v45 = vld [vmem:[%s4477_s3 + $0xb0] sm:$0xff]  }
  0x23   : > { %479 = vst [vmem:[#allocation2 + $0x178] sm:$0x3] %v3145_v2  ;;  %480 = vst [vmem:[#allocation2 + $0x180] sm:$0xff] %v3145_v2  ;;  %vm363_vm10 = vcmp.ge.f32.partialorder %v331_v22, 0.0  ;;  %v230_v55 = vld [vmem:[%s3225_s16 + $0x20] sm:$0xff]  ;;  %v231_v56 = vld [vmem:[%s3225_s16 + $0x28] sm:$0xff] }
  0x24   : > { %481 = vst [vmem:[#allocation2 + $0x188] sm:$0xff] %v3145_v2  ;;  %482 = vst [vmem:[#allocation2 + $0x190] sm:$0x3] %v3145_v2  ;;  %v254_v57 = vld [vmem:[%s3225_s16 + $0xe0] sm:$0xff] }
  0x25   : > { %485 = vst [vmem:[#allocation2 + $0x1a8] sm:$0x3] %v3145_v2  ;;  %509 = vst [vmem:[#allocation2 + $0x121] sm:$0xff] %v422_v33  ;;  %2530 = vmatpush3.bf16.msra.mxu0 %v3075_v30  ;;  %3051 = vmatpush3.bf16.msra.mxu1 %v3075_v30  ;;  %v229_v2 = vld [vmem:[%s3225_s16 + $0x18] sm:$0xff]  ;;  %v395_v30 = vmul.f32 0.2, %v331_v22  ;;  %v293_v3 = vmul.f32 %v3240_v18, %v254_v57 }
  0x26   : > { %510 = vst [vmem:[#allocation2 + $0x129] sm:$0xff] %v423_v34  ;;  %2531 = vmatprep.subr.bf16.mxu0 %v3076_v32  ;;  %3044 = vmatprep.subr.bf16.mxu1 %v3076_v32  ;;  %487 = vst [vmem:[#allocation2 + $0x19] sm:$0xff] %v400_v54  ;;  %v268_v6 = vmul.f32 %v3240_v18, %v229_v2 }
  0x27   : > { %488 = vst [vmem:[#allocation2 + $0x21] sm:$0xff] %v401_v61  ;;  %511 = vst [vmem:[#allocation2 + $0x139] sm:$0xff] %v424_v0  ;;  %v427_v43 = vsel %vm363_vm10, %v331_v22, %v395_v30  ;;  %v269_v61 = vmul.f32 %v3240_v18, %v230_v55  ;;  %v270_v0 = vmul.f32 %v3240_v18, %v231_v56  ;;  %v3097_v30 = vld [vmem:[%s4477_s3 + $0x168] sm:$0xff]  }
  0x28   : > { %512 = vst [vmem:[#allocation2 + $0x141] sm:$0xff] %v425_v1  ;;  %v307_v14 = vadd.f32 %v3245_v19, %v268_v6  ;;  %489 = vst [vmem:[#allocation2 + $0x31] sm:$0xff] %v402_v25  ;;  %v255_v1 = vld [vmem:[%s3225_s16 + $0xe8] sm:$0xff]  ;;  %v3087_v25 = vld [vmem:[%s4477_s3 + $0xa0] sm:$0xff]  }
  0x29   : > { %2532 = vmatpush3.bf16.msra.mxu0 %v3077_v40  ;;  %3052 = vmatpush3.bf16.msra.mxu1 %v3077_v40  ;;  %v426_v40 = vsel %vm362_vm9, %v330_v16, %v394_v29  ;;  %514 = vst [vmem:[#allocation2 + $0x159] sm:$0xff] %v427_v43  ;;  %v294_v4 = vmul.f32 %v3240_v18, %v255_v1  ;;  %v3092_v1 = vld [vmem:[%s4477_s3 + $0xd0] sm:$0xff]  }
  0x2a   : > { %2629 = vmatprep.subr.bf16.mxu1 %v3078_v44  ;;  %2741 = vmatprep.subr.bf16.mxu0 %v3081_v46  ;;  %vm339_vm8 = vcmp.ge.f32.partialorder %v307_v14, 0.0  ;;  %v371_v24 = vmul.f32 0.2, %v307_v14  ;;  %513 = vst [vmem:[#allocation2 + $0x151] sm:$0xff] %v426_v40  ;;  %v3091_v44 = vld [vmem:[%s4477_s3 + $0x130] sm:$0xff]   ;;  %v308_v9 = vadd.f32 %v3245_v19, %v269_v61  ;;  %v332_v16 = vadd.f32 %v3245_v19, %v293_v3 }
  0x2b   : > { %v3093_v3 = vld [vmem:[%s4477_s3 + $0x90] sm:$0xff]  }
  0x2c   : > { %v555_v58 = vld [vmem:[#allocation2 + $0x120] sm:$0xff]  ;;  %1569 = vmatmul.mubr.bf16.vlgmr.msra.gmra.mxu0 %v3147_v5  ;;  %v403_v33 = vsel %vm339_vm8, %v307_v14, %v371_v24  ;;  %vm340_vm11 = vcmp.ge.f32.partialorder %v308_v9, 0.0  ;;  %v333_v24 = vadd.f32 %v3245_v19, %v294_v4  ;;  %vm364_vm13 = vcmp.ge.f32.partialorder %v332_v16, 0.0 }
  0x2d   : > { %v556_v59 = vld [vmem:[#allocation2 + $0x128] sm:$0xff]  ;;  %v557_v60 = vld [vmem:[#allocation2 + $0x130] sm:$0x3]  ;;  %2742 = vmatpush3.bf16.msra.mxu0 %v3083_v50  ;;  %v522_v28 = vld [vmem:[#allocation2 + $0x18] sm:$0xff]  ;;  %490 = vst [vmem:[#allocation2 + $0x39] sm:$0xff] %v403_v33 }
  0x2e   : > { %v3292_v62 = vpack.c.bf16 %v556_v59, %v555_v58  ;;  %v3294_v63 = vpack.c.bf16 %v557_v60, %v557_v60  ;;  %2743 = vmatprep.subr.bf16.mxu0 %v3089_v13  ;;  %v523_v31 = vld [vmem:[#allocation2 + $0x20] sm:$0xff]  ;;  %v524_v32 = vld [vmem:[#allocation2 + $0x28] sm:$0x3]  ;;  %v558_v37 = vld [vmem:[#allocation2 + $0x138] sm:$0xff]  ;;  %v372_v33 = vmul.f32 0.2, %v308_v9 }
  0x2f   : > { %v3324_v35 = vpack.c.bf16 %v523_v31, %v522_v28  ;;  %v3326_v36 = vpack.c.bf16 %v524_v32, %v524_v32  ;;  %v559_v38 = vld [vmem:[#allocation2 + $0x140] sm:$0xff]  ;;  %v560_v39 = vld [vmem:[#allocation2 + $0x148] sm:$0x3]  ;;  %v525_v60 = vld [vmem:[#allocation2 + $0x30] sm:$0xff]  ;;  %vm365_vm14 = vcmp.ge.f32.partialorder %v333_v24, 0.0 }
  0x30   : > { %v755_v10 = vshrl.u32 %v3292_v62, 16  ;;  %v757_v11 = vshll.u32 %v3292_v62, 16  ;;  %v762_v12 = vshll.u32 %v3294_v63, 16  ;;  %v3330_v41 = vpack.c.bf16 %v559_v38, %v558_v37  ;;  %v3088_v32 = vld [vmem:[%s4477_s3 + $0xd8] sm:$0xff]  }
  0x31   : > { %v3332_v42 = vpack.c.bf16 %v560_v39, %v560_v39  ;;  %v623_v46 = vshrl.u32 %v3324_v35, 16  ;;  %v625_v47 = vshll.u32 %v3324_v35, 16  ;;  %v630_v48 = vshll.u32 %v3326_v36, 16  ;;  %2744 = vmatpush3.bf16.msra.mxu0 %v3091_v44  ;;  %v561_v15 = vld [vmem:[#allocation2 + $0x150] sm:$0xff]  ;;  %v562_v22 = vld [vmem:[#allocation2 + $0x158] sm:$0xff] }
  0x32   : > { %v759_v20 = vrot.slane %v757_v11, 1  ;;  %v764_v21 = vrot.slane %v762_v12, 1  ;;  %v767_v49 = vshrl.u32 %v3330_v41, 16  ;;  %v769_v50 = vshll.u32 %v3330_v41, 16  ;;  %v3085_v12 = vld [vmem:[%s4477_s3 + $0xa8] sm:$0xff]   ;;  %2745 = vmatprep.subr.bf16.mxu0 %v3097_v30 }
  0x33   : > { %v774_v51 = vshll.u32 %v3332_v42, 16  ;;  %v627_v53 = vrot.slane %v625_v47, 1  ;;  %v632_v54 = vrot.slane %v630_v48, 1  ;;  %v3388_v29 = vpack.c.bf16 %v562_v22, %v561_v15  ;;  %v3095_v30 = vld [vmem:[%s4477_s3 + $0x88] sm:$0xff]  }
  0x34   : > { %v760_v26 = vor.u32 %v759_v20, %v755_v10  ;;  %v771_v58 = vrot.slane %v769_v50, 1  ;;  %v526_v7 = vld [vmem:[#allocation2 + $0x38] sm:$0xff]  ;;  %v527_v8 = vld [vmem:[#allocation2 + $0x40] sm:$0x3]  ;;  %v309_v10 = vadd.f32 %v3245_v19, %v270_v0  ;;  %v397_v50 = vmul.f32 0.2, %v333_v24 }
  0x35   : > { %v776_v59 = vrot.slane %v774_v51, 1  ;;  %v628_v2 = vor.u32 %v627_v53, %v623_v46  ;;  %v3367_v13 = vpack.c.bf16 %v526_v7, %v525_v60  ;;  %v3369_v14 = vpack.c.bf16 %v527_v8, %v527_v8  ;;  %v3099_v51 = vld [vmem:[%s4477_s3 + $0x128] sm:$0xff]   ;;  %v232_v53 = vld [vmem:[%s3225_s16 + $0x30] sm:$0xff] }
  0x36   : > { %v3322_v34 = vsel %vm609_vm0, %v760_v26, %v764_v21  ;;  %v772_v6 = vor.u32 %v771_v58, %v767_v49  ;;  %v3086_v21 = vld [vmem:[%s4477_s3 + $0xe0] sm:$0xff]   ;;  %vm341_vm12 = vcmp.ge.f32.partialorder %v309_v10, 0.0  ;;  %v373_v37 = vmul.f32 0.2, %v309_v10  ;;  %v233_v58 = vld [vmem:[%s3225_s16 + $0x38] sm:$0xff]  ;;  %2746 = vmatpush3.bf16.msra.mxu0 %v3099_v51  ;;  %v235_v7 = vld [vmem:[%s3225_s16 + $0x48] sm:$0xff] }
  0x37   : > { %1664 = vmatprep.mubr.bf16.mxu1 %v3322_v34  ;;  %v3362_v11 = vsel %vm609_vm0, %v628_v2, %v632_v54  ;;  %v635_v26 = vshrl.u32 %v3367_v13, 16  ;;  %v642_v28 = vshll.u32 %v3369_v14, 16  ;;  %v779_v40 = vshrl.u32 %v3388_v29, 16  ;;  %v234_v2 = vld [vmem:[%s3225_s16 + $0x40] sm:$0xff] }
  0x38   : > { %1665 = vmatmul.mubr.bf16.vlgmr.msra.gmra.mxu1 %v3292_v62  ;;  %1576 = vmatprep.mubr.bf16.mxu0 %v3362_v11  ;;  %v3374_v20 = vsel %vm609_vm0, %v772_v6, %v776_v59  ;;  %v781_v43 = vshll.u32 %v3388_v29, 16  ;;  %v405_v46 = vsel %vm341_vm12, %v309_v10, %v373_v37  ;;  %v396_v49 = vmul.f32 0.2, %v332_v16  ;;  %v3090_v59 = vld [vmem:[%s4477_s3 + $0x98] sm:$0xff]  }
  0x39   : > { %2630 = vmatpush3.bf16.msra.mxu1 %v3079_v23  ;;  %v563_v23 = vld [vmem:[#allocation2 + $0x160] sm:$0x3]  ;;  %1672 = vmatprep.mubr.bf16.mxu1 %v3374_v20  ;;  %v644_v39 = vrot.slane %v642_v28, 1  ;;  %492 = vst [vmem:[#allocation2 + $0x51] sm:$0xff] %v405_v46  ;;  %v429_v57 = vsel %vm365_vm14, %v333_v24, %v397_v50  ;;  %v271_v60 = vmul.f32 %v3240_v18, %v232_v53  ;;  %v236_v28 = vld [vmem:[%s3225_s16 + $0x50] sm:$0xff]  ;;  %v237_v46 = vld [vmem:[%s3225_s16 + $0x58] sm:$0xff] }
  0x3a   : > { %2631 = vmatprep.subr.bf16.mxu1 %v3080_v27  ;;  %1577 = vmatmul.mubr.bf16.gmra.mxu0 %v3324_v35  ;;  %v637_v27 = vshll.u32 %v3367_v13, 16  ;;  %v3394_v31 = vpack.c.bf16 %v563_v23, %v563_v23  ;;  %v783_v48 = vrot.slane %v781_v43, 1  ;;  %v428_v56 = vsel %vm364_vm13, %v332_v16, %v396_v49  ;;  %516 = vst [vmem:[#allocation2 + $0x171] sm:$0xff] %v429_v57  ;;  %v3096_v49 = vld [vmem:[%s4477_s3 + $0xc0] sm:$0xff]  }
  0x3b   : > { %515 = vst [vmem:[#allocation2 + $0x169] sm:$0xff] %v428_v56  ;;  %v272_v61 = vmul.f32 %v3240_v18, %v233_v58  ;;  %v310_v4 = vadd.f32 %v3245_v19, %v271_v60  ;;  %v273_v8 = vmul.f32 %v3240_v18, %v234_v2  ;;  %v274_v10 = vmul.f32 %v3240_v18, %v235_v7 }
  0x3c   : > { %v639_v38 = vrot.slane %v637_v27, 1  ;;  %v786_v44 = vshll.u32 %v3394_v31, 16  ;;  %v784_v55 = vor.u32 %v783_v48, %v779_v40  ;;  %v3103_v27 = vld [vmem:[%s4477_s3 + $0x120] sm:$0xff]   ;;  %v275_v37 = vmul.f32 %v3240_v18, %v236_v28  ;;  %v241_v28 = vld [vmem:[%s3225_s16 + $0x78] sm:$0xff] }
  0x3d   : > { %2632 = vmatpush3.bf16.msra.mxu1 %v3082_v45  ;;  %v404_v45 = vsel %vm340_vm11, %v308_v9, %v372_v33  ;;  %v311_v6 = vadd.f32 %v3245_v19, %v272_v61  ;;  %v3094_v9 = vld [vmem:[%s4477_s3 + $0xc8] sm:$0xff]   ;;  %vm342_vm15 = vcmp.ge.f32.partialorder %v310_v4, 0.0  ;;  %v312_v22 = vadd.f32 %v3245_v19, %v273_v8 }
  0x3e   : > { %2633 = vmatprep.subr.bf16.mxu1 %v3084_v52  ;;  %v640_v47 = vor.u32 %v639_v38, %v635_v26  ;;  %491 = vst [vmem:[#allocation2 + $0x49] sm:$0xff] %v404_v45  ;;  %v788_v52 = vrot.slane %v786_v44, 1  ;;  %v276_v61 = vmul.f32 %v3240_v18, %v237_v46  ;;  %v3486_v8 = vrot.slane %v3147_v5, 1 }
  0x3f   : > { %vm343_vm1 = vcmp.ge.f32.partialorder %v311_v6, 0.0  ;;  %v375_v26 = vmul.f32 0.2, %v311_v6  ;;  %vm344_vm2 = vcmp.ge.f32.partialorder %v312_v22, 0.0  ;;  %v376_v33 = vmul.f32 0.2, %v312_v22 }
  0x40   : > { %1673 = vmatmul.mubr.bf16.gmra.mxu1 %v3330_v41  ;;  %v3409_v54 = vsel %vm609_vm0, %v640_v47, %v644_v39  ;;  %v3420_v0 = vsel %vm609_vm0, %v784_v55, %v788_v52 }
  0x41   : > { %2634 = vmatpush3.bf16.msra.mxu1 %v3085_v12  ;;  %1584 = vmatprep.mubr.bf16.mxu0 %v3409_v54  ;;  %v3102_v12 = vld [vmem:[%s4477_s3 + $0x160] sm:$0xff]   ;;  %v566_v47 = vld [vmem:[#allocation2 + $0x178] sm:$0x3]  ;;  %v407_v50 = vsel %vm343_vm1, %v311_v6, %v375_v26  ;;  %v408_v56 = vsel %vm344_vm2, %v312_v22, %v376_v33  ;;  %v239_v22 = vld [vmem:[%s3225_s16 + $0x68] sm:$0xff] }
  0x42   : > { %2635 = vmatprep.subr.bf16.mxu1 %v3086_v21  ;;  %1585 = vmatmul.mubr.bf16.gmra.mxu0 %v3367_v13  ;;  %v530_v21 = vld [vmem:[#allocation2 + $0x58] sm:$0x3]  ;;  %v564_v43 = vld [vmem:[#allocation2 + $0x168] sm:$0xff]  ;;  %v565_v44 = vld [vmem:[#allocation2 + $0x170] sm:$0xff]  ;;  %v3468_v55 = vpack.c.bf16 %v566_v47, %v566_v47  ;;  %494 = vst [vmem:[#allocation2 + $0x69] sm:$0xff] %v407_v50 }
  0x43   : > { %1680 = vmatprep.mubr.bf16.mxu1 %v3420_v0  ;;  %v3446_v24 = vpack.c.bf16 %v530_v21, %v530_v21  ;;  %2747 = vmatprep.subr.bf16.mxu0 %v3102_v12  ;;  %v3462_v48 = vpack.c.bf16 %v565_v44, %v564_v43  ;;  %495 = vst [vmem:[#allocation2 + $0x79] sm:$0xff] %v408_v56  ;;  %v3106_v6 = vld [vmem:[%s4477_s3 + $0x158] sm:$0xff]   ;;  %v238_v12 = vld [vmem:[%s3225_s16 + $0x60] sm:$0xff] }
  0x44   : > { %2748 = vmatpush3.bf16.msra.mxu0 %v3103_v27  ;;  %v798_v2 = vshll.u32 %v3468_v55, 16  ;;  %v277_v27 = vmul.f32 %v3240_v18, %v238_v12 }
  0x45   : > { %2636 = vmatpush3.bf16.msra.mxu1 %v3087_v25  ;;  %v528_v15 = vld [vmem:[#allocation2 + $0x48] sm:$0xff]  ;;  %v529_v16 = vld [vmem:[#allocation2 + $0x50] sm:$0xff]  ;;  %v374_v25 = vmul.f32 0.2, %v310_v4  ;;  %v654_v40 = vshll.u32 %v3446_v24, 16  ;;  %v791_v57 = vshrl.u32 %v3462_v48, 16  ;;  %2749 = vmatprep.subr.bf16.mxu0 %v3106_v6 }
  0x46   : > { %2637 = vmatprep.subr.bf16.mxu1 %v3088_v32  ;;  %v3444_v23 = vpack.c.bf16 %v529_v16, %v528_v15  ;;  %v313_v32 = vadd.f32 %v3245_v19, %v274_v10  ;;  %v793_v58 = vshll.u32 %v3462_v48, 16  ;;  %v3107_v10 = vld [vmem:[%s4477_s3 + $0x118] sm:$0xff]   ;;  %v800_v16 = vrot.slane %v798_v2, 1 }
  0x47   : > { %v406_v45 = vsel %vm342_vm15, %v310_v4, %v374_v25  ;;  %v656_v53 = vrot.slane %v654_v40, 1  ;;  %v314_v4 = vadd.f32 %v3245_v19, %v275_v37  ;;  %v240_v25 = vld [vmem:[%s3225_s16 + $0x70] sm:$0xff]  ;;  %v278_v37 = vmul.f32 %v3240_v18, %v239_v22 }
  0x48   : > { %1681 = vmatmul.mubr.bf16.gmra.mxu1 %v3388_v29  ;;  %v647_v38 = vshrl.u32 %v3444_v23, 16  ;;  %v649_v39 = vshll.u32 %v3444_v23, 16  ;;  %493 = vst [vmem:[#allocation2 + $0x61] sm:$0xff] %v406_v45  ;;  %vm345_vm3 = vcmp.ge.f32.partialorder %v313_v32, 0.0  ;;  %v377_v51 = vmul.f32 0.2, %v313_v32  ;;  %2750 = vmatpush3.bf16.msra.mxu0 %v3107_v10 }
  0x49   : > { %2638 = vmatpush3.bf16.msra.mxu1 %v3090_v59  ;;  %v3098_v59 = vld [vmem:[%s4477_s3 + $0x80] sm:$0xff]   ;;  %v795_v7 = vrot.slane %v793_v58, 1  ;;  %vm346_vm5 = vcmp.ge.f32.partialorder %v314_v4, 0.0  ;;  %v378_v21 = vmul.f32 0.2, %v314_v4  ;;  %v316_v46 = vadd.f32 %v3245_v19, %v277_v27 }
  0x4a   : > { %2639 = vmatprep.subr.bf16.mxu1 %v3092_v1  ;;  %v651_v52 = vrot.slane %v649_v39, 1  ;;  %v409_v60 = vsel %vm345_vm3, %v313_v32, %v377_v51  ;;  %v3108_v39 = vld [vmem:[%s4477_s3 + $0x150] sm:$0xff]   ;;  %v534_v50 = vld [vmem:[#allocation2 + $0x78] sm:$0xff]  ;;  %v855_v51 = vrot.slane %v3326_v36, 1  ;;  %v280_v58 = vmul.f32 %v3240_v18, %v241_v28 }
  0x4b   : > { %496 = vst [vmem:[#allocation2 + $0x81] sm:$0xff] %v409_v60  ;;  %v796_v5 = vor.u32 %v795_v7, %v791_v57  ;;  %v410_v33 = vsel %vm346_vm5, %v314_v4, %v378_v21  ;;  %v533_v44 = vld [vmem:[#allocation2 + $0x70] sm:$0x3]  ;;  %vm348_vm7 = vcmp.ge.f32.partialorder %v316_v46, 0.0  ;;  %v380_v57 = vmul.f32 0.2, %v316_v46  ;;  %2751 = vmatprep.subr.bf16.mxu0 %v3108_v39 }
  0x4c   : > { %v652_v1 = vor.u32 %v651_v52, %v647_v38  ;;  %v279_v38 = vmul.f32 %v3240_v18, %v240_v25  ;;  %497 = vst [vmem:[#allocation2 + $0x91] sm:$0xff] %v410_v33  ;;  %v317_v52 = vadd.f32 %v3245_v19, %v278_v37  ;;  %v3101_v21 = vld [vmem:[%s4477_s3 + $0x1b8] sm:$0xff]   ;;  %v3112_v39 = vld [vmem:[%s4477_s3 + $0x148] sm:$0xff]  }
  0x4d   : > { %2640 = vmatpush3.bf16.msra.mxu1 %v3093_v3  ;;  %v3100_v3 = vld [vmem:[%s4477_s3 + $0x1f8] sm:$0xff]   ;;  %v3509_v40 = vsel %vm609_vm0, %v796_v5, %v800_v16  ;;  %v412_v7 = vsel %vm348_vm7, %v316_v46, %v380_v57  ;;  %v319_v5 = vadd.f32 %v3245_v19, %v280_v58  ;;  %v3104_v46 = vld [vmem:[%s4477_s3 + $0x1f0] sm:$0xff]  }
  0x4e   : > { %2641 = vmatprep.subr.bf16.mxu1 %v3094_v9  ;;  %v315_v9 = vadd.f32 %v3245_v19, %v276_v61  ;;  %v3494_v15 = vsel %vm609_vm0, %v652_v1, %v656_v53  ;;  %1688 = vmatprep.mubr.bf16.mxu1 %v3509_v40  ;;  %vm349_vm8 = vcmp.ge.f32.partialorder %v317_v52, 0.0  ;;  %v381_v6 = vmul.f32 0.2, %v317_v52  ;;  %499 = vst [vmem:[#allocation2 + $0xa9] sm:$0xff] %v412_v7 }
  0x4f   : > { %1592 = vmatprep.mubr.bf16.mxu0 %v3494_v15  ;;  %v531_v32 = vld [vmem:[#allocation2 + $0x60] sm:$0xff]  ;;  %v532_v43 = vld [vmem:[#allocation2 + $0x68] sm:$0xff]  ;;  %vm351_vm10 = vcmp.ge.f32.partialorder %v319_v5, 0.0  ;;  %v383_v57 = vmul.f32 0.2, %v319_v5 }
  0x50   : > { %vm347_vm6 = vcmp.ge.f32.partialorder %v315_v9, 0.0  ;;  %v379_v26 = vmul.f32 0.2, %v315_v9  ;;  %1593 = vmatmul.mubr.bf16.gmra.mxu0 %v3444_v23  ;;  %v3515_v47 = vpack.c.bf16 %v532_v43, %v531_v32  ;;  %1689 = vmatmul.mubr.bf16.gmra.mxu1 %v3462_v48  ;;  %v413_v25 = vsel %vm349_vm8, %v317_v52, %v381_v6 }
  0x51   : > { %2642 = vmatpush3.bf16.msra.mxu1 %v3095_v30  ;;  %v852_v30 = vrot.slane %v3235_v17, 1  ;;  %v854_v17 = vrot.slane %v3324_v35, 1  ;;  %1729 = vmatprep.mubr.bf16.mxu1 %v3324_v35  ;;  %500 = vst [vmem:[#allocation2 + $0xb1] sm:$0xff] %v413_v25 }
  0x52   : > { %2643 = vmatprep.subr.bf16.mxu1 %v3096_v49  ;;  %v411_v45 = vsel %vm347_vm6, %v315_v9, %v379_v26  ;;  %v3517_v49 = vpack.c.bf16 %v533_v44, %v533_v44  ;;  %v535_v53 = vld [vmem:[#allocation2 + $0x80] sm:$0xff]  ;;  %v536_v56 = vld [vmem:[#allocation2 + $0x88] sm:$0x3]  ;;  %v659_v60 = vshrl.u32 %v3515_v47, 16  ;;  %v661_v61 = vshll.u32 %v3515_v47, 16 }
  0x53   : > { %498 = vst [vmem:[#allocation2 + $0x99] sm:$0xff] %v411_v45  ;;  %v3528_v2 = vpack.c.bf16 %v535_v53, %v534_v50  ;;  %v3533_v4 = vpack.c.bf16 %v536_v56, %v536_v56  ;;  %v242_v26 = vld [vmem:[%s3225_s16 + $0x80] sm:$0xff]  ;;  %v853_v28 = vsel %vm850_vm4, %v3486_v8, %v852_v30  ;;  %v537_v33 = vld [vmem:[#allocation2 + $0x90] sm:$0xff] }
  0x54   : > { %v666_v1 = vshll.u32 %v3517_v49, 16  ;;  %v663_v9 = vrot.slane %v661_v61, 1  ;;  %v281_v8 = vmul.f32 %v3240_v18, %v242_v26  ;;  %v3105_v56 = vld [vmem:[%s4477_s3 + $0x1b0] sm:$0xff]   ;;  %v3113_v61 = vld [vmem:[%s4477_s3 + $0x108] sm:$0xff]  }
  0x55   : > { %2644 = vmatpush3.bf16.msra.mxu1 %v3098_v59  ;;  %v318_v59 = vadd.f32 %v3245_v19, %v279_v38  ;;  %v671_v12 = vshrl.u32 %v3528_v2, 16  ;;  %v673_v16 = vshll.u32 %v3528_v2, 16  ;;  %v678_v22 = vshll.u32 %v3533_v4, 16  ;;  %v243_v38 = vld [vmem:[%s3225_s16 + $0x88] sm:$0xff] }
  0x56   : > { %2853 = vmatprep.subr.bf16.mxu1 %v3100_v3  ;;  %v3110_v3 = vld [vmem:[%s4477_s3 + $0x110] sm:$0xff]   ;;  %v668_v10 = vrot.slane %v666_v1, 1  ;;  %v664_v27 = vor.u32 %v663_v9, %v659_v60  ;;  %v282_v60 = vmul.f32 %v3240_v18, %v243_v38  ;;  %v3111_v38 = vld [vmem:[%s4477_s3 + $0x1a8] sm:$0xff]  }
  0x57   : > { %2752 = vmatpush3.bf16.msra.mxu0 %v3110_v3  ;;  %vm350_vm9 = vcmp.ge.f32.partialorder %v318_v59, 0.0  ;;  %v675_v32 = vrot.slane %v673_v16, 1  ;;  %v382_v37 = vmul.f32 0.2, %v318_v59  ;;  %v680_v43 = vrot.slane %v678_v22, 1  ;;  %v244_v1 = vld [vmem:[%s3225_s16 + $0x90] sm:$0xff] }
  0x58   : > { %v3554_v30 = vsel %vm609_vm0, %v664_v27, %v668_v10  ;;  %2753 = vmatprep.subr.bf16.mxu0 %v3112_v39  ;;  %1730 = vmatmul.mubr.bf16.vlgmr.msra.gmra.mxu1 %v853_v28  ;;  %v857_v10 = vrot.slane %v3367_v13, 1  ;;  %v415_v16 = vsel %vm351_vm10, %v319_v5, %v383_v57  ;;  %v320_v22 = vadd.f32 %v3245_v19, %v281_v8 }
  0x59   : > { %v676_v50 = vor.u32 %v675_v32, %v671_v12  ;;  %1600 = vmatprep.mubr.bf16.mxu0 %v3554_v30  ;;  %v414_v58 = vsel %vm350_vm9, %v318_v59, %v382_v37  ;;  %2854 = vmatpush3.bf16.msra.mxu1 %v3101_v21  ;;  %v245_v59 = vld [vmem:[%s3225_s16 + $0x98] sm:$0xff]  ;;  %v540_v12 = vld [vmem:[#allocation2 + $0xa8] sm:$0xff]  ;;  %v321_v25 = vadd.f32 %v3245_v19, %v282_v60  ;;  %v858_v28 = vrot.slane %v3369_v14, 1 }
  0x5a   : > { %v538_v44 = vld [vmem:[#allocation2 + $0x98] sm:$0xff]  ;;  %v539_v45 = vld [vmem:[#allocation2 + $0xa0] sm:$0x3]  ;;  %1601 = vmatmul.mubr.bf16.gmra.mxu0 %v3515_v47  ;;  %501 = vst [vmem:[#allocation2 + $0xc1] sm:$0xff] %v414_v58  ;;  %1737 = vmatprep.mubr.bf16.mxu1 %v3367_v13  ;;  %v3109_v21 = vld [vmem:[%s4477_s3 + $0x1e8] sm:$0xff]   ;;  %v283_v32 = vmul.f32 %v3240_v18, %v244_v1  ;;  %v3594_v5 = vsel %vm850_vm4, %v854_v17, %v855_v51  ;;  %vm352_vm11 = vcmp.ge.f32.partialorder %v320_v22, 0.0 }
  0x5b   : > { %v3556_v52 = vpack.c.bf16 %v538_v44, %v537_v33  ;;  %v3558_v53 = vpack.c.bf16 %v539_v45, %v539_v45  ;;  %v3572_v3 = vsel %vm609_vm0, %v676_v50, %v680_v43  ;;  %2855 = vmatprep.subr.bf16.mxu1 %v3104_v46  ;;  %502 = vst [vmem:[#allocation2 + $0xc9] sm:$0xff] %v415_v16  ;;  %v541_v33 = vld [vmem:[#allocation2 + $0xb0] sm:$0xff]  ;;  %v542_v37 = vld [vmem:[#allocation2 + $0xb8] sm:$0x3]  ;;  %vm353_vm12 = vcmp.ge.f32.partialorder %v321_v25, 0.0  ;;  %v3114_v17 = vld [vmem:[%s4477_s3 + $0x1e0] sm:$0xff]  }
  0x5c   : > { %1608 = vmatprep.mubr.bf16.mxu0 %v3572_v3  ;;  %2754 = vmatpush3.bf16.msra.mxu0 %v3113_v61  ;;  %v284_v39 = vmul.f32 %v3240_v18, %v245_v59  ;;  %v3600_v44 = vpack.c.bf16 %v541_v33, %v540_v12  ;;  %v3602_v36 = vpack.c.bf16 %v542_v37, %v542_v37  ;;  %v384_v35 = vmul.f32 0.2, %v320_v22  ;;  %v246_v51 = vld [vmem:[%s3225_s16 + $0xa0] sm:$0xff]  ;;  %v247_v58 = vld [vmem:[%s3225_s16 + $0xa8] sm:$0xff] }
  0x5d   : > { %v683_v6 = vshrl.u32 %v3556_v52, 16  ;;  %v685_v7 = vshll.u32 %v3556_v52, 16  ;;  %v690_v9 = vshll.u32 %v3558_v53, 16  ;;  %2856 = vmatpush3.bf16.msra.mxu1 %v3105_v56  ;;  %v385_v45 = vmul.f32 0.2, %v321_v25  ;;  %v3117_v12 = vld [vmem:[%s4477_s3 + $0x100] sm:$0xff]  }
  0x5e   : > { %2857 = vmatprep.subr.bf16.mxu1 %v3109_v21  ;;  %v322_v46 = vadd.f32 %v3245_v19, %v283_v32  ;;  %v323_v8 = vadd.f32 %v3245_v19, %v284_v39  ;;  %v695_v50 = vshrl.u32 %v3600_v44, 16  ;;  %v697_v56 = vshll.u32 %v3600_v44, 16  ;;  %v3115_v19 = vld [vmem:[%s4477_s3 + $0x1a0] sm:$0xff]   ;;  %v3118_v32 = vld [vmem:[%s4477_s3 + $0x1d8] sm:$0xff]  }
  0x5f   : > { %v687_v26 = vrot.slane %v685_v7, 1  ;;  %v692_v27 = vrot.slane %v690_v9, 1  ;;  %v702_v57 = vshll.u32 %v3602_v36, 16  ;;  %v416_v61 = vsel %vm352_vm11, %v320_v22, %v384_v35  ;;  %v3651_v35 = vld [vmem:[%s4476_s2] ss:$0 sm:$0xff] }
  0x60   : > { %1738 = vmatmul.mubr.bf16.gmra.mxu1 %v3594_v5  ;;  %v417_v1 = vsel %vm353_vm12, %v321_v25, %v385_v45  ;;  %vm354_vm13 = vcmp.ge.f32.partialorder %v322_v46, 0.0  ;;  %vm355_vm14 = vcmp.ge.f32.partialorder %v323_v8, 0.0  ;;  %v699_v7 = vrot.slane %v697_v56, 1  ;;  %503 = vst [vmem:[#allocation2 + $0xd9] sm:$0xff] %v416_v61  ;;  %v3635_v25 = vld [vmem:[%s4475_s1] ss:$0 sm:$0xff] }
  0x61   : > { %v688_v43 = vor.u32 %v687_v26, %v683_v6  ;;  %v543_v60 = vld [vmem:[#allocation2 + $0xc0] sm:$0xff]  ;;  %1745 = vmatprep.mubr.bf16.mxu1 %v3444_v23  ;;  %504 = vst [vmem:[#allocation2 + $0xe1] sm:$0xff] %v417_v1  ;;  %v386_v9 = vmul.f32 0.2, %v322_v46  ;;  %v387_v59 = vmul.f32 0.2, %v323_v8  ;;  %2858 = vmatpush3.bf16.msra.mxu1 %v3111_v38  ;;  %v285_v26 = vmul.f32 %v3635_v25, %v246_v51 }
  0x62   : > { %v3116_v6 = vld [vmem:[%s4477_s3 + $0x140] sm:$0xff]   ;;  %1609 = vmatmul.mubr.bf16.gmra.mxu0 %v3528_v2  ;;  %v704_v16 = vrot.slane %v702_v57, 1  ;;  %v544_v21 = vld [vmem:[#allocation2 + $0xc8] sm:$0xff]  ;;  %v545_v22 = vld [vmem:[#allocation2 + $0xd0] sm:$0x3]  ;;  %v700_v33 = vor.u32 %v699_v7, %v695_v50  ;;  %2859 = vmatprep.subr.bf16.mxu1 %v3114_v17  ;;  %v3663_v17 = vsel %vm850_vm4, %v857_v10, %v858_v28 }
  0x63   : > { %v3611_v18 = vsel %vm609_vm0, %v688_v43, %v692_v27  ;;  %v286_v27 = vmul.f32 %v3635_v25, %v247_v58  ;;  %v3642_v37 = vpack.c.bf16 %v544_v21, %v543_v60  ;;  %v3644_v39 = vpack.c.bf16 %v545_v22, %v545_v22  ;;  %2755 = vmatprep.subr.bf16.mxu0 %v3116_v6  ;;  %v3119_v50 = vld [vmem:[%s4477_s3 + $0x198] sm:$0xff]   ;;  %v3122_v22 = vld [vmem:[%s4477_s3 + $0x190] sm:$0xff]  }
  0x64   : > { %1616 = vmatprep.mubr.bf16.mxu0 %v3611_v18  ;;  %v418_v38 = vsel %vm354_vm13, %v322_v46, %v386_v9  ;;  %v419_v43 = vsel %vm355_vm14, %v323_v8, %v387_v59  ;;  %v324_v51 = vadd.f32 %v3651_v35, %v285_v26  ;;  %2756 = vmatpush3.bf16.msra.mxu0 %v3117_v12  ;;  %v3671_v57 = vld [vmem:[%s4477_s3 + $0x238] sm:$0xff]   ;;  %v860_v60 = vrot.slane %v3444_v23, 1  ;;  %v3121_v12 = vld [vmem:[%s4477_s3 + $0x1d0] sm:$0xff]  }
  0x65   : > { %505 = vst [vmem:[#allocation2 + $0xf1] sm:$0xff] %v418_v38  ;;  %v325_v45 = vadd.f32 %v3651_v35, %v286_v27  ;;  %v707_v46 = vshrl.u32 %v3642_v37, 16  ;;  %v709_v8 = vshll.u32 %v3642_v37, 16  ;;  %v714_v56 = vshll.u32 %v3644_v39, 16  ;;  %506 = vst [vmem:[#allocation2 + $0xf9] sm:$0xff] %v419_v43  ;;  %2860 = vmatpush3.bf16.msra.mxu1 %v3115_v19  ;;  %2989 = vmatprep.subr.bf16.mxu0 %v3671_v57  ;;  %v3124_v43 = vld [vmem:[%s4477_s3 + $0x1c8] sm:$0xff]  }
  0x66   : > { %vm356_vm15 = vcmp.ge.f32.partialorder %v324_v51, 0.0  ;;  %v388_v14 = vmul.f32 0.2, %v324_v51  ;;  %v3674_v10 = vsel %vm609_vm0, %v700_v33, %v704_v16  ;;  %2861 = vmatprep.subr.bf16.mxu1 %v3118_v32  ;;  %v861_v9 = vrot.slane %v3446_v24, 1 }
  0x67   : > { %vm357_vm1 = vcmp.ge.f32.partialorder %v325_v45, 0.0  ;;  %v389_v58 = vmul.f32 0.2, %v325_v45  ;;  %v711_v28 = vrot.slane %v709_v8, 1  ;;  %v546_v61 = vld [vmem:[#allocation2 + $0xd8] sm:$0xff]  ;;  %v716_v21 = vrot.slane %v714_v56, 1 }
  0x68   : > { %1746 = vmatmul.mubr.bf16.gmra.mxu1 %v3663_v17  ;;  %v547_v1 = vld [vmem:[#allocation2 + $0xe0] sm:$0xff]  ;;  %v548_v6 = vld [vmem:[#allocation2 + $0xe8] sm:$0x3]  ;;  %v420_v7 = vsel %vm356_vm15, %v324_v51, %v388_v14  ;;  %v3695_v33 = vsel %vm850_vm4, %v860_v60, %v861_v9  ;;  %v863_v14 = vrot.slane %v3515_v47, 1 }
  0x69   : > { %v421_v19 = vsel %vm357_vm1, %v325_v45, %v389_v58  ;;  %1753 = vmatprep.mubr.bf16.mxu1 %v3515_v47  ;;  %v3682_v59 = vpack.c.bf16 %v547_v1, %v546_v61  ;;  %507 = vst [vmem:[#allocation2 + $0x109] sm:$0xff] %v420_v7  ;;  %v712_v16 = vor.u32 %v711_v28, %v707_v46  ;;  %v3125_v8 = vld [vmem:[%s4477_s3 + $0x188] sm:$0xff]   ;;  %v864_v58 = vrot.slane %v3517_v49, 1  ;;  %v3127_v28 = vld [vmem:[%s4477_s3 + $0x1c0] sm:$0xff]  }
  0x6a   : > { %1617 = vmatmul.mubr.bf16.gmra.mxu0 %v3556_v52  ;;  %508 = vst [vmem:[#allocation2 + $0x111] sm:$0xff] %v421_v19  ;;  %2862 = vmatpush3.bf16.msra.mxu1 %v3119_v50  ;;  %v3691_v26 = vpack.c.bf16 %v548_v6, %v548_v6  ;;  %v3128_v19 = vld [vmem:[%s4477_s3 + $0x180] sm:$0xff]  }
  0x6b   : > { %1624 = vmatprep.mubr.bf16.mxu0 %v3674_v10  ;;  %v721_v24 = vshll.u32 %v3682_v59, 16  ;;  %2863 = vmatprep.subr.bf16.mxu1 %v3121_v12  ;;  %v3698_v38 = vsel %vm609_vm0, %v712_v16, %v716_v21  ;;  %v719_v51 = vshrl.u32 %v3682_v59, 16  ;;  %v3726_v9 = vsel %vm850_vm4, %v863_v14, %v864_v58  ;;  %v256_v16 = vld [vmem:[%s3225_s16 + $0xf0] sm:$0xff]  ;;  %v257_v21 = vld [vmem:[%s3225_s16 + $0xf8] sm:$0xff] }
  0x6c   : > { %v549_v27 = vld [vmem:[#allocation2 + $0xf0] sm:$0xff]  ;;  %v550_v32 = vld [vmem:[#allocation2 + $0xf8] sm:$0xff]  ;;  %v726_v50 = vshll.u32 %v3691_v26, 16  ;;  %v551_v56 = vld [vmem:[#allocation2 + $0x100] sm:$0x3] }
  0x6d   : > { %v723_v45 = vrot.slane %v721_v24, 1  ;;  %v3705_v46 = vpack.c.bf16 %v550_v32, %v549_v27  ;;  %v3719_v1 = vpack.c.bf16 %v551_v56, %v551_v56  ;;  %v295_v24 = vmul.f32 %v3635_v25, %v256_v16 }
  0x6e   : > { %2864 = vmatpush3.bf16.msra.mxu1 %v3122_v22  ;;  %v728_v61 = vrot.slane %v726_v50, 1  ;;  %v296_v27 = vmul.f32 %v3635_v25, %v257_v21  ;;  %v866_v25 = vrot.slane %v3528_v2, 1  ;;  %v867_v56 = vrot.slane %v3533_v4, 1 }
  0x6f   : > { %2865 = vmatprep.subr.bf16.mxu1 %v3124_v43  ;;  %v724_v60 = vor.u32 %v723_v45, %v719_v51  ;;  %v733_v6 = vshll.u32 %v3705_v46, 16  ;;  %v731_v12 = vshrl.u32 %v3705_v46, 16  ;;  %v738_v51 = vshll.u32 %v3719_v1, 16 }
  0x70   : > { %1754 = vmatmul.mubr.bf16.gmra.mxu1 %v3695_v33  ;;  %v552_v7 = vld [vmem:[#allocation2 + $0x108] sm:$0xff]  ;;  %v334_v50 = vadd.f32 %v3651_v35, %v295_v24  ;;  %v869_v21 = vrot.slane %v3556_v52, 1 }
  0x71   : > { %1761 = vmatprep.mubr.bf16.mxu1 %v3528_v2  ;;  %v553_v49 = vld [vmem:[#allocation2 + $0x110] sm:$0xff]  ;;  %v554_v22 = vld [vmem:[#allocation2 + $0x118] sm:$0x3]  ;;  %v3734_v32 = vsel %vm609_vm0, %v724_v60, %v728_v61  ;;  %v735_v43 = vrot.slane %v733_v6, 1  ;;  %v740_v60 = vrot.slane %v738_v51, 1 }
  0x72   : > { %1625 = vmatmul.mubr.bf16.gmra.mxu0 %v3600_v44  ;;  %2866 = vmatpush3.bf16.msra.mxu1 %v3125_v8  ;;  %v3737_v45 = vpack.c.bf16 %v553_v49, %v552_v7  ;;  %v335_v8 = vadd.f32 %v3651_v35, %v296_v27  ;;  %vm366_vm2 = vcmp.ge.f32.partialorder %v334_v50, 0.0  ;;  %v398_v14 = vmul.f32 0.2, %v334_v50 }
  0x73   : > { %1632 = vmatprep.mubr.bf16.mxu0 %v3698_v38  ;;  %2867 = vmatprep.subr.bf16.mxu1 %v3127_v28  ;;  %v736_v28 = vor.u32 %v735_v43, %v731_v12  ;;  %v3747_v61 = vpack.c.bf16 %v554_v22, %v554_v22  ;;  %v870_v22 = vrot.slane %v3558_v53, 1  ;;  %v873_v53 = vrot.slane %v3602_v36, 1  ;;  %v3123_v36 = vld [vmem:[%s4477_s3 + $0x230] sm:$0xff]  }
  0x74   : > { %vm367_vm3 = vcmp.ge.f32.partialorder %v335_v8, 0.0  ;;  %v399_v58 = vmul.f32 0.2, %v335_v8  ;;  %v745_v35 = vshll.u32 %v3737_v45, 16  ;;  %v430_v6 = vsel %vm366_vm2, %v334_v50, %v398_v14 }
  0x75   : > { %517 = vst [vmem:[#allocation2 + $0x181] sm:$0xff] %v430_v6  ;;  %v3754_v4 = vsel %vm609_vm0, %v736_v28, %v740_v60  ;;  %v743_v49 = vshrl.u32 %v3737_v45, 16  ;;  %v750_v12 = vshll.u32 %v3747_v61, 16  ;;  %v3765_v43 = vsel %vm850_vm4, %v869_v21, %v870_v22  ;;  %v3130_v60 = vld [vmem:[%s4477_s3 + $0x218] sm:$0xff]   ;;  %v3131_v6 = vld [vmem:[%s4477_s3 + $0x210] sm:$0xff]  }
  0x76   : > { %2868 = vmatpush3.bf16.msra.mxu1 %v3128_v19  ;;  %v431_v7 = vsel %vm367_vm3, %v335_v8, %v399_v58  ;;  %v3751_v19 = vsel %vm850_vm4, %v866_v25, %v867_v56  ;;  %v747_v16 = vrot.slane %v745_v35, 1  ;;  %v872_v50 = vrot.slane %v3600_v44, 1 }
  0x77   : > { %518 = vst [vmem:[#allocation2 + $0x189] sm:$0xff] %v431_v7  ;;  %v752_v27 = vrot.slane %v750_v12, 1  ;;  %v875_v25 = vrot.slane %v3642_v37, 1  ;;  %v876_v56 = vrot.slane %v3644_v39, 1  ;;  %v878_v58 = vrot.slane %v3682_v59, 1  ;;  %v3133_v12 = vld [vmem:[%s4477_s3 + $0x200] sm:$0xff]  }
  0x78   : > { %1762 = vmatmul.mubr.bf16.gmra.mxu1 %v3726_v9  ;;  %v748_v24 = vor.u32 %v747_v16, %v743_v49  ;;  %v3777_v8 = vsel %vm850_vm4, %v872_v50, %v873_v53  ;;  %v879_v28 = vrot.slane %v3691_v26, 1  ;;  %v882_v26 = vrot.slane %v3719_v1, 1  ;;  %v3132_v49 = vld [vmem:[%s4477_s3 + $0x208] sm:$0xff]  }
  0x79   : > { %1769 = vmatprep.mubr.bf16.mxu1 %v3556_v52  ;;  %v3786_v14 = vsel %vm850_vm4, %v875_v25, %v876_v56  ;;  %v884_v1 = vrot.slane %v3737_v45, 1  ;;  %v885_v7 = vrot.slane %v3747_v61, 1  ;;  %v887_v61 = vrot.slane %v3292_v62, 1 }
  0x7a   : > { %1633 = vmatmul.mubr.bf16.gmra.mxu0 %v3642_v37  ;;  %v3768_v51 = vsel %vm609_vm0, %v748_v24, %v752_v27  ;;  %v3802_v39 = vsel %vm850_vm4, %v878_v58, %v879_v28  ;;  %v888_v21 = vrot.slane %v3294_v63, 1  ;;  %v890_v24 = vrot.slane %v3330_v41, 1 }
  0x7b   : > { %1640 = vmatprep.mubr.bf16.mxu0 %v3734_v32  ;;  %v3832_v16 = vsel %vm850_vm4, %v884_v1, %v885_v7  ;;  %v891_v27 = vrot.slane %v3332_v42, 1  ;;  %v893_v50 = vrot.slane %v3388_v29, 1  ;;  %v894_v53 = vrot.slane %v3394_v31, 1 }
  0x7c   : > { %v3844_v22 = vsel %vm850_vm4, %v887_v61, %v888_v21  ;;  %v567_v25 = vld [vmem:[#allocation2 + $0x180] sm:$0xff]  ;;  %v896_v58 = vrot.slane %v3462_v48, 1  ;;  %v897_v28 = vrot.slane %v3468_v55, 1 }
  0x7d   : > { %v3853_v63 = vsel %vm850_vm4, %v890_v24, %v891_v27  ;;  %v3862_v42 = vsel %vm850_vm4, %v893_v50, %v894_v53 }
  0x7e   : > { %v568_v56 = vld [vmem:[#allocation2 + $0x188] sm:$0xff]  ;;  %v3873_v31 = vsel %vm850_vm4, %v896_v58, %v897_v28  ;;  %v569_v61 = vld [vmem:[#allocation2 + $0x190] sm:$0x3] }
  0x7f   : > { %v606_v53 = vpack.c.bf16 %v569_v61, %v569_v61 }
  0x80   : > { %1770 = vmatmul.mubr.bf16.gmra.mxu1 %v3751_v19 }
  0x81   : > { %1777 = vmatprep.mubr.bf16.mxu1 %v3600_v44 }
  0x82   : > { %1641 = vmatmul.mubr.bf16.gmra.mxu0 %v3682_v59 }
  0x83   : > { %1648 = vmatprep.mubr.bf16.mxu0 %v3754_v4 }
  0x88   : > { %1778 = vmatmul.mubr.bf16.gmra.mxu1 %v3765_v43 }
  0x89   : > { %1785 = vmatprep.mubr.bf16.mxu1 %v3642_v37 }
  0x8a   : > { %1649 = vmatmul.mubr.bf16.gmra.mxu0 %v3705_v46 }
  0x8b   : > { %1656 = vmatprep.mubr.bf16.mxu0 %v3768_v51 }
  0x90   : > { %1786 = vmatmul.mubr.bf16.gmra.mxu1 %v3777_v8 }
  0x91   : > { %1793 = vmatprep.mubr.bf16.mxu1 %v3682_v59 }
  0x92   : > { %1657 = vmatmul.mubr.bf16.gmra.mxu0 %v3737_v45 }
  0x93   : > { %1890 = vmatprep.mubr.bf16.mxu0 %v3594_v5  ;;  %v3126_v5 = vld [vmem:[%s4477_s3 + $0x228] sm:$0xff]  }
  0x98   : > { %1794 = vmatmul.mubr.bf16.gmra.mxu1 %v3786_v14 }
  0x99   : > { %1801 = vmatprep.mubr.bf16.mxu1 %v3705_v46 }
  0x9a   : > { %1891 = vmatmul.mubr.bf16.vlgmr.msra.gmra.mxu0 %v3362_v11  ;;  %v3129_v11 = vld [vmem:[%s4477_s3 + $0x220] sm:$0xff]  }
  0x9b   : > { %2990 = vmatpush3.bf16.msra.mxu0 %v3671_v57  ;;  %1898 = vmatprep.mubr.bf16.mxu0 %v3663_v17  ;;  %v881_v57 = vrot.slane %v3705_v46, 1 }
  0x9c   : > { %2991 = vmatprep.subr.bf16.mxu0 %v3123_v36 }
  0x9d   : > { %v3817_v35 = vsel %vm850_vm4, %v881_v57, %v882_v26 }
  0x9f   : > { %2992 = vmatpush3.bf16.msra.mxu0 %v3123_v36  ;;  %v3864_v36 = vpack.c.bf16 %v568_v56, %v567_v25 }
  0xa0   : > { %2993 = vmatprep.subr.bf16.mxu0 %v3126_v5  ;;  %1802 = vmatmul.mubr.bf16.gmra.mxu1 %v3802_v39 }
  0xa1   : > { %1809 = vmatprep.mubr.bf16.mxu1 %v3737_v45  ;;  %v918_v58 = vshll.u32 %v3864_v36, 16 }
  0xa2   : > { %1899 = vmatmul.mubr.bf16.gmra.mxu0 %v3409_v54 }
  0xa3   : > { %1906 = vmatprep.mubr.bf16.mxu0 %v3695_v33  ;;  %2994 = vmatpush3.bf16.msra.mxu0 %v3126_v5 }
  0xa4   : > { %2995 = vmatprep.subr.bf16.mxu0 %v3129_v11 }
  0xa7   : > { %2996 = vmatpush3.bf16.msra.mxu0 %v3129_v11 }
  0xa8   : > { %2997 = vmatprep.subr.bf16.mxu0 %v3130_v60  ;;  %1810 = vmatmul.mubr.bf16.gmra.mxu1 %v3817_v35 }
  0xa9   : > { %1817 = vmatprep.mubr.bf16.mxu1 %v3292_v62 }
  0xaa   : > { %1907 = vmatmul.mubr.bf16.gmra.mxu0 %v3494_v15 }
  0xab   : > { %1914 = vmatprep.mubr.bf16.mxu0 %v3726_v9  ;;  %2998 = vmatpush3.bf16.msra.mxu0 %v3130_v60 }
  0xac   : > { %2999 = vmatprep.subr.bf16.mxu0 %v3131_v6 }
  0xaf   : > { %3000 = vmatpush3.bf16.msra.mxu0 %v3131_v6 }
  0xb0   : > { %3001 = vmatprep.subr.bf16.mxu0 %v3132_v49  ;;  %1818 = vmatmul.mubr.bf16.gmra.mxu1 %v3832_v16 }
  0xb1   : > { %1825 = vmatprep.mubr.bf16.mxu1 %v3330_v41 }
  0xb2   : > { %1915 = vmatmul.mubr.bf16.gmra.mxu0 %v3554_v30 }
  0xb3   : > { %1922 = vmatprep.mubr.bf16.mxu0 %v3751_v19  ;;  %3002 = vmatpush3.bf16.msra.mxu0 %v3132_v49 }
  0xb4   : > { %3003 = vmatprep.subr.bf16.mxu0 %v3133_v12 }
  0xb7   : > { %3004 = vmatpush3.bf16.msra.mxu0 %v3133_v12 }
  0xb8   : > { %1826 = vmatmul.mubr.bf16.gmra.mxu1 %v3844_v22 }
  0xb9   : > { %1833 = vmatprep.mubr.bf16.mxu1 %v3388_v29 }
  0xba   : > { %1923 = vmatmul.mubr.bf16.gmra.mxu0 %v3572_v3 }
  0xbb   : > { %1930 = vmatprep.mubr.bf16.mxu0 %v3765_v43 }
  0xc0   : > { %1834 = vmatmul.mubr.bf16.gmra.mxu1 %v3853_v63 }
  0xc1   : > { %1841 = vmatprep.mubr.bf16.mxu1 %v3462_v48 }
  0xc2   : > { %1931 = vmatmul.mubr.bf16.gmra.mxu0 %v3611_v18 }
  0xc3   : > { %1938 = vmatprep.mubr.bf16.mxu0 %v3777_v8 }
  0xc8   : > { %1842 = vmatmul.mubr.bf16.gmra.mxu1 %v3862_v42 }
  0xc9   : > { %1849 = vmatprep.mubr.bf16.mxu1 %v3864_v36 }
  0xca   : > { %1939 = vmatmul.mubr.bf16.gmra.mxu0 %v3674_v10 }
  0xcb   : > { %1946 = vmatprep.mubr.bf16.mxu0 %v3786_v14 }
  0xd0   : > { %1850 = vmatmul.mubr.bf16.gmra.mxu1 %v3873_v31 }
  0xd1   : > { %2051 = vmatprep.mubr.bf16.mxu1 %v3409_v54 }
  0xd2   : > { %1947 = vmatmul.mubr.bf16.gmra.mxu0 %v3698_v38 }
  0xd3   : > { %1954 = vmatprep.mubr.bf16.mxu0 %v3802_v39 }
  0xd8   : > { %2052 = vmatmul.mubr.bf16.vlgmr.msra.gmra.mxu1 %v3367_v13 }
  0xd9   : > { %2059 = vmatprep.mubr.bf16.mxu1 %v3494_v15 }
  0xda   : > { %1955 = vmatmul.mubr.bf16.gmra.mxu0 %v3734_v32 }
  0xdb   : > { %1962 = vmatprep.mubr.bf16.mxu0 %v3817_v35 }
  0xe0   : > { %2060 = vmatmul.mubr.bf16.gmra.mxu1 %v3444_v23 }
  0xe1   : > { %2067 = vmatprep.mubr.bf16.mxu1 %v3554_v30 }
  0xe2   : > { %1963 = vmatmul.mubr.bf16.gmra.mxu0 %v3754_v4 }
  0xe3   : > { %1970 = vmatprep.mubr.bf16.mxu0 %v3832_v16 }
  0xe8   : > { %2068 = vmatmul.mubr.bf16.gmra.mxu1 %v3515_v47 }
  0xe9   : > { %2075 = vmatprep.mubr.bf16.mxu1 %v3572_v3 }
  0xea   : > { %1971 = vmatmul.mubr.bf16.gmra.mxu0 %v3768_v51 }
  0xeb   : > { %1978 = vmatprep.mubr.bf16.mxu0 %v3844_v22 }
  0xec   : > { %v2533_v55 = vpop.f32.mrf.mxu0 }
  0xee   : > { %v2534_v54 = vpop.f32.mrf.mxu0 }
  0xef   : > { %v3890_v13 = vadd.f32 %v2534_v54, %v2533_v55  ;;  %v930_v54 = vrot.slane %v3864_v36, 1 }
  0xf0   : > { %v2536_v15 = vpop.f32.mrf.mxu0  ;;  %2076 = vmatmul.mubr.bf16.gmra.mxu1 %v3528_v2 }
  0xf1   : > { %2083 = vmatprep.mubr.bf16.mxu1 %v3611_v18 }
  0xf2   : > { %v2537_v23 = vpop.f32.mrf.mxu0  ;;  %1979 = vmatmul.mubr.bf16.gmra.mxu0 %v3322_v34 }
  0xf3   : > { %v3893_v5 = vadd.f32 %v2537_v23, %v2536_v15  ;;  %1986 = vmatprep.mubr.bf16.mxu0 %v3853_v63  ;;  %v931_v15 = vrot.slane %v606_v53, 1 }
  0xf8   : > { %v2605_v11 = vpop.f32.mrf.mxu1  ;;  %2084 = vmatmul.mubr.bf16.gmra.mxu1 %v3556_v52 }
  0xf9   : > { %2091 = vmatprep.mubr.bf16.mxu1 %v3674_v10 }
  0xfa   : > { %v2606_v47 = vpop.f32.mrf.mxu1  ;;  %v2539_v60 = vpop.f32.mrf.mxu0  ;;  %1987 = vmatmul.mubr.bf16.gmra.mxu0 %v3374_v20 }
  0xfb   : > { %v3899_v30 = vadd.f32 %v2606_v47, %v2605_v11  ;;  %1994 = vmatprep.mubr.bf16.mxu0 %v3862_v42 }
  0xfc   : > { %v2608_v3 = vpop.f32.mrf.mxu1  ;;  %v2540_v2 = vpop.f32.mrf.mxu0 }
  0xfd   : > { %v3907_v18 = vadd.f32 %v2540_v2, %v2539_v60 }
  0xfe   : > { %v2609_v57 = vpop.f32.mrf.mxu1  ;;  %v2542_v49 = vpop.f32.mrf.mxu0 }
  0xff   : > { %v3901_v26 = vadd.f32 %v2609_v57, %v2608_v3  ;;  %v920_v3 = vrot.slane %v918_v58, 1  ;;  %v923_v57 = vshll.u32 %v606_v53, 16 }
 0x100   : > { %v2611_v6 = vpop.f32.mrf.mxu1  ;;  %v2543_v21 = vpop.f32.mrf.mxu0  ;;  %2092 = vmatmul.mubr.bf16.gmra.mxu1 %v3600_v44 }
 0x101   : > { %v3911_v24 = vadd.f32 %v2543_v21, %v2542_v49  ;;  %2099 = vmatprep.mubr.bf16.mxu1 %v3698_v38  ;;  %v916_v38 = vshrl.u32 %v3864_v36, 16  ;;  %v925_v49 = vrot.slane %v923_v57, 1 }
 0x102   : > { %v2612_v1 = vpop.f32.mrf.mxu1  ;;  %v2545_v50 = vpop.f32.mrf.mxu0  ;;  %1995 = vmatmul.mubr.bf16.gmra.mxu0 %v3420_v0 }
 0x103   : > { %v3909_v7 = vadd.f32 %v2612_v1, %v2611_v6  ;;  %2002 = vmatprep.mubr.bf16.mxu0 %v3873_v31  ;;  %v3929_v6 = vsel %vm850_vm4, %v930_v54, %v931_v15  ;;  %v921_v1 = vor.u32 %v920_v3, %v916_v38 }
 0x104   : > { %v2614_v12 = vpop.f32.mrf.mxu1  ;;  %v2546_v25 = vpop.f32.mrf.mxu0 }
 0x105   : > { %v3919_v56 = vadd.f32 %v2546_v25, %v2545_v50  ;;  %v3938_v61 = vsel %vm609_vm0, %v921_v1, %v925_v49 }
 0x106   : > { %v2615_v52 = vpop.f32.mrf.mxu1  ;;  %v2548_v55 = vpop.f32.mrf.mxu0 }
 0x107   : > { %v3913_v27 = vadd.f32 %v2615_v52, %v2614_v12 }
 0x108   : > { %v2617_v10 = vpop.f32.mrf.mxu1  ;;  %v2549_v11 = vpop.f32.mrf.mxu0  ;;  %2100 = vmatmul.mubr.bf16.gmra.mxu1 %v3642_v37 }
 0x109   : > { %v3925_v47 = vadd.f32 %v2549_v11, %v2548_v55  ;;  %2107 = vmatprep.mubr.bf16.mxu1 %v3734_v32 }
 0x10a   : > { %v2618_v28 = vpop.f32.mrf.mxu1  ;;  %2003 = vmatmul.mubr.bf16.gmra.mxu0 %v3509_v40 }
 0x10b   : > { %v3923_v23 = vadd.f32 %v2618_v28, %v2617_v10  ;;  %2010 = vmatprep.mubr.bf16.mxu0 %v3929_v6 }
 0x10c   : > { %v2620_v44 = vpop.f32.mrf.mxu1 }
 0x10e   : > { %v2621_v60 = vpop.f32.mrf.mxu1 }
 0x10f   : > { %v3932_v2 = vadd.f32 %v2621_v60, %v2620_v44 }
 0x110   : > { %v2551_v12 = vpop.f32.mrf.mxu0  ;;  %v2623_v52 = vpop.f32.mrf.mxu1  ;;  %2108 = vmatmul.mubr.bf16.gmra.mxu1 %v3682_v59 }
 0x111   : > { %2115 = vmatprep.mubr.bf16.mxu1 %v3754_v4 }
 0x112   : > { %v2552_v21 = vpop.f32.mrf.mxu0  ;;  %2011 = vmatmul.mubr.bf16.gmra.mxu0 %v3938_v61  ;;  %v2624_v32 = vpop.f32.mrf.mxu1 }
 0x113   : > { %v3941_v50 = vadd.f32 %v2552_v21, %v2551_v12  ;;  %3005 = vmatprep.mubr.bf16.mxu0 %v3663_v17  ;;  %v3946_v53 = vadd.f32 %v2624_v32, %v2623_v52  ;;  %v3958_v17 = vld [vmem:[%s4478_s4] ss:$0 sm:$0xff] }
 0x114   : > { %v2554_v37 = vpop.f32.mrf.mxu0  ;;  %v2626_v25 = vpop.f32.mrf.mxu1  ;;  %v1571_v15 = vadd.f32 %v3890_v13, %v3958_v17  ;;  %v1574_v57 = vadd.f32 %v3893_v5, %v3958_v17  ;;  %v1579_v5 = vadd.f32 %v3907_v18, %v3958_v17 }
 0x116   : > { %v2555_v10 = vpop.f32.mrf.mxu0  ;;  %v2627_v28 = vpop.f32.mrf.mxu1 }
 0x117   : > { %v3948_v58 = vadd.f32 %v2555_v10, %v2554_v37  ;;  %v3950_v55 = vadd.f32 %v2627_v28, %v2626_v25 }
 0x118   : > { %v2645_v59 = vpop.f32.mrf.mxu1  ;;  %2116 = vmatmul.mubr.bf16.gmra.mxu1 %v3705_v46 }
 0x119   : > { %2123 = vmatprep.mubr.bf16.mxu1 %v3768_v51 }
 0x11a   : > { %v2557_v54 = vpop.f32.mrf.mxu0  ;;  %3006 = vmatmul.mubr.bf16.vlgmr.msra.gmra.mxu0 %v3695_v33  ;;  %v2646_v4 = vpop.f32.mrf.mxu1 }
 0x11b   : > { %3009 = vmatprep.mubr.bf16.mxu0 %v3726_v9  ;;  %v2647_v11 = vadd.f32 %v2646_v4, %v2645_v59 }
 0x11c   : > { %v2558_v44 = vpop.f32.mrf.mxu0  ;;  %v2648_v46 = vpop.f32.mrf.mxu1 }
 0x11d   : > { %v3963_v38 = vadd.f32 %v2558_v44, %v2557_v54  ;;  %v3965_v3 = vadd.f32 %v2647_v11, %v1571_v15 }
 0x11e   : > { %v2560_v33 = vpop.f32.mrf.mxu0  ;;  %v2649_v51 = vpop.f32.mrf.mxu1 }
 0x11f   : > { %v2650_v1 = vadd.f32 %v2649_v51, %v2648_v46 }
 0x120   : > { %v2561_v60 = vpop.f32.mrf.mxu0  ;;  %v2651_v9 = vpop.f32.mrf.mxu1  ;;  %2124 = vmatmul.mubr.bf16.gmra.mxu1 %v3737_v45 }
 0x121   : > { %v3969_v49 = vadd.f32 %v2561_v60, %v2560_v33  ;;  %v3972_v13 = vadd.f32 %v2650_v1, %v1574_v57  ;;  %2131 = vmatprep.mubr.bf16.mxu1 %v3322_v34 }
 0x122   : > { %v2563_v12 = vpop.f32.mrf.mxu0  ;;  %3010 = vmatmul.mubr.bf16.gmra.mxu0 %v3751_v19  ;;  %v2652_v21 = vpop.f32.mrf.mxu1  ;;  %v1582_v19 = vadd.f32 %v3911_v24, %v3958_v17  ;;  %v1587_v24 = vadd.f32 %v3919_v56, %v3958_v17 }
 0x123   : > { %3013 = vmatprep.mubr.bf16.mxu0 %v3765_v43  ;;  %v2653_v37 = vadd.f32 %v2652_v21, %v2651_v9 }
 0x124   : > { %v2564_v52 = vpop.f32.mrf.mxu0  ;;  %v2654_v10 = vpop.f32.mrf.mxu1 }
 0x125   : > { %v3979_v32 = vadd.f32 %v2564_v52, %v2563_v12  ;;  %v3981_v25 = vadd.f32 %v2653_v37, %v1579_v5 }
 0x126   : > { %v2566_v45 = vpop.f32.mrf.mxu0  ;;  %v2655_v28 = vpop.f32.mrf.mxu1 }
 0x127   : > { %v2656_v34 = vadd.f32 %v2655_v28, %v2654_v10  ;;  %v3136_v28 = vld [vmem:[#allocation2] sm:$0xff] }
 0x128   : > { %v2567_v59 = vpop.f32.mrf.mxu0  ;;  %v2657_v43 = vpop.f32.mrf.mxu1  ;;  %2132 = vmatmul.mubr.bf16.gmra.mxu1 %v3292_v62 }
 0x129   : > { %v3985_v54 = vadd.f32 %v2567_v59, %v2566_v45  ;;  %v3988_v18 = vadd.f32 %v2656_v34, %v1582_v19  ;;  %2139 = vmatprep.mubr.bf16.mxu1 %v3374_v20  ;;  %v4015_v19 = vpack.c.bf16 %v3136_v28, %v3136_v28  ;;  %v572_v59 = vld [vmem:[#allocation2 + $0x1a8] sm:$0x3] }
 0x12a   : > { %v2569_v4 = vpop.f32.mrf.mxu0  ;;  %3014 = vmatmul.mubr.bf16.gmra.mxu0 %v3777_v8  ;;  %v2658_v15 = vpop.f32.mrf.mxu1  ;;  %v1590_v8 = vadd.f32 %v3925_v47, %v3958_v17  ;;  %v1595_v47 = vadd.f32 %v3941_v50, %v3958_v17 }
 0x12b   : > { %3017 = vmatprep.mubr.bf16.mxu0 %v3786_v14  ;;  %v2659_v11 = vadd.f32 %v2658_v15, %v2657_v43 }
 0x12c   : > { %v2570_v44 = vpop.f32.mrf.mxu0  ;;  %v2660_v33 = vpop.f32.mrf.mxu1 }
 0x12d   : > { %v3995_v46 = vadd.f32 %v2570_v44, %v2569_v4  ;;  %v3997_v51 = vadd.f32 %v2659_v11, %v1587_v24  ;;  %v608_v24 = vpack.c.bf16 %v572_v59, %v572_v59  ;;  %v1603_v44 = vadd.f32 %v3963_v38, %v3958_v17 }
 0x12e   : > { %v2572_v62 = vpop.f32.mrf.mxu0  ;;  %v2661_v57 = vpop.f32.mrf.mxu1 }
 0x12f   : > { %v2662_v20 = vadd.f32 %v2661_v57, %v2660_v33 }
 0x130   : > { %v2573_v60 = vpop.f32.mrf.mxu0  ;;  %v2663_v14 = vpop.f32.mrf.mxu1  ;;  %2140 = vmatmul.mubr.bf16.gmra.mxu1 %v3330_v41 }
 0x131   : > { %v4001_v1 = vadd.f32 %v2573_v60, %v2572_v62  ;;  %v4004_v56 = vadd.f32 %v2662_v20, %v1590_v8  ;;  %2147 = vmatprep.mubr.bf16.mxu1 %v3420_v0  ;;  %v1598_v0 = vadd.f32 %v3948_v58, %v3958_v17  ;;  %v937_v58 = vshll.u32 %v4015_v19, 16 }
 0x132   : > { %v2575_v9 = vpop.f32.mrf.mxu0  ;;  %3018 = vmatmul.mubr.bf16.gmra.mxu0 %v3802_v39  ;;  %v2664_v12 = vpop.f32.mrf.mxu1  ;;  %v942_v20 = vshll.u32 %v608_v24, 16 }
 0x133   : > { %3021 = vmatprep.mubr.bf16.mxu0 %v3817_v35  ;;  %v2665_v5 = vadd.f32 %v2664_v12, %v2663_v14  ;;  %v939_v60 = vrot.slane %v937_v58, 1 }
 0x134   : > { %v2576_v21 = vpop.f32.mrf.mxu0  ;;  %v2666_v37 = vpop.f32.mrf.mxu1 }
 0x135   : > { %v4011_v52 = vadd.f32 %v2576_v21, %v2575_v9  ;;  %v4013_v10 = vadd.f32 %v2665_v5, %v1595_v47 }
 0x136   : > { %v2578_v41 = vpop.f32.mrf.mxu0  ;;  %v2667_v45 = vpop.f32.mrf.mxu1 }
 0x137   : > { %v2668_v35 = vadd.f32 %v2667_v45, %v2666_v37 }
 0x138   : > { %v2579_v39 = vpop.f32.mrf.mxu0  ;;  %v2669_v50 = vpop.f32.mrf.mxu1  ;;  %2148 = vmatmul.mubr.bf16.gmra.mxu1 %v3388_v29 }
 0x139   : > { %v4019_v34 = vadd.f32 %v2579_v39, %v2578_v41  ;;  %v4022_v43 = vadd.f32 %v2668_v35, %v1598_v0  ;;  %2155 = vmatprep.mubr.bf16.mxu1 %v3509_v40  ;;  %v935_v40 = vshrl.u32 %v4015_v19, 16  ;;  %v944_v41 = vrot.slane %v942_v20, 1 }
 0x13a   : > { %v2581_v4 = vpop.f32.mrf.mxu0  ;;  %3022 = vmatmul.mubr.bf16.gmra.mxu0 %v3832_v16  ;;  %v2670_v15 = vpop.f32.mrf.mxu1 }
 0x13b   : > { %3025 = vmatprep.mubr.bf16.mxu0 %v3844_v22  ;;  %v2671_v33 = vadd.f32 %v2670_v15, %v2669_v50  ;;  %v1606_v22 = vadd.f32 %v3969_v49, %v3958_v17  ;;  %v940_v37 = vor.u32 %v939_v60, %v935_v40  ;;  %v1611_v49 = vadd.f32 %v3979_v32, %v3958_v17 }
 0x13c   : > { %v2582_v11 = vpop.f32.mrf.mxu0  ;;  %v2672_v29 = vpop.f32.mrf.mxu1 }
 0x13d   : > { %v4030_v62 = vadd.f32 %v2582_v11, %v2581_v4  ;;  %v4032_v57 = vadd.f32 %v2671_v33, %v1603_v44  ;;  %v949_v11 = vrot.slane %v4015_v19, 1  ;;  %v950_v33 = vrot.slane %v608_v24, 1 }
 0x13e   : > { %v2584_v8 = vpop.f32.mrf.mxu0  ;;  %v2673_v16 = vpop.f32.mrf.mxu1 }
 0x13f   : > { %v2674_v9 = vadd.f32 %v2673_v16, %v2672_v29 }
 0x140   : > { %v2585_v14 = vpop.f32.mrf.mxu0  ;;  %v2675_v38 = vpop.f32.mrf.mxu1  ;;  %2156 = vmatmul.mubr.bf16.gmra.mxu1 %v3462_v48 }
 0x141   : > { %v4037_v12 = vadd.f32 %v2585_v14, %v2584_v8  ;;  %v4040_v47 = vadd.f32 %v2674_v9, %v1606_v22  ;;  %2163 = vmatprep.mubr.bf16.mxu1 %v3938_v61  ;;  %v1614_v61 = vadd.f32 %v3985_v54, %v3958_v17  ;;  %v1619_v54 = vadd.f32 %v3995_v46, %v3958_v17 }
 0x142   : > { %v2587_v21 = vpop.f32.mrf.mxu0  ;;  %3026 = vmatmul.mubr.bf16.gmra.mxu0 %v3853_v63  ;;  %v2676_v5 = vpop.f32.mrf.mxu1  ;;  %v945_v63 = vsel %vm609_vm0, %v940_v37, %v944_v41  ;;  %vm2341_vm0 = vcmask 23552  }
 0x143   : > { %3029 = vmatprep.mubr.bf16.mxu0 %v3862_v42  ;;  %v2677_v28 = vadd.f32 %v2676_v5, %v2675_v38  ;;  %v1627_v5 = vadd.f32 %v4011_v52, %v3958_v17 }
 0x144   : > { %v2588_v45 = vpop.f32.mrf.mxu0  ;;  %v2678_v48 = vpop.f32.mrf.mxu1 }
 0x145   : > { %v4047_v0 = vadd.f32 %v2588_v45, %v2587_v21  ;;  %v4049_v39 = vadd.f32 %v2677_v28, %v1611_v49 }
 0x146   : > { %v2590_v35 = vpop.f32.mrf.mxu0  ;;  %v2679_v59 = vpop.f32.mrf.mxu1 }
 0x147   : > { %v2680_v50 = vadd.f32 %v2679_v59, %v2678_v48 }
 0x148   : > { %v2591_v42 = vpop.f32.mrf.mxu0  ;;  %v2681_v15 = vpop.f32.mrf.mxu1  ;;  %2164 = vmatmul.mubr.bf16.gmra.mxu1 %v3864_v36 }
 0x149   : > { %v4054_v4 = vadd.f32 %v2591_v42, %v2590_v35  ;;  %v4057_v32 = vadd.f32 %v2680_v50, %v1614_v61  ;;  %2171 = vmatprep.mubr.bf16.mxu1 %v945_v63 }
 0x14a   : > { %v2593_v58 = vpop.f32.mrf.mxu0  ;;  %3030 = vmatmul.mubr.bf16.gmra.mxu0 %v3873_v31  ;;  %v2682_v44 = vpop.f32.mrf.mxu1  ;;  %v951_v31 = vsel %vm850_vm4, %v949_v11, %v950_v33 }
 0x14b   : > { %3033 = vmatprep.mubr.bf16.mxu0 %v3929_v6  ;;  %v2683_v8 = vadd.f32 %v2682_v44, %v2681_v15  ;;  %v1622_v6 = vadd.f32 %v4001_v1, %v3958_v17  ;;  %v1635_v15 = vadd.f32 %v4030_v62, %v3958_v17 }
 0x14c   : > { %v2594_v29 = vpop.f32.mrf.mxu0  ;;  %v2684_v36 = vpop.f32.mrf.mxu1 }
 0x14d   : > { %v4064_v16 = vadd.f32 %v2594_v29, %v2593_v58  ;;  %v4066_v40 = vadd.f32 %v2683_v8, %v1619_v54 }
 0x14e   : > { %v2596_v60 = vpop.f32.mrf.mxu0  ;;  %v2685_v20 = vpop.f32.mrf.mxu1 }
 0x14f   : > { %v2686_v14 = vadd.f32 %v2685_v20, %v2684_v36  ;;  %v1638_v36 = vadd.f32 %v4037_v12, %v3958_v17 }
 0x150   : > { %v2597_v22 = vpop.f32.mrf.mxu0  ;;  %v2687_v9 = vpop.f32.mrf.mxu1  ;;  %2172 = vmatmul.mubr.bf16.gmra.mxu1 %v4015_v19  ;;  %v1630_v19 = vadd.f32 %v4019_v34, %v3958_v17 }
 0x151   : > { %v4071_v24 = vadd.f32 %v2597_v22, %v2596_v60  ;;  %v4074_v46 = vadd.f32 %v2686_v14, %v1622_v6 }
 0x152   : > { %v2599_v38 = vpop.f32.mrf.mxu0  ;;  %3034 = vmatmul.mubr.bf16.gmra.mxu0 %v951_v31  ;;  %v2688_v21 = vpop.f32.mrf.mxu1 }
 0x153   : > { %v2689_v41 = vadd.f32 %v2688_v21, %v2687_v9 }
 0x154   : > { %v2600_v37 = vpop.f32.mrf.mxu0  ;;  %v2690_v1 = vpop.f32.mrf.mxu1 }
 0x155   : > { %v4078_v49 = vadd.f32 %v2600_v37, %v2599_v38  ;;  %v4080_v45 = vadd.f32 %v2689_v41, %v1627_v5  ;;  %v1643_v38 = vadd.f32 %v4047_v0, %v3958_v17 }
 0x156   : > { %v2602_v28 = vpop.f32.mrf.mxu0  ;;  %v2691_v48 = vpop.f32.mrf.mxu1 }
 0x157   : > { %v2692_v59 = vadd.f32 %v2691_v48, %v2690_v1  ;;  %v1646_v48 = vadd.f32 %v4054_v4, %v3958_v17 }
 0x158   : > { %v2603_v35 = vpop.f32.mrf.mxu0  ;;  %v2693_v61 = vpop.f32.mrf.mxu1 }
 0x159   : > { %v4084_v63 = vadd.f32 %v2603_v35, %v2602_v28  ;;  %v4086_v42 = vadd.f32 %v2692_v59, %v1630_v19 }
 0x15a   : > { %v2757_v52 = vpop.f32.mrf.mxu0  ;;  %v2694_v50 = vpop.f32.mrf.mxu1 }
 0x15b   : > { %v2695_v58 = vadd.f32 %v2694_v50, %v2693_v61 }
 0x15c   : > { %v2758_v44 = vpop.f32.mrf.mxu0  ;;  %v2696_v33 = vpop.f32.mrf.mxu1 }
 0x15d   : > { %v2759_v11 = vadd.f32 %v2758_v44, %v2757_v52  ;;  %v4090_v54 = vadd.f32 %v2695_v58, %v1635_v15  ;;  %v1651_v15 = vadd.f32 %v4064_v16, %v3958_v17 }
 0x15e   : > { %v2760_v29 = vpop.f32.mrf.mxu0  ;;  %v2697_v8 = vpop.f32.mrf.mxu1 }
 0x15f   : > { %v4093_v34 = vadd.f32 %v2759_v11, %v3965_v3  ;;  %v2698_v60 = vadd.f32 %v2697_v8, %v2696_v33 }
 0x160   : > { %v2761_v20 = vpop.f32.mrf.mxu0  ;;  %v2699_v6 = vpop.f32.mrf.mxu1 }
 0x161   : > { %v2762_v31 = vadd.f32 %v2761_v20, %v2760_v29  ;;  %v4097_v22 = vadd.f32 %v2698_v60, %v1638_v36  ;;  %v1654_v36 = vadd.f32 %v4071_v24, %v3958_v17 }
 0x162   : > { %v2763_v62 = vpop.f32.mrf.mxu0  ;;  %v2700_v9 = vpop.f32.mrf.mxu1 }
 0x163   : > { %v4100_v14 = vadd.f32 %v2762_v31, %v3972_v13  ;;  %v2701_v3 = vadd.f32 %v2700_v9, %v2699_v6 }
 0x164   : > { %v2764_v21 = vpop.f32.mrf.mxu0  ;;  %v2702_v37 = vpop.f32.mrf.mxu1 }
 0x165   : > { %v2765_v5 = vadd.f32 %v2764_v21, %v2763_v62  ;;  %v4104_v41 = vadd.f32 %v2701_v3, %v1643_v38  ;;  %v1659_v38 = vadd.f32 %v4078_v49, %v3958_v17 }
 0x166   : > { %v2766_v12 = vpop.f32.mrf.mxu0  ;;  %v2703_v28 = vpop.f32.mrf.mxu1 }
 0x167   : > { %v4107_v1 = vadd.f32 %v2765_v5, %v3981_v25  ;;  %v2704_v13 = vadd.f32 %v2703_v28, %v2702_v37 }
 0x168   : > { %v2767_v19 = vpop.f32.mrf.mxu0  ;;  %v2705_v59 = vpop.f32.mrf.mxu1 }
 0x169   : > { %v2768_v35 = vadd.f32 %v2767_v19, %v2766_v12  ;;  %v4111_v61 = vadd.f32 %v2704_v13, %v1646_v48  ;;  %v1662_v48 = vadd.f32 %v4084_v63, %v3958_v17 }
 0x16a   : > { %v2769_v0 = vpop.f32.mrf.mxu0  ;;  %v2706_v50 = vpop.f32.mrf.mxu1 }
 0x16b   : > { %v4114_v52 = vadd.f32 %v2768_v35, %v3988_v18  ;;  %v2707_v25 = vadd.f32 %v2706_v50, %v2705_v59 }
 0x16c   : > { %v2770_v58 = vpop.f32.mrf.mxu0  ;;  %v2708_v11 = vpop.f32.mrf.mxu1 }
 0x16d   : > { %v2771_v44 = vadd.f32 %v2770_v58, %v2769_v0  ;;  %v4118_v33 = vadd.f32 %v2707_v25, %v1651_v15  ;;  %v1667_v15 = vadd.f32 %v3899_v30, %v3958_v17 }
 0x16e   : > { %v2772_v4 = vpop.f32.mrf.mxu0  ;;  %v2709_v8 = vpop.f32.mrf.mxu1 }
 0x16f   : > { %v4121_v29 = vadd.f32 %v2771_v44, %v3997_v51  ;;  %v2710_v18 = vadd.f32 %v2709_v8, %v2708_v11 }
 0x170   : > { %v2773_v60 = vpop.f32.mrf.mxu0  ;;  %v2711_v31 = vpop.f32.mrf.mxu1 }
 0x171   : > { %v2774_v20 = vadd.f32 %v2773_v60, %v2772_v4  ;;  %v4125_v6 = vadd.f32 %v2710_v18, %v1654_v36  ;;  %v1670_v36 = vadd.f32 %v3901_v26, %v3958_v17 }
 0x172   : > { %v2775_v16 = vpop.f32.mrf.mxu0  ;;  %v2712_v9 = vpop.f32.mrf.mxu1 }
 0x173   : > { %v4128_v62 = vadd.f32 %v2774_v20, %v4004_v56  ;;  %v2713_v51 = vadd.f32 %v2712_v9, %v2711_v31 }
 0x174   : > { %v2776_v3 = vpop.f32.mrf.mxu0  ;;  %v2714_v5 = vpop.f32.mrf.mxu1 }
 0x175   : > { %v2777_v21 = vadd.f32 %v2776_v3, %v2775_v16  ;;  %v4132_v37 = vadd.f32 %v2713_v51, %v1659_v38  ;;  %v1675_v38 = vadd.f32 %v3909_v7, %v3958_v17 }
 0x176   : > { %v2778_v24 = vpop.f32.mrf.mxu0  ;;  %v2715_v28 = vpop.f32.mrf.mxu1 }
 0x177   : > { %v4135_v12 = vadd.f32 %v2777_v21, %v4013_v10  ;;  %v2716_v56 = vadd.f32 %v2715_v28, %v2714_v5 }
 0x178   : > { %v2779_v13 = vpop.f32.mrf.mxu0  ;;  %v2717_v35 = vpop.f32.mrf.mxu1 }
 0x179   : > { %v2780_v19 = vadd.f32 %v2779_v13, %v2778_v24  ;;  %v4139_v59 = vadd.f32 %v2716_v56, %v1662_v48  ;;  %v1678_v48 = vadd.f32 %v3913_v27, %v3958_v17 }
 0x17a   : > { %v2781_v49 = vpop.f32.mrf.mxu0  ;;  %v2718_v50 = vpop.f32.mrf.mxu1 }
 0x17b   : > { %v4142_v0 = vadd.f32 %v2780_v19, %v4022_v43  ;;  %v2719_v10 = vadd.f32 %v2718_v50, %v2717_v35 }
 0x17c   : > { %v2782_v25 = vpop.f32.mrf.mxu0  ;;  %v2720_v44 = vpop.f32.mrf.mxu1 }
 0x17d   : > { %v2783_v58 = vadd.f32 %v2782_v25, %v2781_v49  ;;  %v4146_v11 = vadd.f32 %v2719_v10, %v1667_v15  ;;  %v1683_v15 = vadd.f32 %v3923_v23, %v3958_v17 }
 0x17e   : > { %v2784_v63 = vpop.f32.mrf.mxu0  ;;  %v2721_v8 = vpop.f32.mrf.mxu1 }
 0x17f   : > { %v4149_v4 = vadd.f32 %v2783_v58, %v4032_v57  ;;  %v2722_v43 = vadd.f32 %v2721_v8, %v2720_v44 }
 0x180   : > { %v2785_v18 = vpop.f32.mrf.mxu0  ;;  %v2723_v20 = vpop.f32.mrf.mxu1 }
 0x181   : > { %v2786_v60 = vadd.f32 %v2785_v18, %v2784_v63  ;;  %v4153_v31 = vadd.f32 %v2722_v43, %v1670_v36  ;;  %v1686_v36 = vadd.f32 %v3932_v2, %v3958_v17 }
 0x182   : > { %v2787_v30 = vpop.f32.mrf.mxu0  ;;  %v2724_v9 = vpop.f32.mrf.mxu1 }
 0x183   : > { %v4156_v16 = vadd.f32 %v2786_v60, %v4040_v47  ;;  %v2725_v57 = vadd.f32 %v2724_v9, %v2723_v20 }
 0x184   : > { %v2788_v51 = vpop.f32.mrf.mxu0  ;;  %v2726_v21 = vpop.f32.mrf.mxu1 }
 0x185   : > { %v2789_v3 = vadd.f32 %v2788_v51, %v2787_v30  ;;  %v4160_v5 = vadd.f32 %v2725_v57, %v1675_v38  ;;  %v1691_v38 = vadd.f32 %v3946_v53, %v3958_v17 }
 0x186   : > { %v2790_v26 = vpop.f32.mrf.mxu0  ;;  %v2727_v28 = vpop.f32.mrf.mxu1 }
 0x187   : > { %v4163_v24 = vadd.f32 %v2789_v3, %v4049_v39  ;;  %v2728_v47 = vadd.f32 %v2727_v28, %v2726_v21 }
 0x188   : > { %v2791_v56 = vpop.f32.mrf.mxu0  ;;  %v2729_v19 = vpop.f32.mrf.mxu1 }
 0x189   : > { %v2792_v13 = vadd.f32 %v2791_v56, %v2790_v26  ;;  %v4167_v35 = vadd.f32 %v2728_v47, %v1678_v48  ;;  %v1694_v48 = vadd.f32 %v3950_v55, %v3958_v17 }
 0x18a   : > { %v2793_v7 = vpop.f32.mrf.mxu0  ;;  %v2730_v50 = vpop.f32.mrf.mxu1 }
 0x18b   : > { %v4170_v49 = vadd.f32 %v2792_v13, %v4057_v32  ;;  %v2731_v39 = vadd.f32 %v2730_v50, %v2729_v19 }
 0x18c   : > { %v2794_v10 = vpop.f32.mrf.mxu0  ;;  %v2732_v58 = vpop.f32.mrf.mxu1 }
 0x18d   : > { %v2795_v25 = vadd.f32 %v2794_v10, %v2793_v7  ;;  %v4174_v44 = vadd.f32 %v2731_v39, %v1683_v15 }
 0x18e   : > { %v2796_v27 = vpop.f32.mrf.mxu0  ;;  %v2733_v8 = vpop.f32.mrf.mxu1 }
 0x18f   : > { %v4177_v63 = vadd.f32 %v2795_v25, %v4066_v40  ;;  %v2734_v32 = vadd.f32 %v2733_v8, %v2732_v58 }
 0x190   : > { %v2797_v43 = vpop.f32.mrf.mxu0  ;;  %v2735_v60 = vpop.f32.mrf.mxu1 }
 0x191   : > { %v2798_v18 = vadd.f32 %v2797_v43, %v2796_v27  ;;  %v4181_v20 = vadd.f32 %v2734_v32, %v1686_v36 }
 0x192   : > { %v2799_v23 = vpop.f32.mrf.mxu0  ;;  %v2736_v9 = vpop.f32.mrf.mxu1 }
 0x193   : > { %v4184_v30 = vadd.f32 %v2798_v18, %v4074_v46  ;;  %v2737_v40 = vadd.f32 %v2736_v9, %v2735_v60 }
 0x194   : > { %v2800_v57 = vpop.f32.mrf.mxu0  ;;  %v2738_v3 = vpop.f32.mrf.mxu1 }
 0x195   : > { %v2801_v51 = vadd.f32 %v2800_v57, %v2799_v23  ;;  %v4188_v21 = vadd.f32 %v2737_v40, %v1691_v38 }
 0x196   : > { %v2802_v2 = vpop.f32.mrf.mxu0  ;;  %v2739_v28 = vpop.f32.mrf.mxu1 }
 0x197   : > { %4480 = vst [vmem:[#allocation3_spill] sm:$0xff] %v4188_v21  ;;  %v4191_v26 = vadd.f32 %v2801_v51, %v4080_v45  ;;  %v2740_v46 = vadd.f32 %v2739_v28, %v2738_v3 }
 0x198   : > { %v2803_v47 = vpop.f32.mrf.mxu0  ;;  %v4195_v13 = vpop.f32.mrf.mxu1 }
 0x199   : > { %v2804_v56 = vadd.f32 %v2803_v47, %v2802_v2  ;;  %v4197_v53 = vadd.f32 %v2740_v46, %v1694_v48 }
 0x19a   : > { %v2805_v19 = vpop.f32.mrf.mxu0  ;;  %v4202_v50 = vpop.f32.mrf.mxu1 }
 0x19b   : > { %4481 = vst [vmem:[#allocation4_spill] sm:$0xff] %v4197_v53  ;;  %v4200_v7 = vadd.f32 %v2804_v56, %v4086_v42 }
 0x19c   : > { %v2806_v15 = vpop.f32.mrf.mxu0  ;;  %v4204_v39 = vpop.f32.mrf.mxu1 }
 0x19d   : > { %v2807_v45 = vadd.f32 %v2806_v15, %v2805_v19 }
 0x19e   : > { %v2808_v10 = vpop.f32.mrf.mxu0  ;;  %v4209_v17 = vpop.f32.mrf.mxu1 }
 0x19f   : > { %v4207_v55 = vadd.f32 %v2807_v45, %v4090_v54 }
 0x1a0   : > { %v2809_v25 = vpop.f32.mrf.mxu0  ;;  %v4211_v27 = vpop.f32.mrf.mxu1 }
 0x1a1   : > { %v2810_v58 = vadd.f32 %v2809_v25, %v2808_v10 }
 0x1a2   : > { %v2811_v8 = vpop.f32.mrf.mxu0  ;;  %v4216_v36 = vpop.f32.mrf.mxu1 }
 0x1a3   : > { %v4214_v42 = vadd.f32 %v2810_v58, %v4097_v22 }
 0x1a4   : > { %v2812_v32 = vpop.f32.mrf.mxu0  ;;  %v4218_v18 = vpop.f32.mrf.mxu1 }
 0x1a5   : > { %v2813_v43 = vadd.f32 %v2812_v32, %v2811_v8 }
 0x1a6   : > { %v2814_v60 = vpop.f32.mrf.mxu0  ;;  %v4223_v23 = vpop.f32.mrf.mxu1 }
 0x1a7   : > { %v4221_v54 = vadd.f32 %v2813_v43, %v4104_v41 }
 0x1a8   : > { %v2815_v9 = vpop.f32.mrf.mxu0  ;;  %v4225_v40 = vpop.f32.mrf.mxu1 }
 0x1a9   : > { %v2816_v38 = vadd.f32 %v2815_v9, %v2814_v60 }
 0x1aa   : > { %v2817_v57 = vpop.f32.mrf.mxu0  ;;  %v4230_v51 = vpop.f32.mrf.mxu1 }
 0x1ab   : > { %v4228_v22 = vadd.f32 %v2816_v38, %v4111_v61 }
 0x1ac   : > { %v2818_v3 = vpop.f32.mrf.mxu0  ;;  %v4232_v28 = vpop.f32.mrf.mxu1 }
 0x1ad   : > { %v2819_v2 = vadd.f32 %v2818_v3, %v2817_v57 }
 0x1ae   : > { %v2820_v48 = vpop.f32.mrf.mxu0  ;;  %v4237_v46 = vpop.f32.mrf.mxu1 }
 0x1af   : > { %v4235_v41 = vadd.f32 %v2819_v2, %v4118_v33 }
 0x1b0   : > { %v2821_v47 = vpop.f32.mrf.mxu0  ;;  %v4239_v19 = vpop.f32.mrf.mxu1 }
 0x1b1   : > { %v2822_v56 = vadd.f32 %v2821_v47, %v2820_v48 }
 0x1b2   : > { %v2823_v15 = vpop.f32.mrf.mxu0  ;;  %v4244_v45 = vpop.f32.mrf.mxu1 }
 0x1b3   : > { %v4242_v61 = vadd.f32 %v2822_v56, %v4125_v6 }
 0x1b4   : > { %v2824_v10 = vpop.f32.mrf.mxu0  ;;  %v4246_v58 = vpop.f32.mrf.mxu1 }
 0x1b5   : > { %4482 = vst [vmem:[#allocation5_spill] sm:$0xff] %v4242_v61  ;;  %v2825_v25 = vadd.f32 %v2824_v10, %v2823_v15 }
 0x1b6   : > { %v2826_v8 = vpop.f32.mrf.mxu0  ;;  %v4251_v32 = vpop.f32.mrf.mxu1 }
 0x1b7   : > { %v4249_v33 = vadd.f32 %v2825_v25, %v4132_v37 }
 0x1b8   : > { %v2827_v43 = vpop.f32.mrf.mxu0  ;;  %v4253_v9 = vpop.f32.mrf.mxu1 }
 0x1b9   : > { %v2828_v60 = vadd.f32 %v2827_v43, %v2826_v8 }
 0x1ba   : > { %v2829_v38 = vpop.f32.mrf.mxu0  ;;  %v4258_v57 = vpop.f32.mrf.mxu1 }
 0x1bb   : > { %v4256_v6 = vadd.f32 %v2828_v60, %v4139_v59 }
 0x1bc   : > { %v2830_v3 = vpop.f32.mrf.mxu0  ;;  %v4260_v48 = vpop.f32.mrf.mxu1 }
 0x1bd   : > { %4483 = vst [vmem:[#allocation6_spill] sm:$0xff] %v4256_v6  ;;  %v2831_v2 = vadd.f32 %v2830_v3, %v2829_v38 }
 0x1be   : > { %v2832_v47 = vpop.f32.mrf.mxu0  ;;  %v4265_v56 = vpop.f32.mrf.mxu1 }
 0x1bf   : > { %v4263_v37 = vadd.f32 %v2831_v2, %v4146_v11 }
 0x1c0   : > { %v2833_v15 = vpop.f32.mrf.mxu0  ;;  %v4267_v25 = vpop.f32.mrf.mxu1 }
 0x1c1   : > { %4484 = vst [vmem:[#allocation7_spill] sm:$0xff] %v4263_v37  ;;  %v2834_v10 = vadd.f32 %v2833_v15, %v2832_v47 }
 0x1c2   : > { %v2835_v8 = vpop.f32.mrf.mxu0  ;;  %v4272_v43 = vpop.f32.mrf.mxu1 }
 0x1c3   : > { %v4270_v59 = vadd.f32 %v2834_v10, %v4153_v31 }
 0x1c4   : > { %v2836_v60 = vpop.f32.mrf.mxu0  ;;  %v4274_v3 = vpop.f32.mrf.mxu1 }
 0x1c5   : > { %4485 = vst [vmem:[#allocation8_spill] sm:$0xff] %v4270_v59  ;;  %v2837_v38 = vadd.f32 %v2836_v60, %v2835_v8 }
 0x1c6   : > { %v2838_v53 = vpop.f32.mrf.mxu0  ;;  %v4279_v2 = vpop.f32.mrf.mxu1 }
 0x1c7   : > { %v4277_v11 = vadd.f32 %v2837_v38, %v4160_v5 }
 0x1c8   : > { %v2839_v21 = vpop.f32.mrf.mxu0  ;;  %v4281_v15 = vpop.f32.mrf.mxu1 }
 0x1c9   : > { %4486 = vst [vmem:[#allocation9_spill] sm:$0xff] %v4277_v11  ;;  %v2840_v47 = vadd.f32 %v2839_v21, %v2838_v53 }
 0x1ca   : > { %v2841_v37 = vpop.f32.mrf.mxu0  ;;  %v4286_v10 = vpop.f32.mrf.mxu1 }
 0x1cb   : > { %v4284_v31 = vadd.f32 %v2840_v47, %v4167_v35 }
 0x1cc   : > { %v2842_v59 = vpop.f32.mrf.mxu0  ;;  %v4288_v60 = vpop.f32.mrf.mxu1 }
 0x1cd   : > { %v2843_v8 = vadd.f32 %v2842_v59, %v2841_v37 }
 0x1ce   : > { %v2844_v61 = vpop.f32.mrf.mxu0  ;;  %v4293_v38 = vpop.f32.mrf.mxu1 }
 0x1cf   : > { %v4291_v5 = vadd.f32 %v2843_v8, %v4174_v44  ;;  %v2877_v44 = vadd.f32 %v4216_v36, %v4211_v27 }
 0x1d0   : > { %v2845_v11 = vpop.f32.mrf.mxu0  ;;  %v4295_v53 = vpop.f32.mrf.mxu1 }
 0x1d1   : > { %4487 = vst [vmem:[#allocation10_spill] sm:$0xff] %v4291_v5  ;;  %v2846_v21 = vadd.f32 %v2845_v11, %v2844_v61  ;;  %v2871_v61 = vadd.f32 %v4202_v50, %v4195_v13  ;;  %v2874_v50 = vadd.f32 %v4209_v17, %v4204_v39  ;;  %v2883_v39 = vadd.f32 %v4230_v51, %v4225_v40 }
 0x1d2   : > { %v4297_v6 = vpop.f32.mrf.mxu0  ;;  %v4302_v47 = vpop.f32.mrf.mxu1  ;;  %v2886_v51 = vadd.f32 %v4237_v46, %v4232_v28  ;;  %v2895_v28 = vadd.f32 %v4258_v57, %v4253_v9  ;;  %v2898_v57 = vadd.f32 %v4265_v56, %v4260_v48  ;;  %v2907_v56 = vadd.f32 %v4286_v10, %v4281_v15 }
 0x1d3   : > { %v4300_v35 = vadd.f32 %v2846_v21, %v4181_v20  ;;  %v2880_v20 = vadd.f32 %v4223_v23, %v4218_v18  ;;  %v2054_v18 = vadd.f32 %v2871_v61, %v4093_v34  ;;  %v2889_v23 = vadd.f32 %v4244_v45, %v4239_v19 }
 0x1d4   : > { %v4304_v37 = vpop.f32.mrf.mxu0  ;;  %v4308_v59 = vpop.f32.mrf.mxu1  ;;  %v2057_v19 = vadd.f32 %v2874_v50, %v4100_v14  ;;  %v2070_v14 = vadd.f32 %v2883_v39, %v4121_v29  ;;  %v2073_v29 = vadd.f32 %v2886_v51, %v4128_v62  ;;  %v2086_v39 = vadd.f32 %v2895_v28, %v4149_v4 }
 0x1d5   : > { %4488 = vst [vmem:[#allocation11_spill] sm:$0xff] %v4300_v35  ;;  %4489 = vst [vmem:[#allocation12_spill] sm:$0xff] %v4304_v37  ;;  %v2062_v35 = vadd.f32 %v2877_v44, %v4107_v1  ;;  %v2910_v15 = vadd.f32 %v4293_v38, %v4288_v60 }
 0x1d6   : > { %v4310_v8 = vpop.f32.mrf.mxu0  ;;  %v4314_v11 = vpop.f32.mrf.mxu1 }
 0x1d7   : > { %4490 = vst [vmem:[#allocation13_spill] sm:$0xff] %v4310_v8  ;;  %v2065_v8 = vadd.f32 %v2880_v20, %v4114_v52  ;;  %v2078_v20 = vadd.f32 %v2889_v23, %v4135_v12 }
 0x1d8   : > { %v4316_v5 = vpop.f32.mrf.mxu0  ;;  %v4320_v21 = vpop.f32.mrf.mxu1 }
 0x1d9   : > { %4491 = vst [vmem:[#allocation14_spill] sm:$0xff] %v4316_v5 }
 0x1da   : > { %v3007_v13 = vpop.f32.mrf.mxu0  ;;  %v4332_v36 = vpop.f32.mrf.mxu1 }
 0x1db   : > { %v2223_v27 = vadd.f32 %v3007_v13, %v2062_v35  ;;  %v2892_v35 = vadd.f32 %v4251_v32, %v4246_v58  ;;  %v2901_v58 = vadd.f32 %v4272_v43, %v4267_v25  ;;  %v2904_v25 = vadd.f32 %v4279_v2, %v4274_v3 }
 0x1dc   : > { %v2214_v1 = vpop.f32.mrf.mxu0  ;;  %v4339_v5 = vpop.f32.mrf.mxu1  ;;  %v2913_v2 = vadd.f32 %v4302_v47, %v4295_v53  ;;  %v2916_v47 = vadd.f32 %v4314_v11, %v4308_v59  ;;  %v2919_v60 = vadd.f32 %v4332_v36, %v4320_v21 }
 0x1dd   : > { %2344 = vst.msk [vmem:[%s4328_s30 + $0x10] sm:$0xff] %vm2341_vm0, %v2223_v27  ;;  %v2215_v44 = vadd.f32 %v2214_v1, %v2054_v18  ;;  %v2081_v12 = vadd.f32 %v2892_v35, %v4142_v0  ;;  %v2094_v0 = vadd.f32 %v2901_v58, %v4163_v24  ;;  %v2097_v24 = vadd.f32 %v2904_v25, %v4170_v49 }
 0x1de   : > { %v3008_v37 = vpop.f32.mrf.mxu0  ;;  %v4346_v34 = vpop.f32.mrf.mxu1  ;;  %v2089_v35 = vadd.f32 %v2898_v57, %v4156_v16  ;;  %v2110_v49 = vadd.f32 %v2913_v2, %v4191_v26  ;;  %v2102_v16 = vadd.f32 %v2907_v56, %v4177_v63  ;;  %v2113_v26 = vadd.f32 %v2916_v47, %v4200_v7 }
 0x1df   : > { %2342 = vst.msk [vmem:[%s4328_s30] sm:$0xff] %vm2341_vm0, %v2215_v44  ;;  %v2226_v17 = vadd.f32 %v3008_v37, %v2065_v8  ;;  %v2105_v63 = vadd.f32 %v2910_v15, %v4184_v30  ;;  %v2922_v21 = vadd.f32 %v4346_v34, %v4339_v5  ;;  %v2118_v30 = vadd.f32 %v2919_v60, %v4207_v55 }
 0x1e0   : > { %v2217_v45 = vpop.f32.mrf.mxu0  ;;  %v2923_v52 = vpop.f32.mrf.mxu1 }
 0x1e1   : > { %2345 = vst.msk [vmem:[%s4328_s30 + $0x18] sm:$0xff] %vm2341_vm0, %v2226_v17  ;;  %v2218_v61 = vadd.f32 %v2217_v45, %v2057_v19 }
 0x1e2   : > { %v3011_v40 = vpop.f32.mrf.mxu0  ;;  %v2924_v8 = vpop.f32.mrf.mxu1 }
 0x1e3   : > { %2343 = vst.msk [vmem:[%s4328_s30 + $0x8] sm:$0xff] %vm2341_vm0, %v2218_v61  ;;  %v2239_v37 = vadd.f32 %v3011_v40, %v2078_v20  ;;  %v2925_v59 = vadd.f32 %v2924_v8, %v2923_v52 }
 0x1e4   : > { %v2230_v13 = vpop.f32.mrf.mxu0  ;;  %v2926_v50 = vpop.f32.mrf.mxu1 }
 0x1e5   : > { %2348 = vst.msk [vmem:[%s4328_s30 + $0x30] sm:$0xff] %vm2341_vm0, %v2239_v37  ;;  %v2231_v32 = vadd.f32 %v2230_v13, %v2070_v14  ;;  %v2126_v7 = vadd.f32 %v2925_v59, %v4221_v54 }
 0x1e6   : > { %v3012_v27 = vpop.f32.mrf.mxu0  ;;  %v2927_v18 = vpop.f32.mrf.mxu1 }
 0x1e7   : > { %2346 = vst.msk [vmem:[%s4328_s30 + $0x20] sm:$0xff] %vm2341_vm0, %v2231_v32  ;;  %v2242_v46 = vadd.f32 %v3012_v27, %v2081_v12  ;;  %v2928_v52 = vadd.f32 %v2927_v18, %v2926_v50 }
 0x1e8   : > { %v2233_v1 = vpop.f32.mrf.mxu0  ;;  %v4373_v23 = vpop.f32.mrf.mxu1 }
 0x1e9   : > { %2349 = vst.msk [vmem:[%s4328_s30 + $0x38] sm:$0xff] %vm2341_vm0, %v2242_v46  ;;  %v2234_v43 = vadd.f32 %v2233_v1, %v2073_v29  ;;  %v2129_v54 = vadd.f32 %v2928_v52, %v4228_v22 }
 0x1ea   : > { %v3015_v9 = vpop.f32.mrf.mxu0  ;;  %v2930_v62 = vpop.f32.mrf.mxu1 }
 0x1eb   : > { %2347 = vst.msk [vmem:[%s4328_s30 + $0x28] sm:$0xff] %vm2341_vm0, %v2234_v43  ;;  %v2255_v44 = vadd.f32 %v3015_v9, %v2094_v0  ;;  %v2931_v25 = vadd.f32 %v2930_v62, %v4373_v23  ;;  %v2121_v43 = vadd.f32 %v2922_v21, %v4214_v42 }
 0x1ec   : > { %v2246_v3 = vpop.f32.mrf.mxu0  ;;  %v4385_v19 = vpop.f32.mrf.mxu1 }
 0x1ed   : > { %2352 = vst.msk [vmem:[%s4328_s30 + $0x50] sm:$0xff] %vm2341_vm0, %v2255_v44  ;;  %v2247_v17 = vadd.f32 %v2246_v3, %v2086_v39  ;;  %v2134_v3 = vadd.f32 %v2931_v25, %v4235_v41 }
 0x1ee   : > { %v3016_v48 = vpop.f32.mrf.mxu0  ;;  %v2933_v4 = vpop.f32.mrf.mxu1 }
 0x1ef   : > { %2350 = vst.msk [vmem:[%s4328_s30 + $0x40] sm:$0xff] %vm2341_vm0, %v2247_v17  ;;  %v2258_v45 = vadd.f32 %v3016_v48, %v2097_v24  ;;  %v2934_v39 = vadd.f32 %v2933_v4, %v4385_v19  ;;  %v4492_v48 = vld [vmem:[#allocation6_spill] sm:$0xff] }
 0x1f0   : > { %v2249_v53 = vpop.f32.mrf.mxu0  ;;  %v2935_v20 = vpop.f32.mrf.mxu1 }
 0x1f1   : > { %2353 = vst.msk [vmem:[%s4328_s30 + $0x58] sm:$0xff] %vm2341_vm0, %v2258_v45  ;;  %v2250_v61 = vadd.f32 %v2249_v53, %v2089_v35  ;;  %v4493_v35 = vld [vmem:[#allocation5_spill] sm:$0xff] }
 0x1f2   : > { %v3019_v40 = vpop.f32.mrf.mxu0  ;;  %v2936_v51 = vpop.f32.mrf.mxu1  ;;  %v2137_v53 = vadd.f32 %v2934_v39, %v4493_v35 }
 0x1f3   : > { %2351 = vst.msk [vmem:[%s4328_s30 + $0x48] sm:$0xff] %vm2341_vm0, %v2250_v61  ;;  %v2271_v10 = vadd.f32 %v3019_v40, %v2110_v49  ;;  %v2937_v50 = vadd.f32 %v2936_v51, %v2935_v20  ;;  %v4494_v49 = vld [vmem:[#allocation9_spill] sm:$0xff] }
 0x1f4   : > { %v2262_v37 = vpop.f32.mrf.mxu0  ;;  %v2938_v14 = vpop.f32.mrf.mxu1 }
 0x1f5   : > { %2356 = vst.msk [vmem:[%s4328_s30 + $0x70] sm:$0xff] %vm2341_vm0, %v2271_v10  ;;  %v2263_v11 = vadd.f32 %v2262_v37, %v2102_v16  ;;  %v2142_v44 = vadd.f32 %v2937_v50, %v4249_v33  ;;  %v4495_v37 = vld [vmem:[#allocation7_spill] sm:$0xff] }
 0x1f6   : > { %v3020_v13 = vpop.f32.mrf.mxu0  ;;  %v2939_v58 = vpop.f32.mrf.mxu1  ;;  %v4499_v50 = vld [vmem:[#allocation3_spill] sm:$0xff] }
 0x1f7   : > { %2354 = vst.msk [vmem:[%s4328_s30 + $0x60] sm:$0xff] %vm2341_vm0, %v2263_v11  ;;  %v2274_v38 = vadd.f32 %v3020_v13, %v2113_v26  ;;  %v2940_v0 = vadd.f32 %v2939_v58, %v2938_v14 }
 0x1f8   : > { %v2265_v32 = vpop.f32.mrf.mxu0  ;;  %v2941_v12 = vpop.f32.mrf.mxu1 }
 0x1f9   : > { %2357 = vst.msk [vmem:[%s4328_s30 + $0x78] sm:$0xff] %vm2341_vm0, %v2274_v38  ;;  %v2266_v8 = vadd.f32 %v2265_v32, %v2105_v63  ;;  %v2145_v56 = vadd.f32 %v2940_v0, %v4492_v48  ;;  %v4496_v32 = vld [vmem:[#allocation8_spill] sm:$0xff] }
 0x1fa   : > { %v3023_v27 = vpop.f32.mrf.mxu0  ;;  %v2942_v28 = vpop.f32.mrf.mxu1 }
 0x1fb   : > { %2355 = vst.msk [vmem:[%s4328_s30 + $0x68] sm:$0xff] %vm2341_vm0, %v2266_v8  ;;  %v2287_v36 = vadd.f32 %v3023_v27, %v2126_v7  ;;  %v2943_v45 = vadd.f32 %v2942_v28, %v2941_v12  ;;  %v4497_v8 = vld [vmem:[#allocation12_spill] sm:$0xff] }
 0x1fc   : > { %v2278_v46 = vpop.f32.mrf.mxu0  ;;  %v2944_v29 = vpop.f32.mrf.mxu1  ;;  %v2849_v12 = vadd.f32 %v4497_v8, %v4297_v6 }
 0x1fd   : > { %2360 = vst.msk [vmem:[%s4328_s30 + $0x90] sm:$0xff] %vm2341_vm0, %v2287_v36  ;;  %v2279_v18 = vadd.f32 %v2278_v46, %v2118_v30  ;;  %v2150_v59 = vadd.f32 %v2943_v45, %v4495_v37  ;;  %v4498_v30 = vld [vmem:[#allocation10_spill] sm:$0xff] }
 0x1fe   : > { %v3024_v1 = vpop.f32.mrf.mxu0  ;;  %v2945_v34 = vpop.f32.mrf.mxu1 }
 0x1ff   : > { %2358 = vst.msk [vmem:[%s4328_s30 + $0x80] sm:$0xff] %vm2341_vm0, %v2279_v18  ;;  %v2290_v5 = vadd.f32 %v3024_v1, %v2129_v54  ;;  %v2946_v10 = vadd.f32 %v2945_v34, %v2944_v29  ;;  %v2013_v18 = vadd.f32 %v2849_v12, %v4499_v50  ;;  %v4500_v29 = vld [vmem:[#allocation13_spill] sm:$0xff]  ;;  %v4501_v54 = vld [vmem:[#allocation14_spill] sm:$0xff] }
 0x200   : > { %v2281_v55 = vpop.f32.mrf.mxu0  ;;  %v2947_v57 = vpop.f32.mrf.mxu1  ;;  %v2852_v1 = vadd.f32 %v4501_v54, %v4500_v29 }
 0x201   : > { %2361 = vst.msk [vmem:[%s4328_s30 + $0x98] sm:$0xff] %vm2341_vm0, %v2290_v5  ;;  %v2282_v9 = vadd.f32 %v2281_v55, %v2121_v43  ;;  %v2153_v52 = vadd.f32 %v2946_v10, %v4496_v32 }
 0x202   : > { %v3027_v22 = vpop.f32.mrf.mxu0  ;;  %v2948_v62 = vpop.f32.mrf.mxu1 }
 0x203   : > { %2359 = vst.msk [vmem:[%s4328_s30 + $0x88] sm:$0xff] %vm2341_vm0, %v2282_v9  ;;  %v2303_v23 = vadd.f32 %v3027_v22, %v2142_v44  ;;  %v2949_v2 = vadd.f32 %v2948_v62, %v2947_v57  ;;  %v4502_v9 = vld [vmem:[#allocation11_spill] sm:$0xff]  ;;  %v4503_v44 = vld [vmem:[#allocation4_spill] sm:$0xff] }
 0x204   : > { %v2294_v42 = vpop.f32.mrf.mxu0  ;;  %v2950_v24 = vpop.f32.mrf.mxu1  ;;  %v2016_v22 = vadd.f32 %v2852_v1, %v4503_v44 }
 0x205   : > { %2364 = vst.msk [vmem:[%s4328_s30 + $0xb0] sm:$0xff] %vm2341_vm0, %v2303_v23  ;;  %v2295_v17 = vadd.f32 %v2294_v42, %v2134_v3  ;;  %v2158_v40 = vadd.f32 %v2949_v2, %v4494_v49 }
 0x206   : > { %v3028_v33 = vpop.f32.mrf.mxu0  ;;  %v2951_v4 = vpop.f32.mrf.mxu1 }
 0x207   : > { %2362 = vst.msk [vmem:[%s4328_s30 + $0xa0] sm:$0xff] %vm2341_vm0, %v2295_v17  ;;  %v2306_v19 = vadd.f32 %v3028_v33, %v2145_v56  ;;  %v2952_v41 = vadd.f32 %v2951_v4, %v2950_v24 }
 0x208   : > { %v2297_v47 = vpop.f32.mrf.mxu0  ;;  %v2953_v20 = vpop.f32.mrf.mxu1 }
 0x209   : > { %2365 = vst.msk [vmem:[%s4328_s30 + $0xb8] sm:$0xff] %vm2341_vm0, %v2306_v19  ;;  %v2298_v61 = vadd.f32 %v2297_v47, %v2137_v53  ;;  %v2161_v13 = vadd.f32 %v2952_v41, %v4284_v31 }
 0x20a   : > { %v3031_v15 = vpop.f32.mrf.mxu0  ;;  %v2954_v16 = vpop.f32.mrf.mxu1 }
 0x20b   : > { %2363 = vst.msk [vmem:[%s4328_s30 + $0xa8] sm:$0xff] %vm2341_vm0, %v2298_v61  ;;  %v2319_v51 = vadd.f32 %v3031_v15, %v2158_v40  ;;  %v2955_v38 = vadd.f32 %v2954_v16, %v2953_v20 }
 0x20c   : > { %v2310_v11 = vpop.f32.mrf.mxu0  ;;  %v2956_v26 = vpop.f32.mrf.mxu1 }
 0x20d   : > { %2368 = vst.msk [vmem:[%s4328_s30 + $0xd0] sm:$0xff] %vm2341_vm0, %v2319_v51  ;;  %v2311_v14 = vadd.f32 %v2310_v11, %v2150_v59  ;;  %v2166_v46 = vadd.f32 %v2955_v38, %v4498_v30 }
 0x20e   : > { %v3032_v60 = vpop.f32.mrf.mxu0  ;;  %v2957_v63 = vpop.f32.mrf.mxu1 }
 0x20f   : > { %2366 = vst.msk [vmem:[%s4328_s30 + $0xc0] sm:$0xff] %vm2341_vm0, %v2311_v14  ;;  %v2322_v58 = vadd.f32 %v3032_v60, %v2161_v13  ;;  %v2958_v28 = vadd.f32 %v2957_v63, %v2956_v26 }
 0x210   : > { %v2313_v7 = vpop.f32.mrf.mxu0  ;;  %v2959_v21 = vpop.f32.mrf.mxu1 }
 0x211   : > { %2369 = vst.msk [vmem:[%s4328_s30 + $0xd8] sm:$0xff] %vm2341_vm0, %v2322_v58  ;;  %v2314_v27 = vadd.f32 %v2313_v7, %v2153_v52  ;;  %v2169_v57 = vadd.f32 %v2958_v28, %v4502_v9 }
 0x212   : > { %v3035_v36 = vpop.f32.mrf.mxu0  ;;  %v2960_v31 = vpop.f32.mrf.mxu1 }
 0x213   : > { %2367 = vst.msk [vmem:[%s4328_s30 + $0xc8] sm:$0xff] %vm2341_vm0, %v2314_v27  ;;  %v2961_v6 = vadd.f32 %v2960_v31, %v2959_v21 }
 0x214   : > { %v2326_v25 = vpop.f32.mrf.mxu0  ;;  %v2962_v34 = vpop.f32.mrf.mxu1 }
 0x215   : > { %v2327_v5 = vadd.f32 %v2326_v25, %v2166_v46  ;;  %v2174_v43 = vadd.f32 %v2961_v6, %v2013_v18 }
 0x216   : > { %v3036_v55 = vpop.f32.mrf.mxu0  ;;  %v2963_v0 = vpop.f32.mrf.mxu1 }
 0x217   : > { %2370 = vst.msk [vmem:[%s4328_s30 + $0xe0] sm:$0xff] %vm2341_vm0, %v2327_v5  ;;  %v2335_v39 = vadd.f32 %v3035_v36, %v2174_v43  ;;  %v2964_v23 = vadd.f32 %v2963_v0, %v2962_v34 }
 0x218   : > { %v2329_v62 = vpop.f32.mrf.mxu0 }
 0x219   : > { %v2330_v3 = vadd.f32 %v2329_v62, %v2169_v57  ;;  %2372 = vst.msk [vmem:[%s4328_s30 + $0xf0] sm:$0xff] %vm2341_vm0, %v2335_v39  ;;  %v2177_v42 = vadd.f32 %v2964_v23, %v2016_v22 }
 0x21b   : > { %2371 = vst.msk [vmem:[%s4328_s30 + $0xe8] sm:$0xff] %vm2341_vm0, %v2330_v3  ;;  %v2338_v2 = vadd.f32 %v3036_v55, %v2177_v42 }
 0x21d   : > { %2373 = vst.msk [vmem:[%s4328_s30 + $0xf8] sm:$0xff] %vm2341_vm0, %v2338_v2 }
 0x21e PF: > { %s15_s18 = sadd.s32 1, %s3143_s18  }
 0x21f   : > { %p12_p4 = scmp.ge.s32.totalorder %s15_s18, 4  }
 0x221   :  { %14 = sbr.rel (!%p12_p4) target bundleno = 1 (0x1), region = 71 }

// kernel: filter_net_forward.2
= control target key start
LH: loop header
LB: loop body
LE: loop exit
PB: predicated region body
PF: predicated region fallthrough
CT: control target
= control target key end

     0   :  { %s3768_s24 = smov 0   ;;  %s4809_s0 = inlined_call_operand.vmem [shape: bf16[2,256,36], index: 0, kind: input, shape index: {}]   ;;  %s4810_s1 = inlined_call_operand.vmem [shape: bf16[36,128], index: 1, kind: input, shape index: {}]   ;;  %s4811_s2 = inlined_call_operand.vmem [shape: f32[1,128], index: 2, kind: input, shape index: {}]   ;;  %s4812_s3 = inlined_call_operand.vmem [shape: bf16[1152,128], index: 3, kind: input, shape index: {}]   ;;  %s4813_s4 = inlined_call_operand.vmem [shape: f32[1,128], index: 4, kind: input, shape index: {}]   ;;  %s4814_s5 = inlined_call_operand.vmem [shape: f32[2,16,16,128], index: 5, kind: output, shape index: {0}]   ;;  %s4815_s6 = inlined_call_operand.vmem [shape: f32[2,1,128], index: 6, kind: output, shape index: {1}]   ;;  %s4816_s7 = inlined_call_operand.vmem [shape: f32[2,1,128], index: 7, kind: output, shape index: {2}]  }
   0x1 LB: > { %s2900_s25 = sadd.s32 4294967295, %s3723_s24   ;;  %p2904_p0 = scmp.ge.s32.totalorder %s3723_s24, 1  ;;  %s3723_s24 = sphi %s3768_s24, %s18_s24  }
   0x2   : > { %p242_p1 = scmp.lt.s32.totalorder %s3723_s24, 3 }
   0x4   : > { %p243_p2 = pnand %p2904_p0, %p242_p1 }
   0x6   : > { %246 = sbr.rel (%p243_p2) target bundleno = 773 (0x305), region = 40 }
   0xb   : > { %v3625_v0 = vld [vmem:[%s4810_s1 + $0x10] ss:$0 sps:$4 sm:$0x33]   ;;  %vm485_vm0 = vcmask 1041408   ;;  %v3626_v1 = vld [vmem:[%s4810_s1 + $0x8] sm:$0xff]   ;;  %p280_p3 = scmp.lt.s32.totalorder %s2900_s25, 1 }
   0xc   : > { %3615 = vmatprep.subr.msk.bf16.mxu0 %vm485_vm0, %v3625_v0  ;;  %v487_v2 = vsel %vm485_vm0, %v3625_v0, 0  ;;  %v3627_v3 = vld [vmem:[%s4810_s1] sm:$0xff]   ;;  %vm436_vm1 = vcmask 293888   ;;  %v3644_v5 = vld [vmem:[%s4812_s3 + $0xf8] sm:$0xff]   ;;  %v3646_v9 = vld [vmem:[%s4812_s3 + $0xf0] sm:$0xff]   ;;  %v3725_v42 = vmov 0.0  }
   0xd   : > { %3514 = vmatpush3.bf16.msra.mxu0 %v487_v2  ;;  %s4832_s25 = smov (!%p280_p3, %s2900_s25), 1  ;;  %v3645_v6 = vld [vmem:[%s4812_s3 + $0xb8] sm:$0xff]   ;;  %v3647_v12 = vld [vmem:[%s4812_s3 + $0xb0] sm:$0xff]   ;;  %v3648_v14 = vld [vmem:[%s4812_s3 + $0xe8] sm:$0xff]   ;;  %752 = vst [vmem:[#allocation2 + $0x30] sm:$0xff] %v3725_v42  ;;  %v3726_v52 = vmov 0  }
   0xe   : > { %3515 = vmatprep.subr.bf16.mxu0 %v3626_v1  ;;  %s3020_s9 = sshll.u32 %s4832_s25, 7  ;;  %v3649_v16 = vld [vmem:[%s4812_s3 + $0xa8] sm:$0xff]   ;;  %v3650_v17 = vld [vmem:[%s4812_s3 + $0xe0] sm:$0xff]   ;;  %v3652_v19 = vld [vmem:[%s4812_s3 + $0x78] sm:$0xff]   ;;  %753 = vst [vmem:[#allocation2 + $0x38] sm:$0xff] %v3725_v42  ;;  %v929_v53 = vrot.slane %v3726_v52, 1  ;;  %s292_s21 = scalar_lea.vmem %s4815_s6, %s4832_s25 }
   0xf   : > { %s3791_s12 = scalar_lea.vmem %s4809_s0, %s3020_s9  ;;  %v3651_v18 = vld [vmem:[%s4812_s3 + $0xa0] sm:$0xff]   ;;  %v3653_v20 = vld [vmem:[%s4812_s3 + $0x38] sm:$0xff]   ;;  %3041 = vmatprep.subr.bf16.mxu1 %v3652_v19  ;;  %v3656_v24 = vld [vmem:[%s4812_s3 + $0x70] sm:$0xff]   ;;  %746 = vst [vmem:[#allocation2] sm:$0xff] %v3725_v42  ;;  %vm923_vm2 = vsmask.f32 7424  ;;  %s295_s26 = scalar_lea.vmem %s4816_s7, %s4832_s25 }
  0x10   : > { %v3628_v4 = vld [vmem:[%s3791_s12] sm:$0xff]   ;;  %v3629_v7 = vld [vmem:[%s3791_s12 + $0x8] sm:$0xff]   ;;  %v3630_v8 = vld [vmem:[%s3791_s12 + $0x10] sm:$0xff]   ;;  %3042 = vmatpush3.bf16.msra.mxu1 %v3653_v20  ;;  %748 = vst [vmem:[#allocation2 + $0x10] sm:$0x3] %v3725_v42  ;;  %v3727_v61 = vmov 0.0|0.0  }
  0x11   : > { %3516 = vmatpush3.bf16.msra.mxu0 %v3626_v1  ;;  %3519 = vmatprep.mubr.msk.bf16.mxu0 %vm436_vm1, %v3628_v4  ;;  %v3631_v10 = vld [vmem:[%s3791_s12 + $0x18] sm:$0xff]   ;;  %v3632_v11 = vld [vmem:[%s3791_s12 + $0x20] sm:$0xff]   ;;  %v3633_v13 = vld [vmem:[%s3791_s12 + $0x28] sm:$0xff]   ;;  %749 = vst [vmem:[#allocation2 + $0x18] sm:$0xff] %v3725_v42  ;;  %v1165_v62 = vrot.slane %v3727_v61, 1  ;;  %vm1164_vm3 = vcmask 1046528  }
  0x12   : > { %3517 = vmatprep.subr.bf16.mxu0 %v3627_v3  ;;  %v3634_v15 = vld [vmem:[%s3791_s12 + $0x30] sm:$0xff]   ;;  %v3654_v21 = vld [vmem:[%s4812_s3 + $0xd8] sm:$0xff]   ;;  %v3636_v25 = vld [vmem:[%s3791_s12 + $0x40] sm:$0xff]   ;;  %3043 = vmatprep.subr.bf16.mxu1 %v3656_v24  ;;  %750 = vst [vmem:[#allocation2 + $0x20] sm:$0xff] %v3725_v42  ;;  %s3021_s16 = sshll.u32 %s4832_s25, 8 }
  0x13   : > { %v3655_v22 = vld [vmem:[%s4812_s3 + $0x98] sm:$0xff]   ;;  %v3657_v26 = vld [vmem:[%s4812_s3 + $0x30] sm:$0xff]   ;;  %v3658_v27 = vld [vmem:[%s4812_s3 + $0x68] sm:$0xff]   ;;  %751 = vst [vmem:[#allocation2 + $0x28] sm:$0x3] %v3725_v42  ;;  %s4678_s18 = scalar_lea.vmem %s4814_s5, %s3021_s16 }
  0x14   : > { %v3635_v23 = vld [vmem:[%s3791_s12 + $0x38] sm:$0xff]   ;;  %v3659_v28 = vld [vmem:[%s4812_s3 + $0x28] sm:$0xff]   ;;  %3044 = vmatpush3.bf16.msra.mxu1 %v3657_v26  ;;  %v3660_v29 = vld [vmem:[%s4812_s3 + $0xd0] sm:$0xff]   ;;  %754 = vst [vmem:[#allocation2 + $0x40] sm:$0x3] %v3725_v42 }
  0x15   : > { %3518 = vmatpush3.bf16.msra.mxu0 %v3627_v3  ;;  %3045 = vmatprep.subr.bf16.mxu1 %v3658_v27  ;;  %v3661_v30 = vld [vmem:[%s4812_s3 + $0x90] sm:$0xff]   ;;  %v3637_v31 = vld [vmem:[%s3791_s12 + $0x48] sm:$0xff]   ;;  %v3639_v33 = vld [vmem:[%s3791_s12 + $0x58] sm:$0xff]   ;;  %755 = vst [vmem:[#allocation2 + $0x48] sm:$0xff] %v3725_v42 }
  0x16   : > { %3153 = vmatprep.subr.bf16.mxu0 %v3644_v5  ;;  %v3638_v32 = vld [vmem:[%s3791_s12 + $0x50] sm:$0xff]   ;;  %v3640_v34 = vld [vmem:[%s3791_s12 + $0x60] sm:$0xff]   ;;  %v3641_v35 = vld [vmem:[%s3791_s12 + $0x68] sm:$0xff]   ;;  %756 = vst [vmem:[#allocation2 + $0x50] sm:$0xff] %v3725_v42 }
  0x17   : > { %v3642_v36 = vld [vmem:[%s3791_s12 + $0x70] sm:$0xff]   ;;  %v3643_v37 = vld [vmem:[%s3791_s12 + $0x78] sm:$0xff]   ;;  %v3662_v38 = vld [vmem:[%s4812_s3 + $0x60] sm:$0xff]   ;;  %757 = vst [vmem:[#allocation2 + $0x58] sm:$0x3] %v3725_v42 }
  0x18   : > { %3520 = vmatmul.mubr.msk.bf16.vlgmr.msra.gmra.mxu0 %vm436_vm1, %v3629_v7  ;;  %3046 = vmatpush3.bf16.msra.mxu1 %v3659_v28  ;;  %v3663_v39 = vld [vmem:[%s4812_s3 + $0x20] sm:$0xff]   ;;  %v3664_v40 = vld [vmem:[%s4812_s3 + $0x58] sm:$0xff]   ;;  %758 = vst [vmem:[#allocation2 + $0x60] sm:$0xff] %v3725_v42  ;;  %759 = vst [vmem:[#allocation2 + $0x68] sm:$0xff] %v3725_v42 }
  0x19   : > { %3523 = vmatprep.mubr.msk.bf16.mxu0 %vm436_vm1, %v3630_v8  ;;  %3154 = vmatpush3.bf16.msra.mxu0 %v3645_v6  ;;  %v3665_v41 = vld [vmem:[%s4812_s3 + $0x18] sm:$0xff]   ;;  %760 = vst [vmem:[#allocation2 + $0x70] sm:$0x3] %v3725_v42  ;;  %761 = vst [vmem:[#allocation2 + $0x78] sm:$0xff] %v3725_v42  ;;  %v3668_v43 = vld [vmem:[%s4812_s3 + $0x50] sm:$0xff]  }
  0x1a   : > { %3155 = vmatprep.subr.bf16.mxu0 %v3646_v9  ;;  %3047 = vmatprep.subr.bf16.mxu1 %v3662_v38  ;;  %762 = vst [vmem:[#allocation2 + $0x80] sm:$0xff] %v3725_v42  ;;  %763 = vst [vmem:[#allocation2 + $0x88] sm:$0x3] %v3725_v42  ;;  %v3669_v44 = vld [vmem:[%s4812_s3 + $0x10] sm:$0xff]   ;;  %v3670_v45 = vld [vmem:[%s4812_s3 + $0x48] sm:$0xff]  }
  0x1b   : > { %764 = vst [vmem:[#allocation2 + $0x90] sm:$0xff] %v3725_v42  ;;  %765 = vst [vmem:[#allocation2 + $0x98] sm:$0xff] %v3725_v42  ;;  %v3666_v46 = vld [vmem:[%s4812_s3 + $0xc8] sm:$0xff]   ;;  %v835_v49 = vld [vmem:[#allocation2 + $0x10] sm:$0x3] }
  0x1c   : > { %3048 = vmatpush3.bf16.msra.mxu1 %v3663_v39  ;;  %766 = vst [vmem:[#allocation2 + $0xa0] sm:$0x3] %v3725_v42  ;;  %767 = vst [vmem:[#allocation2 + $0xa8] sm:$0xff] %v3725_v42  ;;  %v3667_v47 = vld [vmem:[%s4812_s3 + $0x88] sm:$0xff]   ;;  %v903_v50 = vpack.c.bf16 %v835_v49, %v835_v49  ;;  %v3674_v51 = vld [vmem:[%s4812_s3 + $0x40] sm:$0xff]  }
  0x1d   : > { %3156 = vmatpush3.bf16.msra.mxu0 %v3647_v12  ;;  %768 = vst [vmem:[#allocation2 + $0xb0] sm:$0xff] %v3725_v42  ;;  %769 = vst [vmem:[#allocation2 + $0xb8] sm:$0x3] %v3725_v42  ;;  %3049 = vmatprep.subr.bf16.mxu1 %v3664_v40  ;;  %v3671_v48 = vld [vmem:[%s4812_s3 + $0x8] sm:$0xff]   ;;  %v3675_v54 = vld [vmem:[%s4812_s3] sm:$0xff]  }
  0x1e   : > { %3157 = vmatprep.subr.bf16.mxu0 %v3648_v14  ;;  %770 = vst [vmem:[#allocation2 + $0xc0] sm:$0xff] %v3725_v42  ;;  %771 = vst [vmem:[#allocation2 + $0xc8] sm:$0xff] %v3725_v42  ;;  %v932_v55 = vshll.u32 %v903_v50, 16  ;;  %v3672_v56 = vld [vmem:[%s4812_s3 + $0xc0] sm:$0xff]   ;;  %v1166_v60 = vrot.slane %v903_v50, 1  ;;  %v3676_v63 = vld [vmem:[%s4812_s3 + $0x1f8] sm:$0xff]  }
  0x1f   : > { %772 = vst [vmem:[#allocation2 + $0xd0] sm:$0x3] %v3725_v42  ;;  %773 = vst [vmem:[#allocation2 + $0xd8] sm:$0xff] %v3725_v42  ;;  %v3673_v57 = vld [vmem:[%s4812_s3 + $0x80] sm:$0xff]   ;;  %v3678_v1 = vld [vmem:[%s4812_s3 + $0x178] sm:$0xff]  }
  0x20   : > { %3524 = vmatmul.mubr.msk.bf16.gmra.mxu0 %vm436_vm1, %v3631_v10  ;;  %774 = vst [vmem:[#allocation2 + $0xe0] sm:$0xff] %v3725_v42  ;;  %775 = vst [vmem:[#allocation2 + $0xe8] sm:$0x3] %v3725_v42  ;;  %3050 = vmatpush3.bf16.msra.mxu1 %v3665_v41  ;;  %v934_v58 = vrot.slane %v932_v55, 1  ;;  %v3926_v0 = vsel %vm1164_vm3, %v1165_v62, %v1166_v60  ;;  %v3679_v2 = vld [vmem:[%s4812_s3 + $0x138] sm:$0xff]   ;;  %v3682_v3 = vld [vmem:[%s4812_s3 + $0x170] sm:$0xff]  }
  0x21   : > { %3527 = vmatprep.mubr.msk.bf16.mxu0 %vm436_vm1, %v3632_v11  ;;  %3158 = vmatpush3.bf16.msra.mxu0 %v3649_v16  ;;  %776 = vst [vmem:[#allocation2 + $0xf0] sm:$0xff] %v3725_v42  ;;  %777 = vst [vmem:[#allocation2 + $0xf8] sm:$0xff] %v3725_v42  ;;  %v3683_v4 = vld [vmem:[%s4812_s3 + $0x130] sm:$0xff]   ;;  %v3686_v5 = vld [vmem:[%s4812_s3 + $0x168] sm:$0xff]  }
  0x22   : > { %3159 = vmatprep.subr.bf16.mxu0 %v3650_v17  ;;  %778 = vst [vmem:[#allocation2 + $0x100] sm:$0x3] %v3725_v42  ;;  %779 = vst [vmem:[#allocation2 + $0x108] sm:$0xff] %v3725_v42  ;;  %3051 = vmatprep.subr.bf16.mxu1 %v3668_v43  ;;  %v935_v59 = vsel %vm923_vm2, %v929_v53, %v934_v58  ;;  %v3687_v6 = vld [vmem:[%s4812_s3 + $0x128] sm:$0xff]   ;;  %v3690_v7 = vld [vmem:[%s4812_s3 + $0x160] sm:$0xff]  }
  0x23   : > { %780 = vst [vmem:[#allocation2 + $0x110] sm:$0xff] %v3725_v42  ;;  %781 = vst [vmem:[#allocation2 + $0x118] sm:$0x3] %v3725_v42  ;;  %1882 = vmatprep.mubr.bf16.mxu1 %v935_v59  ;;  %v3691_v8 = vld [vmem:[%s4812_s3 + $0x120] sm:$0xff]   ;;  %v3694_v9 = vld [vmem:[%s4812_s3 + $0x158] sm:$0xff]  }
  0x24   : > { %782 = vst [vmem:[#allocation2 + $0x120] sm:$0xff] %v3725_v42  ;;  %783 = vst [vmem:[#allocation2 + $0x128] sm:$0xff] %v3725_v42  ;;  %3052 = vmatpush3.bf16.msra.mxu1 %v3669_v44  ;;  %v3695_v10 = vld [vmem:[%s4812_s3 + $0x118] sm:$0xff]   ;;  %v3698_v11 = vld [vmem:[%s4812_s3 + $0x150] sm:$0xff]  }
  0x25   : > { %3160 = vmatpush3.bf16.msra.mxu0 %v3651_v18  ;;  %784 = vst [vmem:[#allocation2 + $0x130] sm:$0x3] %v3725_v42  ;;  %785 = vst [vmem:[#allocation2 + $0x138] sm:$0xff] %v3725_v42  ;;  %3053 = vmatprep.subr.bf16.mxu1 %v3670_v45  ;;  %v3699_v12 = vld [vmem:[%s4812_s3 + $0x110] sm:$0xff]   ;;  %v3702_v14 = vld [vmem:[%s4812_s3 + $0x148] sm:$0xff]  }
  0x26   : > { %3161 = vmatprep.subr.bf16.mxu0 %v3654_v21  ;;  %786 = vst [vmem:[#allocation2 + $0x140] sm:$0xff] %v3725_v42  ;;  %787 = vst [vmem:[#allocation2 + $0x148] sm:$0x3] %v3725_v42 }
  0x27   : > { %788 = vst [vmem:[#allocation2 + $0x150] sm:$0xff] %v3725_v42  ;;  %789 = vst [vmem:[#allocation2 + $0x158] sm:$0xff] %v3725_v42 }
  0x28   : > { %3528 = vmatmul.mubr.msk.bf16.gmra.mxu0 %vm436_vm1, %v3633_v13  ;;  %790 = vst [vmem:[#allocation2 + $0x160] sm:$0x3] %v3725_v42  ;;  %791 = vst [vmem:[#allocation2 + $0x168] sm:$0xff] %v3725_v42  ;;  %3054 = vmatpush3.bf16.msra.mxu1 %v3671_v48  ;;  %v3967_v13 = vld [vmem:[%s4811_s2] ss:$0 sm:$0xff] }
  0x29   : > { %3531 = vmatprep.mubr.msk.bf16.mxu0 %vm436_vm1, %v3634_v15  ;;  %3162 = vmatpush3.bf16.msra.mxu0 %v3655_v22  ;;  %792 = vst [vmem:[#allocation2 + $0x170] sm:$0xff] %v3725_v42  ;;  %793 = vst [vmem:[#allocation2 + $0x178] sm:$0x3] %v3725_v42  ;;  %v3703_v15 = vld [vmem:[%s4812_s3 + $0x108] sm:$0xff]  }
  0x2a   : > { %3163 = vmatprep.subr.bf16.mxu0 %v3660_v29  ;;  %794 = vst [vmem:[#allocation2 + $0x180] sm:$0xff] %v3725_v42  ;;  %795 = vst [vmem:[#allocation2 + $0x188] sm:$0xff] %v3725_v42  ;;  %3055 = vmatprep.subr.bf16.mxu1 %v3674_v51 }
  0x2b   : > { %796 = vst [vmem:[#allocation2 + $0x190] sm:$0x3] %v3725_v42  ;;  %799 = vst [vmem:[#allocation2 + $0x1a8] sm:$0x3] %v3725_v42  ;;  %v3706_v42 = vld [vmem:[%s4812_s3 + $0x140] sm:$0xff]  }
  0x2c   : > { %3056 = vmatpush3.bf16.msra.mxu1 %v3675_v54 }
  0x2d   : > { %3164 = vmatpush3.bf16.msra.mxu0 %v3661_v30  ;;  %3265 = vmatprep.subr.bf16.mxu1 %v3678_v1  ;;  %v3677_v1 = vld [vmem:[%s4812_s3 + $0x1b8] sm:$0xff]  }
  0x2e   : > { %3165 = vmatprep.subr.bf16.mxu0 %v3666_v46  ;;  %v3707_v46 = vld [vmem:[%s4812_s3 + $0x100] sm:$0xff]  }
  0x2f   : > { %1883 = vmatmul.mubr.bf16.vlgmr.msra.gmra.mxu1 %v3727_v61 }
  0x30   : > { %3532 = vmatmul.mubr.msk.bf16.gmra.mxu0 %vm436_vm1, %v3635_v23  ;;  %3266 = vmatpush3.bf16.msra.mxu1 %v3679_v2 }
  0x31   : > { %3535 = vmatprep.mubr.msk.bf16.mxu0 %vm436_vm1, %v3636_v25  ;;  %3166 = vmatpush3.bf16.msra.mxu0 %v3667_v47 }
  0x32   : > { %3167 = vmatprep.subr.bf16.mxu0 %v3672_v56  ;;  %3267 = vmatprep.subr.bf16.mxu1 %v3682_v3 }
  0x34   : > { %3268 = vmatpush3.bf16.msra.mxu1 %v3683_v4 }
  0x35   : > { %3168 = vmatpush3.bf16.msra.mxu0 %v3673_v57  ;;  %3269 = vmatprep.subr.bf16.mxu1 %v3686_v5 }
  0x36   : > { %3377 = vmatprep.subr.bf16.mxu0 %v3676_v63 }
  0x38   : > { %3536 = vmatmul.mubr.msk.bf16.gmra.mxu0 %vm436_vm1, %v3637_v31  ;;  %3270 = vmatpush3.bf16.msra.mxu1 %v3687_v6 }
  0x39   : > { %3539 = vmatprep.mubr.msk.bf16.mxu0 %vm436_vm1, %v3638_v32  ;;  %3271 = vmatprep.subr.bf16.mxu1 %v3690_v7 }
  0x3c   : > { %3272 = vmatpush3.bf16.msra.mxu1 %v3691_v8 }
  0x3d   : > { %3273 = vmatprep.subr.bf16.mxu1 %v3694_v9  ;;  %v3680_v9 = vld [vmem:[%s4812_s3 + $0x1f0] sm:$0xff]  }
  0x40   : > { %3540 = vmatmul.mubr.msk.bf16.gmra.mxu0 %vm436_vm1, %v3639_v33  ;;  %3274 = vmatpush3.bf16.msra.mxu1 %v3695_v10 }
  0x41   : > { %3543 = vmatprep.mubr.msk.bf16.mxu0 %vm436_vm1, %v3640_v34  ;;  %3275 = vmatprep.subr.bf16.mxu1 %v3698_v11 }
  0x44   : > { %3276 = vmatpush3.bf16.msra.mxu1 %v3699_v12 }
  0x45   : > { %3277 = vmatprep.subr.bf16.mxu1 %v3702_v14 }
  0x48   : > { %3544 = vmatmul.mubr.msk.bf16.gmra.mxu0 %vm436_vm1, %v3641_v35  ;;  %3278 = vmatpush3.bf16.msra.mxu1 %v3703_v15 }
  0x49   : > { %3547 = vmatprep.mubr.msk.bf16.mxu0 %vm436_vm1, %v3642_v36  ;;  %3279 = vmatprep.subr.bf16.mxu1 %v3706_v42 }
  0x4c   : > { %3280 = vmatpush3.bf16.msra.mxu1 %v3707_v46 }
  0x50   : > { %3548 = vmatmul.mubr.msk.bf16.gmra.mxu0 %vm436_vm1, %v3643_v37 }
  0xd8   : > { %v3521_v16 = vpop.f32.mrf.mxu0 }
  0xd9   : > { %v532_v17 = vadd.f32 %v3521_v16, %v3967_v13  ;;  %v4012_v16 = vld [vmem:[%s4812_s3 + $0x238] sm:$0xff]  }
  0xda   : > { %v523_v18 = vpop.f32.mrf.mxu0  ;;  %3599 = vmatprep.subr.bf16.mxu1 %v4012_v16 }
  0xdb   : > { %vm652_vm4 = vcmp.ge.f32.partialorder %v532_v17, 0.0  ;;  %v684_v19 = vmul.f32 0.2, %v532_v17  ;;  %v524_v20 = vadd.f32 %v3967_v13, %v523_v18 }
  0xdc   : > { %v3522_v21 = vpop.f32.mrf.mxu0 }
  0xdd   : > { %v716_v22 = vsel %vm652_vm4, %v532_v17, %v684_v19  ;;  %vm650_vm5 = vcmp.ge.f32.partialorder %v524_v20, 0.0  ;;  %v682_v23 = vmul.f32 0.2, %v524_v20  ;;  %v535_v24 = vadd.f32 %v3522_v21, %v3967_v13 }
  0xde   : > { %803 = vst [vmem:[#allocation2 + $0x31] sm:$0xff] %v716_v22  ;;  %v526_v25 = vpop.f32.mrf.mxu0 }
  0xdf   : > { %v714_v26 = vsel %vm650_vm5, %v524_v20, %v682_v23  ;;  %vm653_vm6 = vcmp.ge.f32.partialorder %v535_v24, 0.0  ;;  %v685_v27 = vmul.f32 0.2, %v535_v24  ;;  %v527_v28 = vadd.f32 %v3967_v13, %v526_v25  ;;  %v3681_v25 = vld [vmem:[%s4812_s3 + $0x1b0] sm:$0xff]  }
  0xe0   : > { %801 = vst [vmem:[#allocation2 + $0x19] sm:$0xff] %v714_v26  ;;  %v3525_v29 = vpop.f32.mrf.mxu0 }
  0xe1   : > { %v717_v30 = vsel %vm653_vm6, %v535_v24, %v685_v27  ;;  %vm651_vm7 = vcmp.ge.f32.partialorder %v527_v28, 0.0  ;;  %v683_v31 = vmul.f32 0.2, %v527_v28  ;;  %v548_v32 = vadd.f32 %v3525_v29, %v3967_v13  ;;  %v3684_v29 = vld [vmem:[%s4812_s3 + $0x1e8] sm:$0xff]  }
  0xe2   : > { %804 = vst [vmem:[#allocation2 + $0x39] sm:$0xff] %v717_v30  ;;  %v539_v33 = vpop.f32.mrf.mxu0 }
  0xe3   : > { %v715_v34 = vsel %vm651_vm7, %v527_v28, %v683_v31  ;;  %vm656_vm8 = vcmp.ge.f32.partialorder %v548_v32, 0.0  ;;  %v688_v35 = vmul.f32 0.2, %v548_v32  ;;  %v540_v36 = vadd.f32 %v3967_v13, %v539_v33 }
  0xe4   : > { %802 = vst [vmem:[#allocation2 + $0x21] sm:$0xff] %v715_v34  ;;  %v3526_v37 = vpop.f32.mrf.mxu0 }
  0xe5   : > { %v720_v38 = vsel %vm656_vm8, %v548_v32, %v688_v35  ;;  %vm654_vm9 = vcmp.ge.f32.partialorder %v540_v36, 0.0  ;;  %v686_v39 = vmul.f32 0.2, %v540_v36  ;;  %v551_v40 = vadd.f32 %v3526_v37, %v3967_v13  ;;  %v839_v48 = vld [vmem:[#allocation2 + $0x30] sm:$0xff] }
  0xe6   : > { %807 = vst [vmem:[#allocation2 + $0x61] sm:$0xff] %v720_v38  ;;  %v542_v41 = vpop.f32.mrf.mxu0 }
  0xe7   : > { %v718_v43 = vsel %vm654_vm9, %v540_v36, %v686_v39  ;;  %vm657_vm10 = vcmp.ge.f32.partialorder %v551_v40, 0.0  ;;  %v689_v44 = vmul.f32 0.2, %v551_v40  ;;  %v543_v45 = vadd.f32 %v3967_v13, %v542_v41  ;;  %v836_v54 = vld [vmem:[#allocation2 + $0x18] sm:$0xff] }
  0xe8   : > { %805 = vst [vmem:[#allocation2 + $0x49] sm:$0xff] %v718_v43  ;;  %v3529_v47 = vpop.f32.mrf.mxu0 }
  0xe9   : > { %v721_v49 = vsel %vm657_vm10, %v551_v40, %v689_v44  ;;  %vm655_vm11 = vcmp.ge.f32.partialorder %v543_v45, 0.0  ;;  %v687_v50 = vmul.f32 0.2, %v543_v45  ;;  %v564_v51 = vadd.f32 %v3529_v47, %v3967_v13  ;;  %v840_v52 = vld [vmem:[#allocation2 + $0x38] sm:$0xff]  ;;  %v841_v53 = vld [vmem:[#allocation2 + $0x40] sm:$0x3] }
  0xea   : > { %808 = vst [vmem:[#allocation2 + $0x69] sm:$0xff] %v721_v49  ;;  %v555_v55 = vpop.f32.mrf.mxu0  ;;  %v3990_v56 = vpack.c.bf16 %v840_v52, %v839_v48  ;;  %v3992_v57 = vpack.c.bf16 %v841_v53, %v841_v53 }
  0xeb   : > { %v719_v58 = vsel %vm655_vm11, %v543_v45, %v687_v50  ;;  %vm660_vm12 = vcmp.ge.f32.partialorder %v564_v51, 0.0  ;;  %v692_v59 = vmul.f32 0.2, %v564_v51  ;;  %v837_v60 = vld [vmem:[#allocation2 + $0x20] sm:$0xff]  ;;  %v556_v61 = vadd.f32 %v3967_v13, %v555_v55  ;;  %v838_v62 = vld [vmem:[#allocation2 + $0x28] sm:$0x3] }
  0xec   : > { %806 = vst [vmem:[#allocation2 + $0x51] sm:$0xff] %v719_v58  ;;  %v3995_v63 = vpack.c.bf16 %v837_v60, %v836_v54  ;;  %v3530_v2 = vpop.f32.mrf.mxu0  ;;  %v904_v3 = vpack.c.bf16 %v838_v62, %v838_v62  ;;  %v949_v4 = vshrl.u32 %v3990_v56, 16  ;;  %v951_v5 = vshll.u32 %v3990_v56, 16  ;;  %v3685_v45 = vld [vmem:[%s4812_s3 + $0x1a8] sm:$0xff]   ;;  %v3688_v50 = vld [vmem:[%s4812_s3 + $0x1e0] sm:$0xff]  }
  0xed   : > { %v724_v6 = vsel %vm660_vm12, %v564_v51, %v692_v59  ;;  %vm658_vm13 = vcmp.ge.f32.partialorder %v556_v61, 0.0  ;;  %v690_v7 = vmul.f32 0.2, %v556_v61  ;;  %v567_v8 = vadd.f32 %v3530_v2, %v3967_v13  ;;  %v845_v42 = vld [vmem:[#allocation2 + $0x60] sm:$0xff] }
  0xee   : > { %811 = vst [vmem:[#allocation2 + $0x91] sm:$0xff] %v724_v6  ;;  %2043 = vmatprep.mubr.bf16.mxu0 %v3995_v63  ;;  %v558_v10 = vpop.f32.mrf.mxu0  ;;  %v937_v11 = vshrl.u32 %v3995_v63, 16  ;;  %v939_v12 = vshll.u32 %v3995_v63, 16  ;;  %v944_v14 = vshll.u32 %v904_v3, 16  ;;  %v953_v15 = vrot.slane %v951_v5, 1 }
  0xef   : > { %2044 = vmatmul.mubr.bf16.vlgmr.msra.gmra.mxu0 %v3926_v0  ;;  %v722_v17 = vsel %vm658_vm13, %v556_v61, %v690_v7  ;;  %vm661_vm14 = vcmp.ge.f32.partialorder %v567_v8, 0.0  ;;  %v693_v18 = vmul.f32 0.2, %v567_v8  ;;  %v559_v19 = vadd.f32 %v3967_v13, %v558_v10  ;;  %v842_v28 = vld [vmem:[#allocation2 + $0x48] sm:$0xff]  ;;  %v3692_v7 = vld [vmem:[%s4812_s3 + $0x1d8] sm:$0xff]  }
  0xf0   : > { %3378 = vmatpush3.bf16.msra.mxu0 %v3677_v1  ;;  %809 = vst [vmem:[#allocation2 + $0x79] sm:$0xff] %v722_v17  ;;  %2051 = vmatprep.mubr.bf16.mxu0 %v3990_v56  ;;  %v941_v20 = vrot.slane %v939_v12, 1  ;;  %v946_v21 = vrot.slane %v944_v14, 1  ;;  %v954_v22 = vor.u32 %v953_v15, %v949_v4  ;;  %v956_v23 = vshll.u32 %v3992_v57, 16  ;;  %v3533_v24 = vpop.f32.mrf.mxu0 }
  0xf1   : > { %v725_v0 = vsel %vm661_vm14, %v567_v8, %v693_v18  ;;  %vm659_vm15 = vcmp.ge.f32.partialorder %v559_v19, 0.0  ;;  %v691_v26 = vmul.f32 0.2, %v559_v19  ;;  %v1168_v27 = vrot.slane %v3995_v63, 1  ;;  %3379 = vmatprep.subr.bf16.mxu0 %v3680_v9  ;;  %v846_v43 = vld [vmem:[#allocation2 + $0x68] sm:$0xff] }
  0xf2   : > { %812 = vst [vmem:[#allocation2 + $0x99] sm:$0xff] %v725_v0  ;;  %v942_v30 = vor.u32 %v941_v20, %v937_v11  ;;  %v958_v31 = vrot.slane %v956_v23, 1  ;;  %v1169_v32 = vrot.slane %v904_v3, 1  ;;  %v580_v33 = vadd.f32 %v3533_v24, %v3967_v13  ;;  %v571_v34 = vpop.f32.mrf.mxu0  ;;  %v847_v49 = vld [vmem:[#allocation2 + $0x70] sm:$0x3]  ;;  %v3689_v3 = vld [vmem:[%s4812_s3 + $0x1a0] sm:$0xff]  }
  0xf3   : > { %v723_v35 = vsel %vm659_vm15, %v559_v19, %v691_v26  ;;  %v843_v36 = vld [vmem:[#allocation2 + $0x50] sm:$0xff]  ;;  %v844_v37 = vld [vmem:[#allocation2 + $0x58] sm:$0x3]  ;;  %v572_v38 = vadd.f32 %v3967_v13, %v571_v34  ;;  %v4054_v59 = vpack.c.bf16 %v846_v43, %v845_v42  ;;  %v4059_v1 = vpack.c.bf16 %v847_v49, %v847_v49  ;;  %v3700_v43 = vld [vmem:[%s4812_s3 + $0x1c8] sm:$0xff]  }
  0xf4   : > { %810 = vst [vmem:[#allocation2 + $0x81] sm:$0xff] %v723_v35  ;;  %v4029_v39 = vsel %vm923_vm2, %v942_v30, %v946_v21  ;;  %v4032_v40 = vsel %vm923_vm2, %v954_v22, %v958_v31  ;;  %v4034_v41 = vpack.c.bf16 %v843_v36, %v842_v28  ;;  %3380 = vmatpush3.bf16.msra.mxu0 %v3681_v25  ;;  %v3534_v44 = vpop.f32.mrf.mxu0  ;;  %vm664_vm0 = vcmp.ge.f32.partialorder %v580_v33, 0.0  ;;  %v3693_v20 = vld [vmem:[%s4812_s3 + $0x198] sm:$0xff]   ;;  %v3696_v24 = vld [vmem:[%s4812_s3 + $0x1d0] sm:$0xff]  }
  0xf5   : > { %1890 = vmatprep.mubr.bf16.mxu1 %v4029_v39  ;;  %v4041_v46 = vsel %vm1164_vm3, %v1168_v27, %v1169_v32  ;;  %v696_v47 = vmul.f32 0.2, %v580_v33  ;;  %v4043_v48 = vpack.c.bf16 %v844_v37, %v844_v37  ;;  %3381 = vmatprep.subr.bf16.mxu0 %v3684_v29  ;;  %vm662_vm1 = vcmp.ge.f32.partialorder %v572_v38, 0.0  ;;  %v3697_v35 = vld [vmem:[%s4812_s3 + $0x190] sm:$0xff]  }
  0xf6   : > { %1891 = vmatmul.mubr.bf16.gmra.mxu1 %v3995_v63  ;;  %v961_v51 = vshrl.u32 %v4034_v41, 16  ;;  %v963_v52 = vshll.u32 %v4034_v41, 16  ;;  %v694_v53 = vmul.f32 0.2, %v572_v38  ;;  %v574_v54 = vpop.f32.mrf.mxu0  ;;  %v583_v60 = vadd.f32 %v3534_v44, %v3967_v13 }
  0xf7   : > { %1898 = vmatprep.mubr.bf16.mxu1 %v4032_v40  ;;  %2052 = vmatmul.mubr.bf16.gmra.mxu0 %v4041_v46  ;;  %v728_v55 = vsel %vm664_vm0, %v580_v33, %v696_v47  ;;  %v968_v58 = vshll.u32 %v4043_v48, 16  ;;  %v575_v63 = vadd.f32 %v3967_v13, %v574_v54  ;;  %v1171_v4 = vrot.slane %v3990_v56, 1  ;;  %v848_v14 = vld [vmem:[#allocation2 + $0x78] sm:$0xff]  ;;  %v851_v47 = vld [vmem:[#allocation2 + $0x90] sm:$0xff] }
  0xf8   : > { %2059 = vmatprep.mubr.bf16.mxu0 %v4034_v41  ;;  %815 = vst [vmem:[#allocation2 + $0xc1] sm:$0xff] %v728_v55  ;;  %v965_v61 = vrot.slane %v963_v52, 1  ;;  %v726_v62 = vsel %vm662_vm1, %v572_v38, %v694_v53  ;;  %v3537_v2 = vpop.f32.mrf.mxu0  ;;  %3382 = vmatpush3.bf16.msra.mxu0 %v3685_v45  ;;  %v1172_v5 = vrot.slane %v3992_v57, 1  ;;  %vm665_vm4 = vcmp.ge.f32.partialorder %v583_v60, 0.0 }
  0xf9   : > { %813 = vst [vmem:[#allocation2 + $0xa9] sm:$0xff] %v726_v62  ;;  %v697_v6 = vmul.f32 0.2, %v583_v60  ;;  %3383 = vmatprep.subr.bf16.mxu0 %v3688_v50  ;;  %vm663_vm5 = vcmp.ge.f32.partialorder %v575_v63, 0.0  ;;  %v695_v9 = vmul.f32 0.2, %v575_v63  ;;  %v596_v23 = vadd.f32 %v3537_v2, %v3967_v13 }
  0xfa   : > { %v966_v8 = vor.u32 %v965_v61, %v961_v51  ;;  %v975_v10 = vshll.u32 %v4054_v59, 16  ;;  %v587_v11 = vpop.f32.mrf.mxu0  ;;  %v970_v17 = vrot.slane %v968_v58, 1  ;;  %v980_v18 = vshll.u32 %v4059_v1, 16  ;;  %v3701_v58 = vld [vmem:[%s4812_s3 + $0x188] sm:$0xff]   ;;  %v3704_v2 = vld [vmem:[%s4812_s3 + $0x1c0] sm:$0xff]  }
  0xfb   : > { %v729_v12 = vsel %vm665_vm4, %v583_v60, %v697_v6  ;;  %v849_v15 = vld [vmem:[#allocation2 + $0x80] sm:$0xff]  ;;  %v727_v57 = vsel %vm663_vm5, %v575_v63, %v695_v9  ;;  %v973_v21 = vshrl.u32 %v4054_v59, 16  ;;  %v4084_v0 = vsel %vm1164_vm3, %v1171_v4, %v1172_v5  ;;  %v850_v27 = vld [vmem:[#allocation2 + $0x88] sm:$0x3] }
  0xfc   : > { %816 = vst [vmem:[#allocation2 + $0xc9] sm:$0xff] %v729_v12  ;;  %v3538_v19 = vpop.f32.mrf.mxu0  ;;  %3384 = vmatpush3.bf16.msra.mxu0 %v3689_v3  ;;  %814 = vst [vmem:[#allocation2 + $0xb1] sm:$0xff] %v727_v57  ;;  %v977_v22 = vrot.slane %v975_v10, 1  ;;  %v4081_v25 = vsel %vm923_vm2, %v966_v8, %v970_v17  ;;  %v4086_v26 = vpack.c.bf16 %v849_v15, %v848_v14  ;;  %vm668_vm6 = vcmp.ge.f32.partialorder %v596_v23, 0.0  ;;  %v853_v6 = vld [vmem:[#allocation2 + $0xa0] sm:$0x3] }
  0xfd   : > { %3385 = vmatprep.subr.bf16.mxu0 %v3692_v7  ;;  %v700_v29 = vmul.f32 0.2, %v596_v23  ;;  %v982_v30 = vrot.slane %v980_v18, 1  ;;  %v1174_v31 = vrot.slane %v4034_v41, 1  ;;  %v1175_v32 = vrot.slane %v4043_v48, 1  ;;  %v852_v48 = vld [vmem:[#allocation2 + $0x98] sm:$0xff] }
  0xfe   : > { %1899 = vmatmul.mubr.bf16.gmra.mxu1 %v3990_v56  ;;  %v590_v28 = vpop.f32.mrf.mxu0  ;;  %v588_v33 = vadd.f32 %v3967_v13, %v587_v11  ;;  %v978_v36 = vor.u32 %v977_v22, %v973_v21  ;;  %v4097_v38 = vpack.c.bf16 %v850_v27, %v850_v27  ;;  %v599_v42 = vadd.f32 %v3538_v19, %v3967_v13  ;;  %v3705_v14 = vld [vmem:[%s4812_s3 + $0x180] sm:$0xff]  }
  0xff   : > { %1906 = vmatprep.mubr.bf16.mxu1 %v4081_v25  ;;  %2060 = vmatmul.mubr.bf16.gmra.mxu0 %v4084_v0  ;;  %v732_v37 = vsel %vm668_vm6, %v596_v23, %v700_v29  ;;  %v987_v44 = vshll.u32 %v4086_v26, 16  ;;  %v591_v49 = vadd.f32 %v3967_v13, %v590_v28  ;;  %v4106_v52 = vsel %vm1164_vm3, %v1174_v31, %v1175_v32 }
 0x100   : > { %2067 = vmatprep.mubr.bf16.mxu0 %v4054_v59  ;;  %v3541_v34 = vpop.f32.mrf.mxu0  ;;  %3386 = vmatpush3.bf16.msra.mxu0 %v3693_v20  ;;  %819 = vst [vmem:[#allocation2 + $0xf1] sm:$0xff] %v732_v37  ;;  %vm666_vm7 = vcmp.ge.f32.partialorder %v588_v33, 0.0  ;;  %v698_v45 = vmul.f32 0.2, %v588_v33  ;;  %vm669_vm8 = vcmp.ge.f32.partialorder %v599_v42, 0.0  ;;  %v985_v60 = vshrl.u32 %v4086_v26, 16 }
 0x101   : > { %3387 = vmatprep.subr.bf16.mxu0 %v3696_v24  ;;  %v701_v51 = vmul.f32 0.2, %v599_v42  ;;  %vm667_vm9 = vcmp.ge.f32.partialorder %v591_v49, 0.0  ;;  %v699_v54 = vmul.f32 0.2, %v591_v49  ;;  %v992_v61 = vshll.u32 %v4097_v38, 16 }
 0x102   : > { %v603_v50 = vpop.f32.mrf.mxu0  ;;  %v730_v53 = vsel %vm666_vm7, %v588_v33, %v698_v45  ;;  %v4113_v62 = vpack.c.bf16 %v852_v48, %v851_v47  ;;  %v4120_v3 = vsel %vm923_vm2, %v978_v36, %v982_v30  ;;  %v989_v4 = vrot.slane %v987_v44, 1  ;;  %v854_v23 = vld [vmem:[#allocation2 + $0xa8] sm:$0xff] }
 0x103   : > { %817 = vst [vmem:[#allocation2 + $0xd9] sm:$0xff] %v730_v53  ;;  %v733_v63 = vsel %vm669_vm8, %v599_v42, %v701_v51  ;;  %v731_v5 = vsel %vm667_vm9, %v591_v49, %v699_v54  ;;  %v612_v7 = vadd.f32 %v3541_v34, %v3967_v13  ;;  %v1177_v9 = vrot.slane %v4054_v59, 1  ;;  %v855_v24 = vld [vmem:[#allocation2 + $0xb0] sm:$0xff]  ;;  %v856_v36 = vld [vmem:[#allocation2 + $0xb8] sm:$0x3] }
 0x104   : > { %v3542_v55 = vpop.f32.mrf.mxu0  ;;  %3388 = vmatpush3.bf16.msra.mxu0 %v3697_v35  ;;  %820 = vst [vmem:[#allocation2 + $0xf9] sm:$0xff] %v733_v63  ;;  %v1178_v10 = vrot.slane %v4059_v1, 1  ;;  %818 = vst [vmem:[#allocation2 + $0xe1] sm:$0xff] %v731_v5  ;;  %v994_v15 = vrot.slane %v992_v61, 1  ;;  %v4132_v17 = vpack.c.bf16 %v853_v6, %v853_v6  ;;  %v999_v57 = vshll.u32 %v4113_v62, 16 }
 0x105   : > { %3389 = vmatprep.subr.bf16.mxu0 %v3700_v43  ;;  %vm672_vm10 = vcmp.ge.f32.partialorder %v612_v7, 0.0  ;;  %v704_v11 = vmul.f32 0.2, %v612_v7  ;;  %v990_v18 = vor.u32 %v989_v4, %v985_v60  ;;  %v604_v1 = vadd.f32 %v3967_v13, %v603_v50  ;;  %v858_v60 = vld [vmem:[#allocation2 + $0xc8] sm:$0xff] }
 0x106   : > { %1907 = vmatmul.mubr.bf16.gmra.mxu1 %v4034_v41  ;;  %v606_v8 = vpop.f32.mrf.mxu0  ;;  %v615_v20 = vadd.f32 %v3542_v55, %v3967_v13  ;;  %v4138_v22 = vsel %vm1164_vm3, %v1177_v9, %v1178_v10  ;;  %v997_v30 = vshrl.u32 %v4113_v62, 16  ;;  %v1001_v31 = vrot.slane %v999_v57, 1 }
 0x107   : > { %1914 = vmatprep.mubr.bf16.mxu1 %v4120_v3  ;;  %2068 = vmatmul.mubr.bf16.gmra.mxu0 %v4106_v52  ;;  %v736_v19 = vsel %vm672_vm10, %v612_v7, %v704_v11  ;;  %vm670_vm11 = vcmp.ge.f32.partialorder %v604_v1, 0.0  ;;  %v702_v27 = vmul.f32 0.2, %v604_v1  ;;  %v1004_v32 = vshll.u32 %v4132_v17, 16 }
 0x108   : > { %2075 = vmatprep.mubr.bf16.mxu0 %v4086_v26  ;;  %v3545_v12 = vpop.f32.mrf.mxu0  ;;  %3390 = vmatpush3.bf16.msra.mxu0 %v3701_v58  ;;  %823 = vst [vmem:[#allocation2 + $0x121] sm:$0xff] %v736_v19  ;;  %vm673_vm12 = vcmp.ge.f32.partialorder %v615_v20, 0.0  ;;  %v705_v28 = vmul.f32 0.2, %v615_v20  ;;  %v607_v33 = vadd.f32 %v3967_v13, %v606_v8  ;;  %v4146_v34 = vsel %vm923_vm2, %v990_v18, %v994_v15  ;;  %v857_v58 = vld [vmem:[#allocation2 + $0xc0] sm:$0xff] }
 0x109   : > { %3391 = vmatprep.subr.bf16.mxu0 %v3704_v2  ;;  %v4148_v35 = vpack.c.bf16 %v855_v24, %v854_v23  ;;  %v734_v37 = vsel %vm670_vm11, %v604_v1, %v702_v27  ;;  %v1180_v45 = vrot.slane %v4086_v26, 1  ;;  %v1181_v47 = vrot.slane %v4097_v38, 1  ;;  %v859_v8 = vld [vmem:[#allocation2 + $0xd0] sm:$0x3] }
 0x10a   : > { %v619_v21 = vpop.f32.mrf.mxu0  ;;  %v737_v42 = vsel %vm673_vm12, %v615_v20, %v705_v28  ;;  %821 = vst [vmem:[#allocation2 + $0x109] sm:$0xff] %v734_v37  ;;  %vm671_vm13 = vcmp.ge.f32.partialorder %v607_v33, 0.0  ;;  %v703_v43 = vmul.f32 0.2, %v607_v33  ;;  %v628_v48 = vadd.f32 %v3545_v12, %v3967_v13 }
 0x10b   : > { %824 = vst [vmem:[#allocation2 + $0x129] sm:$0xff] %v737_v42  ;;  %v1002_v49 = vor.u32 %v1001_v31, %v997_v30  ;;  %v1006_v50 = vrot.slane %v1004_v32, 1  ;;  %v4156_v51 = vpack.c.bf16 %v856_v36, %v856_v36  ;;  %v1011_v55 = vshll.u32 %v4148_v35, 16  ;;  %v860_v30 = vld [vmem:[#allocation2 + $0xd8] sm:$0xff]  ;;  %v861_v31 = vld [vmem:[#allocation2 + $0xe0] sm:$0xff] }
 0x10c   : > { %v3546_v29 = vpop.f32.mrf.mxu0  ;;  %3392 = vmatpush3.bf16.msra.mxu0 %v3705_v14  ;;  %v735_v53 = vsel %vm671_vm13, %v607_v33, %v703_v43  ;;  %vm676_vm14 = vcmp.ge.f32.partialorder %v628_v48, 0.0  ;;  %v708_v61 = vmul.f32 0.2, %v628_v48  ;;  %v4160_v63 = vsel %vm1164_vm3, %v1180_v45, %v1181_v47  ;;  %v862_v47 = vld [vmem:[#allocation2 + $0xe8] sm:$0x3] }
 0x10d   : > { %3551 = vmatprep.subr.bf16.mxu0 %v4012_v16  ;;  %822 = vst [vmem:[#allocation2 + $0x111] sm:$0xff] %v735_v53  ;;  %v1009_v38 = vshrl.u32 %v4148_v35, 16  ;;  %v620_v4 = vadd.f32 %v3967_v13, %v619_v21  ;;  %v4165_v5 = vsel %vm923_vm2, %v1002_v49, %v1006_v50  ;;  %v1016_v6 = vshll.u32 %v4156_v51, 16 }
 0x10e   : > { %1915 = vmatmul.mubr.bf16.gmra.mxu1 %v4054_v59  ;;  %v622_v44 = vpop.f32.mrf.mxu0  ;;  %v740_v2 = vsel %vm676_vm14, %v628_v48, %v708_v61  ;;  %v4168_v7 = vpack.c.bf16 %v858_v60, %v857_v58  ;;  %v631_v9 = vadd.f32 %v3546_v29, %v3967_v13  ;;  %v1013_v11 = vrot.slane %v1011_v55, 1 }
 0x10f   : > { %1922 = vmatprep.mubr.bf16.mxu1 %v4146_v34  ;;  %2076 = vmatmul.mubr.bf16.gmra.mxu0 %v4138_v22  ;;  %827 = vst [vmem:[#allocation2 + $0x151] sm:$0xff] %v740_v2  ;;  %vm674_vm15 = vcmp.ge.f32.partialorder %v620_v4, 0.0  ;;  %v706_v12 = vmul.f32 0.2, %v620_v4  ;;  %v623_v14 = vadd.f32 %v3967_v13, %v622_v44  ;;  %v4176_v57 = vpack.c.bf16 %v859_v8, %v859_v8  ;;  %v863_v8 = vld [vmem:[#allocation2 + $0xf0] sm:$0xff] }
 0x110   : > { %2083 = vmatprep.mubr.bf16.mxu0 %v4113_v62  ;;  %v3549_v54 = vpop.f32.mrf.mxu0  ;;  %vm677_vm0 = vcmp.ge.f32.partialorder %v631_v9, 0.0  ;;  %v709_v15 = vmul.f32 0.2, %v631_v9  ;;  %v1183_v1 = vrot.slane %v4113_v62, 1  ;;  %v1023_v20 = vshll.u32 %v4168_v7, 16 }
 0x111   : > { %v738_v18 = vsel %vm674_vm15, %v620_v4, %v706_v12  ;;  %vm675_vm1 = vcmp.ge.f32.partialorder %v623_v14, 0.0  ;;  %v707_v19 = vmul.f32 0.2, %v623_v14  ;;  %v1014_v24 = vor.u32 %v1013_v11, %v1009_v38 }
 0x112   : > { %v635_v10 = vpop.f32.mrf.mxu0  ;;  %825 = vst [vmem:[#allocation2 + $0x139] sm:$0xff] %v738_v18  ;;  %v741_v21 = vsel %vm677_vm0, %v631_v9, %v709_v15  ;;  %v1018_v27 = vrot.slane %v1016_v6, 1  ;;  %v1184_v28 = vrot.slane %v4132_v17, 1  ;;  %v644_v32 = vadd.f32 %v3549_v54, %v3967_v13  ;;  %v864_v9 = vld [vmem:[#allocation2 + $0xf8] sm:$0xff] }
 0x113   : > { %828 = vst [vmem:[#allocation2 + $0x159] sm:$0xff] %v741_v21  ;;  %v739_v29 = vsel %vm675_vm1, %v623_v14, %v707_v19  ;;  %v1028_v33 = vshll.u32 %v4176_v57, 16  ;;  %v1021_v36 = vshrl.u32 %v4168_v7, 16  ;;  %v1025_v37 = vrot.slane %v1023_v20, 1 }
 0x114   : > { %v3550_v23 = vpop.f32.mrf.mxu0  ;;  %826 = vst [vmem:[#allocation2 + $0x141] sm:$0xff] %v739_v29  ;;  %vm680_vm4 = vcmp.ge.f32.partialorder %v644_v32, 0.0  ;;  %v712_v42 = vmul.f32 0.2, %v644_v32  ;;  %v4186_v44 = vsel %vm923_vm2, %v1014_v24, %v1018_v27  ;;  %v4189_v17 = vsel %vm1164_vm3, %v1183_v1, %v1184_v28  ;;  %v865_v1 = vld [vmem:[#allocation2 + $0x100] sm:$0x3] }
 0x115   : > { %v4191_v45 = vpack.c.bf16 %v861_v31, %v860_v30  ;;  %v636_v48 = vadd.f32 %v3967_v13, %v635_v10  ;;  %v1186_v49 = vrot.slane %v4148_v35, 1  ;;  %v1187_v50 = vrot.slane %v4156_v51, 1  ;;  %v866_v29 = vld [vmem:[#allocation2 + $0x108] sm:$0xff]  ;;  %v867_v30 = vld [vmem:[#allocation2 + $0x110] sm:$0xff] }
 0x116   : > { %1923 = vmatmul.mubr.bf16.gmra.mxu1 %v4086_v26  ;;  %v638_v43 = vpop.f32.mrf.mxu0  ;;  %v744_v53 = vsel %vm680_vm4, %v644_v32, %v712_v42  ;;  %v647_v54 = vadd.f32 %v3550_v23, %v3967_v13  ;;  %v1030_v55 = vrot.slane %v1028_v33, 1  ;;  %v1026_v61 = vor.u32 %v1025_v37, %v1021_v36  ;;  %v3057_v42 = vpop.f32.mrf.mxu1 }
 0x117   : > { %1930 = vmatprep.mubr.bf16.mxu1 %v4165_v5  ;;  %2084 = vmatmul.mubr.bf16.gmra.mxu0 %v4160_v63  ;;  %831 = vst [vmem:[#allocation2 + $0x181] sm:$0xff] %v744_v53  ;;  %vm678_vm5 = vcmp.ge.f32.partialorder %v636_v48, 0.0  ;;  %v710_v58 = vmul.f32 0.2, %v636_v48  ;;  %v639_v60 = vadd.f32 %v3967_v13, %v638_v43  ;;  %v912_v38 = vpack.c.bf16 %v862_v47, %v862_v47  ;;  %v868_v43 = vld [vmem:[#allocation2 + $0x118] sm:$0x3] }
 0x118   : > { %2091 = vmatprep.mubr.bf16.mxu0 %v4148_v35  ;;  %vm681_vm6 = vcmp.ge.f32.partialorder %v647_v54, 0.0  ;;  %v713_v2 = vmul.f32 0.2, %v647_v54  ;;  %v1035_v4 = vshll.u32 %v4191_v45, 16  ;;  %v4203_v12 = vsel %vm1164_vm3, %v1186_v49, %v1187_v50  ;;  %v3058_v47 = vpop.f32.mrf.mxu1 }
 0x119   : > { %v742_v6 = vsel %vm678_vm5, %v636_v48, %v710_v58  ;;  %vm679_vm7 = vcmp.ge.f32.partialorder %v639_v60, 0.0  ;;  %v711_v51 = vmul.f32 0.2, %v639_v60  ;;  %v1033_v13 = vshrl.u32 %v4191_v45, 16 }
 0x11a   : > { %829 = vst [vmem:[#allocation2 + $0x169] sm:$0xff] %v742_v6  ;;  %v745_v10 = vsel %vm681_vm6, %v647_v54, %v713_v2  ;;  %v4208_v14 = vsel %vm923_vm2, %v1026_v61, %v1030_v55  ;;  %v1037_v15 = vrot.slane %v1035_v4, 1  ;;  %v1040_v18 = vshll.u32 %v912_v38, 16  ;;  %v870_v61 = vld [vmem:[#allocation2 + $0x128] sm:$0xff] }
 0x11b   : > { %832 = vst [vmem:[#allocation2 + $0x189] sm:$0xff] %v745_v10  ;;  %v743_v11 = vsel %vm679_vm7, %v639_v60, %v711_v51  ;;  %v4210_v19 = vpack.c.bf16 %v864_v9, %v863_v8  ;;  %v1189_v20 = vrot.slane %v4168_v7, 1  ;;  %v1190_v21 = vrot.slane %v4176_v57, 1  ;;  %v869_v60 = vld [vmem:[#allocation2 + $0x120] sm:$0xff]  ;;  %v871_v9 = vld [vmem:[#allocation2 + $0x130] sm:$0x3] }
 0x11c   : > { %830 = vst [vmem:[#allocation2 + $0x171] sm:$0xff] %v743_v11  ;;  %v1038_v23 = vor.u32 %v1037_v15, %v1033_v13  ;;  %v1042_v24 = vrot.slane %v1040_v18, 1  ;;  %v913_v27 = vpack.c.bf16 %v865_v1, %v865_v1  ;;  %v4226_v57 = vpack.c.bf16 %v867_v30, %v866_v29 }
 0x11d   : > { %v1047_v28 = vshll.u32 %v4210_v19, 16  ;;  %v4219_v31 = vsel %vm1164_vm3, %v1189_v20, %v1190_v21  ;;  %v1045_v32 = vshrl.u32 %v4210_v19, 16  ;;  %v1192_v48 = vrot.slane %v4191_v45, 1  ;;  %v872_v20 = vld [vmem:[#allocation2 + $0x138] sm:$0xff]  ;;  %v873_v21 = vld [vmem:[#allocation2 + $0x140] sm:$0xff] }
 0x11e   : > { %1931 = vmatmul.mubr.bf16.gmra.mxu1 %v4113_v62  ;;  %v4224_v33 = vsel %vm923_vm2, %v1038_v23, %v1042_v24  ;;  %v1052_v37 = vshll.u32 %v913_v27, 16  ;;  %v1193_v49 = vrot.slane %v912_v38, 1  ;;  %v4232_v50 = vadd.f32 %v3058_v47, %v3057_v42 }
 0x11f   : > { %1938 = vmatprep.mubr.bf16.mxu1 %v4186_v44  ;;  %2092 = vmatmul.mubr.bf16.gmra.mxu0 %v4189_v17  ;;  %v1049_v36 = vrot.slane %v1047_v28, 1  ;;  %v914_v55 = vpack.c.bf16 %v868_v43, %v868_v43  ;;  %v1059_v58 = vshll.u32 %v4226_v57, 16  ;;  %v1057_v4 = vshrl.u32 %v4226_v57, 16 }
 0x120   : > { %2099 = vmatprep.mubr.bf16.mxu0 %v4168_v7  ;;  %v1054_v54 = vrot.slane %v1052_v37, 1  ;;  %v4236_v2 = vsel %vm1164_vm3, %v1192_v48, %v1193_v49  ;;  %v4243_v8 = vpack.c.bf16 %v870_v61, %v869_v60  ;;  %v1195_v10 = vrot.slane %v4210_v19, 1  ;;  %v875_v49 = vld [vmem:[#allocation2 + $0x150] sm:$0xff] }
 0x121   : > { %v1050_v53 = vor.u32 %v1049_v36, %v1045_v32  ;;  %v1061_v38 = vrot.slane %v1059_v58, 1  ;;  %v1064_v51 = vshll.u32 %v914_v55, 16  ;;  %v1196_v11 = vrot.slane %v913_v27, 1  ;;  %v874_v32 = vld [vmem:[#allocation2 + $0x148] sm:$0x3] }
 0x122   : > { %v915_v18 = vpack.c.bf16 %v871_v9, %v871_v9  ;;  %v1071_v1 = vshll.u32 %v4243_v8, 16  ;;  %v1069_v24 = vshrl.u32 %v4243_v8, 16  ;;  %v4258_v27 = vpack.c.bf16 %v873_v21, %v872_v20 }
 0x123   : > { %v4241_v6 = vsel %vm923_vm2, %v1050_v53, %v1054_v54  ;;  %v1062_v13 = vor.u32 %v1061_v38, %v1057_v4  ;;  %v1066_v15 = vrot.slane %v1064_v51, 1  ;;  %v4251_v23 = vsel %vm1164_vm3, %v1195_v10, %v1196_v11  ;;  %v876_v53 = vld [vmem:[#allocation2 + $0x158] sm:$0xff]  ;;  %v877_v38 = vld [vmem:[#allocation2 + $0x160] sm:$0x3]  ;;  %v879_v20 = vld [vmem:[#allocation2 + $0x170] sm:$0xff] }
 0x124   : > { %v1073_v29 = vrot.slane %v1071_v1, 1  ;;  %v1076_v30 = vshll.u32 %v915_v18, 16  ;;  %v1198_v36 = vrot.slane %v4226_v57, 1  ;;  %v1199_v37 = vrot.slane %v914_v55, 1  ;;  %v878_v1 = vld [vmem:[#allocation2 + $0x168] sm:$0xff] }
 0x125   : > { %v4256_v28 = vsel %vm923_vm2, %v1062_v13, %v1066_v15  ;;  %v916_v47 = vpack.c.bf16 %v874_v32, %v874_v32  ;;  %v1083_v48 = vshll.u32 %v4258_v27, 16  ;;  %v1081_v58 = vshrl.u32 %v4258_v27, 16 }
 0x126   : > { %1939 = vmatmul.mubr.bf16.gmra.mxu1 %v4148_v35  ;;  %v1074_v42 = vor.u32 %v1073_v29, %v1069_v24  ;;  %v1078_v43 = vrot.slane %v1076_v30, 1  ;;  %v4266_v54 = vsel %vm1164_vm3, %v1198_v36, %v1199_v37  ;;  %v4273_v55 = vpack.c.bf16 %v876_v53, %v875_v49  ;;  %v880_v36 = vld [vmem:[#allocation2 + $0x178] sm:$0x3] }
 0x127   : > { %1946 = vmatprep.mubr.bf16.mxu1 %v4208_v14  ;;  %2100 = vmatmul.mubr.bf16.gmra.mxu0 %v4203_v12  ;;  %v1085_v61 = vrot.slane %v1083_v48, 1  ;;  %v1088_v4 = vshll.u32 %v916_v47, 16  ;;  %v1201_v51 = vrot.slane %v4243_v8, 1  ;;  %v1202_v9 = vrot.slane %v915_v18, 1 }
 0x128   : > { %2107 = vmatprep.mubr.bf16.mxu0 %v4191_v45  ;;  %v4271_v60 = vsel %vm923_vm2, %v1074_v42, %v1078_v43  ;;  %v917_v13 = vpack.c.bf16 %v877_v38, %v877_v38  ;;  %v1095_v15 = vshll.u32 %v4273_v55, 16  ;;  %v1093_v24 = vshrl.u32 %v4273_v55, 16 }
 0x129   : > { %v1086_v10 = vor.u32 %v1085_v61, %v1081_v58  ;;  %v1090_v11 = vrot.slane %v1088_v4, 1  ;;  %v4281_v21 = vsel %vm1164_vm3, %v1201_v51, %v1202_v9  ;;  %v4288_v18 = vpack.c.bf16 %v879_v20, %v878_v1  ;;  %v882_v1 = vld [vmem:[#allocation2 + $0x188] sm:$0xff] }
 0x12a   : > { %v1097_v30 = vrot.slane %v1095_v15, 1  ;;  %v1100_v32 = vshll.u32 %v917_v13, 16  ;;  %v1204_v37 = vrot.slane %v4258_v27, 1  ;;  %v1205_v42 = vrot.slane %v916_v47, 1  ;;  %v881_v15 = vld [vmem:[#allocation2 + $0x180] sm:$0xff] }
 0x12b   : > { %v4286_v29 = vsel %vm923_vm2, %v1086_v10, %v1090_v11  ;;  %v918_v49 = vpack.c.bf16 %v880_v36, %v880_v36  ;;  %v1107_v53 = vshll.u32 %v4288_v18, 16  ;;  %v1105_v4 = vshrl.u32 %v4288_v18, 16 }
 0x12c   : > { %v1098_v43 = vor.u32 %v1097_v30, %v1093_v24  ;;  %v1102_v48 = vrot.slane %v1100_v32, 1  ;;  %v4296_v58 = vsel %vm1164_vm3, %v1204_v37, %v1205_v42  ;;  %v1207_v10 = vrot.slane %v4273_v55, 1  ;;  %v3709_v37 = vld [vmem:[%s4812_s3 + $0x230] sm:$0xff]  }
 0x12d   : > { %v1109_v38 = vrot.slane %v1107_v53, 1  ;;  %v1112_v51 = vshll.u32 %v918_v49, 16  ;;  %v1208_v11 = vrot.slane %v917_v13, 1  ;;  %v4314_v30 = vpack.c.bf16 %v882_v1, %v881_v15 }
 0x12e   : > { %1947 = vmatmul.mubr.bf16.gmra.mxu1 %v4168_v7  ;;  %v4300_v61 = vsel %vm923_vm2, %v1098_v43, %v1102_v48  ;;  %v1210_v13 = vrot.slane %v4288_v18, 1  ;;  %v1211_v32 = vrot.slane %v918_v49, 1 }
 0x12f   : > { %1954 = vmatprep.mubr.bf16.mxu1 %v4224_v33  ;;  %2108 = vmatmul.mubr.bf16.gmra.mxu0 %v4219_v31  ;;  %v1110_v47 = vor.u32 %v1109_v38, %v1105_v4  ;;  %v1114_v9 = vrot.slane %v1112_v51, 1  ;;  %v4312_v24 = vsel %vm1164_vm3, %v1207_v10, %v1208_v11 }
 0x130   : > { %2115 = vmatprep.mubr.bf16.mxu0 %v4210_v19  ;;  %v4322_v36 = vsel %vm1164_vm3, %v1210_v13, %v1211_v32 }
 0x131   : > { %v4309_v20 = vsel %vm923_vm2, %v1110_v47, %v1114_v9 }
 0x136   : > { %1955 = vmatmul.mubr.bf16.gmra.mxu1 %v4191_v45 }
 0x137   : > { %1962 = vmatprep.mubr.bf16.mxu1 %v4241_v6  ;;  %2116 = vmatmul.mubr.bf16.gmra.mxu0 %v4236_v2 }
 0x138   : > { %2123 = vmatprep.mubr.bf16.mxu0 %v4226_v57 }
 0x13e   : > { %1963 = vmatmul.mubr.bf16.gmra.mxu1 %v4210_v19 }
 0x13f   : > { %1970 = vmatprep.mubr.bf16.mxu1 %v4256_v28  ;;  %2124 = vmatmul.mubr.bf16.gmra.mxu0 %v4251_v23 }
 0x140   : > { %2131 = vmatprep.mubr.bf16.mxu0 %v4243_v8 }
 0x146   : > { %1971 = vmatmul.mubr.bf16.gmra.mxu1 %v4226_v57 }
 0x147   : > { %1978 = vmatprep.mubr.bf16.mxu1 %v4271_v60  ;;  %2132 = vmatmul.mubr.bf16.gmra.mxu0 %v4266_v54 }
 0x148   : > { %2139 = vmatprep.mubr.bf16.mxu0 %v4258_v27 }
 0x14e   : > { %1979 = vmatmul.mubr.bf16.gmra.mxu1 %v4243_v8 }
 0x14f   : > { %1986 = vmatprep.mubr.bf16.mxu1 %v4286_v29  ;;  %2140 = vmatmul.mubr.bf16.gmra.mxu0 %v4281_v21 }
 0x150   : > { %2147 = vmatprep.mubr.bf16.mxu0 %v4273_v55 }
 0x156   : > { %1987 = vmatmul.mubr.bf16.gmra.mxu1 %v4258_v27 }
 0x157   : > { %1994 = vmatprep.mubr.bf16.mxu1 %v4300_v61  ;;  %2148 = vmatmul.mubr.bf16.gmra.mxu0 %v4296_v58 }
 0x158   : > { %2155 = vmatprep.mubr.bf16.mxu0 %v4288_v18 }
 0x15e   : > { %1995 = vmatmul.mubr.bf16.gmra.mxu1 %v4273_v55 }
 0x15f   : > { %2002 = vmatprep.mubr.bf16.mxu1 %v4309_v20  ;;  %2156 = vmatmul.mubr.bf16.gmra.mxu0 %v4312_v24 }
 0x160   : > { %2163 = vmatprep.mubr.bf16.mxu0 %v4314_v30 }
 0x166   : > { %2003 = vmatmul.mubr.bf16.gmra.mxu1 %v4288_v18 }
 0x167   : > { %2164 = vmatmul.mubr.bf16.gmra.mxu0 %v4322_v36  ;;  %2204 = vmatprep.mubr.bf16.mxu1 %v4041_v46  ;;  %v3710_v46 = vld [vmem:[%s4812_s3 + $0x228] sm:$0xff]  }
 0x168   : > { %2365 = vmatprep.mubr.bf16.mxu0 %v4032_v40 }
 0x16e   : > { %2205 = vmatmul.mubr.bf16.vlgmr.msra.gmra.mxu1 %v4029_v39  ;;  %v3711_v39 = vld [vmem:[%s4812_s3 + $0x220] sm:$0xff]  }
 0x16f   : > { %2212 = vmatprep.mubr.bf16.mxu1 %v4084_v0  ;;  %2366 = vmatmul.mubr.bf16.vlgmr.msra.gmra.mxu0 %v3990_v56  ;;  %v3712_v56 = vld [vmem:[%s4812_s3 + $0x218] sm:$0xff]  }
 0x170   : > { %3552 = vmatpush3.bf16.msra.mxu0 %v4012_v16  ;;  %2373 = vmatprep.mubr.bf16.mxu0 %v4081_v25 }
 0x171   : > { %3607 = vmatpush3.bf16.msra.mxu1 %v4012_v16  ;;  %3553 = vmatprep.subr.bf16.mxu0 %v3709_v37  ;;  %v3713_v16 = vld [vmem:[%s4812_s3 + $0x210] sm:$0xff]  }
 0x172   : > { %3600 = vmatprep.subr.bf16.mxu1 %v3709_v37 }
 0x174   : > { %3554 = vmatpush3.bf16.msra.mxu0 %v3709_v37 }
 0x175   : > { %3608 = vmatpush3.bf16.msra.mxu1 %v3709_v37  ;;  %3555 = vmatprep.subr.bf16.mxu0 %v3710_v46 }
 0x176   : > { %2213 = vmatmul.mubr.bf16.gmra.mxu1 %v4032_v40  ;;  %3601 = vmatprep.subr.bf16.mxu1 %v3710_v46  ;;  %v3714_v40 = vld [vmem:[%s4812_s3 + $0x208] sm:$0xff]  }
 0x177   : > { %2220 = vmatprep.mubr.bf16.mxu1 %v4106_v52  ;;  %2374 = vmatmul.mubr.bf16.gmra.mxu0 %v4034_v41  ;;  %v3715_v41 = vld [vmem:[%s4812_s3 + $0x200] sm:$0xff]  }
 0x178   : > { %2381 = vmatprep.mubr.bf16.mxu0 %v4120_v3  ;;  %3556 = vmatpush3.bf16.msra.mxu0 %v3710_v46 }
 0x179   : > { %3609 = vmatpush3.bf16.msra.mxu1 %v3710_v46  ;;  %3557 = vmatprep.subr.bf16.mxu0 %v3711_v39 }
 0x17a   : > { %3602 = vmatprep.subr.bf16.mxu1 %v3711_v39 }
 0x17c   : > { %3558 = vmatpush3.bf16.msra.mxu0 %v3711_v39 }
 0x17d   : > { %3610 = vmatpush3.bf16.msra.mxu1 %v3711_v39  ;;  %3559 = vmatprep.subr.bf16.mxu0 %v3712_v56 }
 0x17e   : > { %2221 = vmatmul.mubr.bf16.gmra.mxu1 %v4081_v25  ;;  %3603 = vmatprep.subr.bf16.mxu1 %v3712_v56  ;;  %v4385_v25 = vld [vmem:[%s4813_s4] ss:$0 sm:$0xff] }
 0x17f   : > { %2228 = vmatprep.mubr.bf16.mxu1 %v4138_v22  ;;  %2382 = vmatmul.mubr.bf16.gmra.mxu0 %v4054_v59  ;;  %v3060_v59 = vpop.f32.mrf.mxu1 }
 0x180   : > { %2389 = vmatprep.mubr.bf16.mxu0 %v4146_v34  ;;  %3560 = vmatpush3.bf16.msra.mxu0 %v3712_v56 }
 0x181   : > { %3611 = vmatpush3.bf16.msra.mxu1 %v3712_v56  ;;  %3561 = vmatprep.subr.bf16.mxu0 %v3713_v16 }
 0x182   : > { %3604 = vmatprep.subr.bf16.mxu1 %v3713_v16 }
 0x184   : > { %3562 = vmatpush3.bf16.msra.mxu0 %v3713_v16 }
 0x185   : > { %3612 = vmatpush3.bf16.msra.mxu1 %v3713_v16  ;;  %3563 = vmatprep.subr.bf16.mxu0 %v3714_v40 }
 0x186   : > { %2229 = vmatmul.mubr.bf16.gmra.mxu1 %v4120_v3  ;;  %3605 = vmatprep.subr.bf16.mxu1 %v3714_v40  ;;  %v1885_v3 = vadd.f32 %v4232_v50, %v4385_v25 }
 0x187   : > { %2236 = vmatprep.mubr.bf16.mxu1 %v4160_v63  ;;  %2390 = vmatmul.mubr.bf16.gmra.mxu0 %v4086_v26  ;;  %v3061_v26 = vpop.f32.mrf.mxu1 }
 0x188   : > { %2397 = vmatprep.mubr.bf16.mxu0 %v4165_v5  ;;  %3564 = vmatpush3.bf16.msra.mxu0 %v3714_v40 }
 0x189   : > { %3613 = vmatpush3.bf16.msra.mxu1 %v3714_v40  ;;  %3565 = vmatprep.subr.bf16.mxu0 %v3715_v41 }
 0x18a   : > { %3606 = vmatprep.subr.bf16.mxu1 %v3715_v41 }
 0x18c   : > { %3566 = vmatpush3.bf16.msra.mxu0 %v3715_v41 }
 0x18d   : > { %3614 = vmatpush3.bf16.msra.mxu1 %v3715_v41 }
 0x18e   : > { %2237 = vmatmul.mubr.bf16.gmra.mxu1 %v4146_v34  ;;  %v3062_v34 = vadd.f32 %v3061_v26, %v3060_v59 }
 0x18f   : > { %2244 = vmatprep.mubr.bf16.mxu1 %v4189_v17  ;;  %2398 = vmatmul.mubr.bf16.gmra.mxu0 %v4113_v62 }
 0x190   : > { %2405 = vmatprep.mubr.bf16.mxu0 %v4186_v44 }
 0x196   : > { %2245 = vmatmul.mubr.bf16.gmra.mxu1 %v4165_v5 }
 0x197   : > { %2252 = vmatprep.mubr.bf16.mxu1 %v4203_v12  ;;  %2406 = vmatmul.mubr.bf16.gmra.mxu0 %v4148_v35 }
 0x198   : > { %2413 = vmatprep.mubr.bf16.mxu0 %v4208_v14 }
 0x19e   : > { %2253 = vmatmul.mubr.bf16.gmra.mxu1 %v4186_v44 }
 0x19f   : > { %2260 = vmatprep.mubr.bf16.mxu1 %v4219_v31  ;;  %2414 = vmatmul.mubr.bf16.gmra.mxu0 %v4168_v7 }
 0x1a0   : > { %2421 = vmatprep.mubr.bf16.mxu0 %v4224_v33 }
 0x1a6   : > { %2261 = vmatmul.mubr.bf16.gmra.mxu1 %v4208_v14 }
 0x1a7   : > { %2268 = vmatprep.mubr.bf16.mxu1 %v4236_v2  ;;  %2422 = vmatmul.mubr.bf16.gmra.mxu0 %v4191_v45  ;;  %v1888_v45 = vadd.f32 %v3062_v34, %v4385_v25 }
 0x1a8   : > { %2429 = vmatprep.mubr.bf16.mxu0 %v4241_v6 }
 0x1ae   : > { %2269 = vmatmul.mubr.bf16.gmra.mxu1 %v4224_v33 }
 0x1af   : > { %v3169_v62 = vpop.f32.mrf.mxu0  ;;  %2276 = vmatprep.mubr.bf16.mxu1 %v4251_v23  ;;  %2430 = vmatmul.mubr.bf16.gmra.mxu0 %v4210_v19 }
 0x1b0   : > { %2437 = vmatprep.mubr.bf16.mxu0 %v4256_v28 }
 0x1b1   : > { %v3170_v35 = vpop.f32.mrf.mxu0 }
 0x1b2   : > { %v3171_v5 = vadd.f32 %v3170_v35, %v3169_v62 }
 0x1b3   : > { %v3172_v7 = vpop.f32.mrf.mxu0 }
 0x1b4   : > { %v4393_v44 = vadd.f32 %v3171_v5, %v1885_v3  ;;  %v883_v5 = vld [vmem:[#allocation2 + $0x190] sm:$0x3] }
 0x1b5   : > { %v3173_v14 = vpop.f32.mrf.mxu0 }
 0x1b6   : > { %v3174_v33 = vadd.f32 %v3173_v14, %v3172_v7  ;;  %v3063_v42 = vpop.f32.mrf.mxu1  ;;  %2277 = vmatmul.mubr.bf16.gmra.mxu1 %v4241_v6 }
 0x1b7   : > { %v3175_v43 = vpop.f32.mrf.mxu0  ;;  %2284 = vmatprep.mubr.bf16.mxu1 %v4266_v54  ;;  %2438 = vmatmul.mubr.bf16.gmra.mxu0 %v4226_v57 }
 0x1b8   : > { %v4399_v19 = vadd.f32 %v3174_v33, %v1888_v45  ;;  %v3064_v50 = vpop.f32.mrf.mxu1  ;;  %2445 = vmatprep.mubr.bf16.mxu0 %v4271_v60 }
 0x1b9   : > { %v3065_v48 = vadd.f32 %v3064_v50, %v3063_v42  ;;  %v3176_v49 = vpop.f32.mrf.mxu0  ;;  %v4423_v50 = vpack.c.bf16 %v883_v5, %v883_v5 }
 0x1ba   : > { %v3177_v53 = vadd.f32 %v3176_v49, %v3175_v43  ;;  %v3066_v4 = vpop.f32.mrf.mxu1 }
 0x1bb   : > { %v1893_v38 = vadd.f32 %v3065_v48, %v4385_v25  ;;  %v3178_v51 = vpop.f32.mrf.mxu0  ;;  %v1232_v48 = vshll.u32 %v4314_v30, 16 }
 0x1bc   : > { %v3067_v47 = vpop.f32.mrf.mxu1 }
 0x1bd   : > { %v4403_v9 = vadd.f32 %v3177_v53, %v1893_v38  ;;  %v3068_v6 = vadd.f32 %v3067_v47, %v3066_v4  ;;  %v3179_v10 = vpop.f32.mrf.mxu0  ;;  %v3716_v38 = vld [vmem:[#allocation2] sm:$0xff] }
 0x1be   : > { %v3180_v11 = vadd.f32 %v3179_v10, %v3178_v51  ;;  %v3069_v15 = vpop.f32.mrf.mxu1  ;;  %2285 = vmatmul.mubr.bf16.gmra.mxu1 %v4256_v28  ;;  %v4428_v51 = vpack.c.bf16 %v3716_v38, %v3716_v38  ;;  %v886_v10 = vld [vmem:[#allocation2 + $0x1a8] sm:$0x3] }
 0x1bf   : > { %v1896_v57 = vadd.f32 %v3068_v6, %v4385_v25  ;;  %v3181_v1 = vpop.f32.mrf.mxu0  ;;  %2292 = vmatprep.mubr.bf16.mxu1 %v4281_v21  ;;  %2446 = vmatmul.mubr.bf16.gmra.mxu0 %v4243_v8 }
 0x1c0   : > { %v3070_v13 = vpop.f32.mrf.mxu1  ;;  %2453 = vmatprep.mubr.bf16.mxu0 %v4286_v29 }
 0x1c1   : > { %v4410_v32 = vadd.f32 %v3180_v11, %v1896_v57  ;;  %v3071_v37 = vadd.f32 %v3070_v13, %v3069_v15  ;;  %v3182_v46 = vpop.f32.mrf.mxu0  ;;  %v1230_v57 = vshrl.u32 %v4314_v30, 16  ;;  %v1237_v13 = vshll.u32 %v4423_v50, 16 }
 0x1c2   : > { %v3183_v39 = vadd.f32 %v3182_v46, %v3181_v1  ;;  %v3072_v56 = vpop.f32.mrf.mxu1  ;;  %v1234_v1 = vrot.slane %v1232_v48, 1 }
 0x1c3   : > { %v1901_v16 = vadd.f32 %v3071_v37, %v4385_v25  ;;  %v3184_v40 = vpop.f32.mrf.mxu0 }
 0x1c4   : > { %v3073_v28 = vpop.f32.mrf.mxu1 }
 0x1c5   : > { %v4413_v41 = vadd.f32 %v3183_v39, %v1901_v16  ;;  %v3074_v59 = vadd.f32 %v3073_v28, %v3072_v56  ;;  %v3185_v26 = vpop.f32.mrf.mxu0  ;;  %v4439_v56 = vpack.c.bf16 %v886_v10, %v886_v10  ;;  %v1251_v16 = vshll.u32 %v4428_v51, 16 }
 0x1c6   : > { %v3186_v62 = vadd.f32 %v3185_v26, %v3184_v40  ;;  %v3075_v3 = vpop.f32.mrf.mxu1  ;;  %2293 = vmatmul.mubr.bf16.gmra.mxu1 %v4271_v60  ;;  %v1235_v26 = vor.u32 %v1234_v1, %v1230_v57 }
 0x1c7   : > { %v1904_v8 = vadd.f32 %v3074_v59, %v4385_v25  ;;  %v3187_v34 = vpop.f32.mrf.mxu0  ;;  %2300 = vmatprep.mubr.bf16.mxu1 %v4296_v58  ;;  %2454 = vmatmul.mubr.bf16.gmra.mxu0 %v4258_v27 }
 0x1c8   : > { %v3076_v35 = vpop.f32.mrf.mxu1  ;;  %2461 = vmatprep.mubr.bf16.mxu0 %v4300_v61 }
 0x1c9   : > { %v4420_v7 = vadd.f32 %v3186_v62, %v1904_v8  ;;  %v3077_v45 = vadd.f32 %v3076_v35, %v3075_v3  ;;  %v3188_v14 = vpop.f32.mrf.mxu0  ;;  %v1239_v62 = vrot.slane %v1237_v13, 1  ;;  %v1249_v8 = vshrl.u32 %v4428_v51, 16 }
 0x1ca   : > { %v3189_v33 = vadd.f32 %v3188_v14, %v3187_v34  ;;  %v3078_v42 = vpop.f32.mrf.mxu1  ;;  %v1256_v14 = vshll.u32 %v4439_v56, 16 }
 0x1cb   : > { %v1909_v43 = vadd.f32 %v3077_v45, %v4385_v25  ;;  %v3190_v60 = vpop.f32.mrf.mxu0  ;;  %v1253_v45 = vrot.slane %v1251_v16, 1  ;;  %v1240_v48 = vsel %vm923_vm2, %v1235_v26, %v1239_v62 }
 0x1cc   : > { %v3079_v49 = vpop.f32.mrf.mxu1 }
 0x1cd   : > { %v4426_v53 = vadd.f32 %v3189_v33, %v1909_v43  ;;  %v3080_v27 = vadd.f32 %v3079_v49, %v3078_v42  ;;  %v3191_v4 = vpop.f32.mrf.mxu0 }
 0x1ce   : > { %v3192_v47 = vadd.f32 %v3191_v4, %v3190_v60  ;;  %v3081_v6 = vpop.f32.mrf.mxu1  ;;  %2301 = vmatmul.mubr.bf16.gmra.mxu1 %v4286_v29 }
 0x1cf   : > { %v1912_v11 = vadd.f32 %v3080_v27, %v4385_v25  ;;  %v3193_v15 = vpop.f32.mrf.mxu0  ;;  %2308 = vmatprep.mubr.bf16.mxu1 %v4312_v24  ;;  %2462 = vmatmul.mubr.bf16.gmra.mxu0 %v4273_v55 }
 0x1d0   : > { %v3082_v37 = vpop.f32.mrf.mxu1  ;;  %2469 = vmatprep.mubr.bf16.mxu0 %v4309_v20 }
 0x1d1   : > { %v4437_v46 = vadd.f32 %v3192_v47, %v1912_v11  ;;  %v3083_v39 = vadd.f32 %v3082_v37, %v3081_v6  ;;  %v3194_v29 = vpop.f32.mrf.mxu0  ;;  %v1254_v47 = vor.u32 %v1253_v45, %v1249_v8  ;;  %v1258_v6 = vrot.slane %v1256_v14, 1 }
 0x1d2   : > { %v3195_v40 = vadd.f32 %v3194_v29, %v3193_v15  ;;  %v3084_v28 = vpop.f32.mrf.mxu1  ;;  %v1245_v15 = vrot.slane %v4423_v50, 1 }
 0x1d3   : > { %v1917_v55 = vadd.f32 %v3083_v39, %v4385_v25  ;;  %v3196_v59 = vpop.f32.mrf.mxu0  ;;  %v1259_v29 = vsel %vm923_vm2, %v1254_v47, %v1258_v6 }
 0x1d4   : > { %v3085_v3 = vpop.f32.mrf.mxu1 }
 0x1d5   : > { %v4444_v34 = vadd.f32 %v3195_v40, %v1917_v55  ;;  %v3086_v35 = vadd.f32 %v3085_v3, %v3084_v28  ;;  %v3197_v5 = vpop.f32.mrf.mxu0 }
 0x1d6   : > { %v3198_v33 = vadd.f32 %v3197_v5, %v3196_v59  ;;  %v3087_v42 = vpop.f32.mrf.mxu1  ;;  %2309 = vmatmul.mubr.bf16.gmra.mxu1 %v4300_v61  ;;  %v1244_v61 = vrot.slane %v4314_v30, 1 }
 0x1d7   : > { %v1920_v43 = vadd.f32 %v3086_v35, %v4385_v25  ;;  %v3199_v60 = vpop.f32.mrf.mxu0  ;;  %2316 = vmatprep.mubr.bf16.mxu1 %v4322_v36  ;;  %2470 = vmatmul.mubr.bf16.gmra.mxu0 %v4288_v18 }
 0x1d8   : > { %v3088_v49 = vpop.f32.mrf.mxu1  ;;  %2477 = vmatprep.mubr.bf16.mxu0 %v1240_v48  ;;  %v4462_v28 = vsel %vm1164_vm3, %v1244_v61, %v1245_v15 }
 0x1d9   : > { %v4452_v27 = vadd.f32 %v3198_v33, %v1920_v43  ;;  %v3089_v4 = vadd.f32 %v3088_v49, %v3087_v42  ;;  %v3200_v38 = vpop.f32.mrf.mxu0 }
 0x1da   : > { %v3201_v10 = vadd.f32 %v3200_v38, %v3199_v60  ;;  %v3090_v11 = vpop.f32.mrf.mxu1 }
 0x1db   : > { %v1925_v57 = vadd.f32 %v3089_v4, %v4385_v25  ;;  %v3202_v1 = vpop.f32.mrf.mxu0 }
 0x1dc   : > { %v3091_v18 = vpop.f32.mrf.mxu1 }
 0x1dd   : > { %v4457_v13 = vadd.f32 %v3201_v10, %v1925_v57  ;;  %v3092_v37 = vadd.f32 %v3091_v18, %v3090_v11  ;;  %v3203_v39 = vpop.f32.mrf.mxu0 }
 0x1de   : > { %v3204_v16 = vadd.f32 %v3203_v39, %v3202_v1  ;;  %v3093_v40 = vpop.f32.mrf.mxu1  ;;  %2317 = vmatmul.mubr.bf16.gmra.mxu1 %v4309_v20 }
 0x1df   : > { %v1928_v55 = vadd.f32 %v3092_v37, %v4385_v25  ;;  %v3205_v50 = vpop.f32.mrf.mxu0  ;;  %2324 = vmatprep.mubr.bf16.mxu1 %v4462_v28  ;;  %2478 = vmatmul.mubr.bf16.gmra.mxu0 %v4314_v30 }
 0x1e0   : > { %v3094_v59 = vpop.f32.mrf.mxu1  ;;  %2485 = vmatprep.mubr.bf16.mxu0 %v1259_v29 }
 0x1e1   : > { %v4467_v26 = vadd.f32 %v3204_v16, %v1928_v55  ;;  %v3095_v62 = vadd.f32 %v3094_v59, %v3093_v40  ;;  %v3206_v3 = vpop.f32.mrf.mxu0 }
 0x1e2   : > { %v3207_v8 = vadd.f32 %v3206_v3, %v3205_v50  ;;  %v3096_v35 = vpop.f32.mrf.mxu1 }
 0x1e3   : > { %v1933_v20 = vadd.f32 %v3095_v62, %v4385_v25  ;;  %v3208_v5 = vpop.f32.mrf.mxu0 }
 0x1e4   : > { %v3097_v45 = vpop.f32.mrf.mxu1 }
 0x1e5   : > { %v4470_v14 = vadd.f32 %v3207_v8, %v1933_v20  ;;  %v3098_v33 = vadd.f32 %v3097_v45, %v3096_v35  ;;  %v3209_v42 = vpop.f32.mrf.mxu0 }
 0x1e6   : > { %v3210_v43 = vadd.f32 %v3209_v42, %v3208_v5  ;;  %v3099_v60 = vpop.f32.mrf.mxu1  ;;  %2325 = vmatmul.mubr.bf16.gmra.mxu1 %v1240_v48 }
 0x1e7   : > { %v1936_v30 = vadd.f32 %v3098_v33, %v4385_v25  ;;  %v3211_v49 = vpop.f32.mrf.mxu0  ;;  %2486 = vmatmul.mubr.bf16.gmra.mxu0 %v4428_v51  ;;  %3571 = vmatprep.mubr.bf16.mxu1 %v4138_v22 }
 0x1e8   : > { %v3100_v4 = vpop.f32.mrf.mxu1  ;;  %3567 = vmatprep.mubr.bf16.mxu0 %v4084_v0 }
 0x1e9   : > { %v4476_v38 = vadd.f32 %v3210_v43, %v1936_v30  ;;  %v3101_v47 = vadd.f32 %v3100_v4, %v3099_v60  ;;  %v3212_v6 = vpop.f32.mrf.mxu0 }
 0x1ea   : > { %v3213_v10 = vadd.f32 %v3212_v6, %v3211_v49  ;;  %v3102_v11 = vpop.f32.mrf.mxu1 }
 0x1eb   : > { %v1941_v61 = vadd.f32 %v3101_v47, %v4385_v25  ;;  %v3214_v15 = vpop.f32.mrf.mxu0 }
 0x1ec   : > { %v3103_v48 = vpop.f32.mrf.mxu1 }
 0x1ed   : > { %v4479_v57 = vadd.f32 %v3213_v10, %v1941_v61  ;;  %v3104_v1 = vadd.f32 %v3103_v48, %v3102_v11  ;;  %v3215_v18 = vpop.f32.mrf.mxu0 }
 0x1ee   : > { %v3216_v37 = vadd.f32 %v3215_v18, %v3214_v15  ;;  %v3105_v39 = vpop.f32.mrf.mxu1  ;;  %3572 = vmatmul.mubr.bf16.vlgmr.msra.gmra.mxu1 %v4160_v63 }
 0x1ef   : > { %v1944_v0 = vadd.f32 %v3104_v1, %v4385_v25  ;;  %v3217_v22 = vpop.f32.mrf.mxu0  ;;  %3568 = vmatmul.mubr.bf16.vlgmr.msra.gmra.mxu0 %v4106_v52  ;;  %3575 = vmatprep.mubr.bf16.mxu1 %v4189_v17 }
 0x1f0   : > { %v3106_v29 = vpop.f32.mrf.mxu1 }
 0x1f1   : > { %v4485_v16 = vadd.f32 %v3216_v37, %v1944_v0  ;;  %v3107_v40 = vadd.f32 %v3106_v29, %v3105_v39  ;;  %v3218_v55 = vpop.f32.mrf.mxu0 }
 0x1f2   : > { %v3219_v50 = vadd.f32 %v3218_v55, %v3217_v22  ;;  %v3108_v59 = vpop.f32.mrf.mxu1 }
 0x1f3   : > { %v1949_v62 = vadd.f32 %v3107_v40, %v4385_v25  ;;  %v3220_v3 = vpop.f32.mrf.mxu0 }
 0x1f4   : > { %v3109_v8 = vpop.f32.mrf.mxu1 }
 0x1f5   : > { %v4488_v35 = vadd.f32 %v3219_v50, %v1949_v62  ;;  %v3110_v63 = vadd.f32 %v3109_v8, %v3108_v59  ;;  %v3221_v20 = vpop.f32.mrf.mxu0 }
 0x1f6   : > { %v3222_v5 = vadd.f32 %v3221_v20, %v3220_v3  ;;  %v3111_v45 = vpop.f32.mrf.mxu1  ;;  %3576 = vmatmul.mubr.bf16.gmra.mxu1 %v4203_v12 }
 0x1f7   : > { %v1952_v52 = vadd.f32 %v3110_v63, %v4385_v25  ;;  %v3223_v17 = vpop.f32.mrf.mxu0  ;;  %3579 = vmatprep.mubr.bf16.mxu1 %v4219_v31 }
 0x1f8   : > { %v3112_v33 = vpop.f32.mrf.mxu1 }
 0x1f9   : > { %v4493_v42 = vadd.f32 %v3222_v5, %v1952_v52  ;;  %v3113_v43 = vadd.f32 %v3112_v33, %v3111_v45  ;;  %v3224_v60 = vpop.f32.mrf.mxu0 }
 0x1fa   : > { %v3225_v30 = vadd.f32 %v3224_v60, %v3223_v17  ;;  %v3114_v49 = vpop.f32.mrf.mxu1 }
 0x1fb   : > { %v1957_v4 = vadd.f32 %v3113_v43, %v4385_v25  ;;  %v3226_v47 = vpop.f32.mrf.mxu0 }
 0x1fc   : > { %v3115_v6 = vpop.f32.mrf.mxu1 }
 0x1fd   : > { %v4496_v10 = vadd.f32 %v3225_v30, %v1957_v4  ;;  %v3116_v11 = vadd.f32 %v3115_v6, %v3114_v49  ;;  %v3227_v12 = vpop.f32.mrf.mxu0 }
 0x1fe   : > { %v3228_v61 = vadd.f32 %v3227_v12, %v3226_v47  ;;  %v3117_v15 = vpop.f32.mrf.mxu1  ;;  %3580 = vmatmul.mubr.bf16.gmra.mxu1 %v4236_v2 }
 0x1ff   : > { %v1960_v31 = vadd.f32 %v3116_v11, %v4385_v25  ;;  %v3229_v48 = vpop.f32.mrf.mxu0  ;;  %3583 = vmatprep.mubr.bf16.mxu1 %v4251_v23 }
 0x200   : > { %v3118_v1 = vpop.f32.mrf.mxu1 }
 0x201   : > { %v4501_v18 = vadd.f32 %v3228_v61, %v1960_v31  ;;  %v3119_v37 = vadd.f32 %v3118_v1, %v3117_v15  ;;  %v3230_v39 = vpop.f32.mrf.mxu0 }
 0x202   : > { %v3231_v0 = vadd.f32 %v3230_v39, %v3229_v48  ;;  %v3120_v22 = vpop.f32.mrf.mxu1 }
 0x203   : > { %v1965_v29 = vadd.f32 %v3119_v37, %v4385_v25  ;;  %v3232_v40 = vpop.f32.mrf.mxu0 }
 0x204   : > { %v3121_v55 = vpop.f32.mrf.mxu1 }
 0x205   : > { %v4504_v50 = vadd.f32 %v3231_v0, %v1965_v29  ;;  %v3122_v59 = vadd.f32 %v3121_v55, %v3120_v22  ;;  %v3233_v2 = vpop.f32.mrf.mxu0 }
 0x206   : > { %v3234_v62 = vadd.f32 %v3233_v2, %v3232_v40  ;;  %v3123_v3 = vpop.f32.mrf.mxu1  ;;  %3584 = vmatmul.mubr.bf16.gmra.mxu1 %v4266_v54  ;;  %v1264_v2 = vrot.slane %v4439_v56, 1 }
 0x207   : > { %v1968_v23 = vadd.f32 %v3122_v59, %v4385_v25  ;;  %v3235_v8 = vpop.f32.mrf.mxu0  ;;  %3587 = vmatprep.mubr.bf16.mxu1 %v4281_v21  ;;  %v1263_v59 = vrot.slane %v4428_v51, 1 }
 0x208   : > { %v3124_v63 = vpop.f32.mrf.mxu1 }
 0x209   : > { %v4509_v20 = vadd.f32 %v3234_v62, %v1968_v23  ;;  %v3125_v5 = vadd.f32 %v3124_v63, %v3123_v3  ;;  %v3236_v45 = vpop.f32.mrf.mxu0 }
 0x20a   : > { %v3237_v52 = vadd.f32 %v3236_v45, %v3235_v8  ;;  %v3126_v17 = vpop.f32.mrf.mxu1 }
 0x20b   : > { %v1973_v33 = vadd.f32 %v3125_v5, %v4385_v25  ;;  %v3238_v43 = vpop.f32.mrf.mxu0 }
 0x20c   : > { %v3127_v60 = vpop.f32.mrf.mxu1 }
 0x20d   : > { %v4512_v30 = vadd.f32 %v3237_v52, %v1973_v33  ;;  %v3128_v49 = vadd.f32 %v3127_v60, %v3126_v17  ;;  %v3239_v54 = vpop.f32.mrf.mxu0 }
 0x20e   : > { %v3240_v4 = vadd.f32 %v3239_v54, %v3238_v43  ;;  %v3129_v47 = vpop.f32.mrf.mxu1  ;;  %3588 = vmatmul.mubr.bf16.gmra.mxu1 %v4296_v58 }
 0x20f   : > { %v1976_v21 = vadd.f32 %v3128_v49, %v4385_v25  ;;  %v3241_v6 = vpop.f32.mrf.mxu0  ;;  %3591 = vmatprep.mubr.bf16.mxu1 %v4312_v24 }
 0x210   : > { %v3130_v11 = vpop.f32.mrf.mxu1 }
 0x211   : > { %v4517_v12 = vadd.f32 %v3240_v4, %v1976_v21  ;;  %v3131_v61 = vadd.f32 %v3130_v11, %v3129_v47  ;;  %v3242_v15 = vpop.f32.mrf.mxu0 }
 0x212   : > { %v3243_v31 = vadd.f32 %v3242_v15, %v3241_v6  ;;  %v3132_v48 = vpop.f32.mrf.mxu1 }
 0x213   : > { %v1981_v1 = vadd.f32 %v3131_v61, %v4385_v25  ;;  %v3244_v37 = vpop.f32.mrf.mxu0 }
 0x214   : > { %v3133_v39 = vpop.f32.mrf.mxu1 }
 0x215   : > { %v4520_v0 = vadd.f32 %v3243_v31, %v1981_v1  ;;  %v3134_v22 = vadd.f32 %v3133_v39, %v3132_v48  ;;  %v3245_v58 = vpop.f32.mrf.mxu0 }
 0x216   : > { %v3246_v29 = vadd.f32 %v3245_v58, %v3244_v37  ;;  %v3135_v40 = vpop.f32.mrf.mxu1  ;;  %3592 = vmatmul.mubr.bf16.gmra.mxu1 %v4322_v36  ;;  %v1265_v36 = vsel %vm1164_vm3, %v1263_v59, %v1264_v2 }
 0x217   : > { %v1984_v24 = vadd.f32 %v3134_v22, %v4385_v25  ;;  %v3247_v55 = vpop.f32.mrf.mxu0  ;;  %3595 = vmatprep.mubr.bf16.mxu1 %v4462_v28 }
 0x218   : > { %v3136_v62 = vpop.f32.mrf.mxu1 }
 0x219   : > { %v4527_v3 = vadd.f32 %v3246_v29, %v1984_v24  ;;  %v3137_v23 = vadd.f32 %v3136_v62, %v3135_v40  ;;  %v3248_v8 = vpop.f32.mrf.mxu0 }
 0x21a   : > { %v3249_v63 = vadd.f32 %v3248_v8, %v3247_v55  ;;  %v3138_v5 = vpop.f32.mrf.mxu1 }
 0x21b   : > { %v1989_v45 = vadd.f32 %v3137_v23, %v4385_v25  ;;  %v3250_v52 = vpop.f32.mrf.mxu0 }
 0x21c   : > { %v3139_v17 = vpop.f32.mrf.mxu1 }
 0x21d   : > { %v4531_v33 = vadd.f32 %v3249_v63, %v1989_v45  ;;  %v3140_v28 = vadd.f32 %v3139_v17, %v3138_v5  ;;  %v3251_v43 = vpop.f32.mrf.mxu0 }
 0x21e   : > { %v3252_v51 = vadd.f32 %v3251_v43, %v3250_v52  ;;  %v3141_v60 = vpop.f32.mrf.mxu1  ;;  %3596 = vmatmul.mubr.bf16.gmra.mxu1 %v1265_v36 }
 0x21f   : > { %v1992_v56 = vadd.f32 %v3140_v28, %v4385_v25  ;;  %v3253_v49 = vpop.f32.mrf.mxu0 }
 0x220   : > { %v3142_v54 = vpop.f32.mrf.mxu1 }
 0x221   : > { %v4534_v4 = vadd.f32 %v3252_v51, %v1992_v56  ;;  %v3143_v47 = vadd.f32 %v3142_v54, %v3141_v60  ;;  %v3254_v21 = vpop.f32.mrf.mxu0 }
 0x222   : > { %v3255_v6 = vadd.f32 %v3254_v21, %v3253_v49  ;;  %v3144_v11 = vpop.f32.mrf.mxu1 }
 0x223   : > { %v1997_v61 = vadd.f32 %v3143_v47, %v4385_v25  ;;  %v3256_v15 = vpop.f32.mrf.mxu0 }
 0x224   : > { %v3145_v31 = vpop.f32.mrf.mxu1 }
 0x225   : > { %v4537_v48 = vadd.f32 %v3255_v6, %v1997_v61  ;;  %v3146_v1 = vadd.f32 %v3145_v31, %v3144_v11  ;;  %v3257_v37 = vpop.f32.mrf.mxu0 }
 0x226   : > { %v3258_v39 = vadd.f32 %v3257_v37, %v3256_v15  ;;  %v3147_v22 = vpop.f32.mrf.mxu1 }
 0x227   : > { %v2000_v58 = vadd.f32 %v3146_v1, %v4385_v25  ;;  %v3259_v29 = vpop.f32.mrf.mxu0 }
 0x228   : > { %v3148_v40 = vpop.f32.mrf.mxu1 }
 0x229   : > { %v4540_v24 = vadd.f32 %v3258_v39, %v2000_v58  ;;  %v3149_v55 = vadd.f32 %v3148_v40, %v3147_v22  ;;  %v3260_v59 = vpop.f32.mrf.mxu0 }
 0x22a   : > { %v3261_v2 = vadd.f32 %v3260_v59, %v3259_v29  ;;  %v3150_v62 = vpop.f32.mrf.mxu1 }
 0x22b   : > { %4817 = vst [vmem:[#allocation3_spill] sm:$0xff] %v4540_v24  ;;  %v2005_v23 = vadd.f32 %v3149_v55, %v4385_v25  ;;  %v3262_v8 = vpop.f32.mrf.mxu0 }
 0x22c   : > { %v3151_v63 = vpop.f32.mrf.mxu1 }
 0x22d   : > { %v4543_v5 = vadd.f32 %v3261_v2, %v2005_v23  ;;  %v3152_v45 = vadd.f32 %v3151_v63, %v3150_v62  ;;  %v3263_v52 = vpop.f32.mrf.mxu0 }
 0x22e   : > { %v3264_v36 = vadd.f32 %v3263_v52, %v3262_v8  ;;  %v3281_v17 = vpop.f32.mrf.mxu1 }
 0x22f   : > { %v2008_v28 = vadd.f32 %v3152_v45, %v4385_v25  ;;  %v3393_v43 = vpop.f32.mrf.mxu0 }
 0x230   : > { %v3282_v51 = vpop.f32.mrf.mxu1 }
 0x231   : > { %v4546_v60 = vadd.f32 %v3264_v36, %v2008_v28  ;;  %v3283_v56 = vadd.f32 %v3282_v51, %v3281_v17  ;;  %v3394_v49 = vpop.f32.mrf.mxu0 }
 0x232   : > { %v3395_v54 = vadd.f32 %v3394_v49, %v3393_v43  ;;  %v3284_v47 = vpop.f32.mrf.mxu1 }
 0x233   : > { %4818 = vst [vmem:[#allocation4_spill] sm:$0xff] %v4546_v60  ;;  %v2207_v21 = vadd.f32 %v3283_v56, %v4393_v44  ;;  %v3396_v6 = vpop.f32.mrf.mxu0 }
 0x234   : > { %v3285_v11 = vpop.f32.mrf.mxu1 }
 0x235   : > { %v3286_v61 = vadd.f32 %v3285_v11, %v3284_v47  ;;  %v3397_v15 = vpop.f32.mrf.mxu0  ;;  %v4549_v31 = vadd.f32 %v3395_v54, %v2207_v21 }
 0x236   : > { %v3398_v1 = vadd.f32 %v3397_v15, %v3396_v6  ;;  %v3287_v37 = vpop.f32.mrf.mxu1 }
 0x237   : > { %v2210_v25 = vadd.f32 %v3286_v61, %v4399_v19  ;;  %v3399_v39 = vpop.f32.mrf.mxu0 }
 0x238   : > { %v3288_v22 = vpop.f32.mrf.mxu1 }
 0x239   : > { %v3289_v58 = vadd.f32 %v3288_v22, %v3287_v37  ;;  %v3400_v29 = vpop.f32.mrf.mxu0  ;;  %v4552_v40 = vadd.f32 %v3398_v1, %v2210_v25 }
 0x23a   : > { %v3401_v55 = vadd.f32 %v3400_v29, %v3399_v39  ;;  %v3290_v59 = vpop.f32.mrf.mxu1 }
 0x23b   : > { %v2215_v44 = vadd.f32 %v3289_v58, %v4403_v9  ;;  %v3402_v2 = vpop.f32.mrf.mxu0 }
 0x23c   : > { %v3291_v62 = vpop.f32.mrf.mxu1 }
 0x23d   : > { %v3292_v23 = vadd.f32 %v3291_v62, %v3290_v59  ;;  %v3403_v8 = vpop.f32.mrf.mxu0  ;;  %v4555_v63 = vadd.f32 %v3401_v55, %v2215_v44 }
 0x23e   : > { %v3404_v45 = vadd.f32 %v3403_v8, %v3402_v2  ;;  %v3293_v52 = vpop.f32.mrf.mxu1 }
 0x23f   : > { %v2218_v19 = vadd.f32 %v3292_v23, %v4410_v32  ;;  %v3405_v36 = vpop.f32.mrf.mxu0 }
 0x240   : > { %v3294_v17 = vpop.f32.mrf.mxu1 }
 0x241   : > { %v3295_v28 = vadd.f32 %v3294_v17, %v3293_v52  ;;  %v3406_v43 = vpop.f32.mrf.mxu0  ;;  %v4558_v51 = vadd.f32 %v3404_v45, %v2218_v19 }
 0x242   : > { %v3407_v56 = vadd.f32 %v3406_v43, %v3405_v36  ;;  %v3296_v49 = vpop.f32.mrf.mxu1 }
 0x243   : > { %v2223_v9 = vadd.f32 %v3295_v28, %v4413_v41  ;;  %v3408_v54 = vpop.f32.mrf.mxu0 }
 0x244   : > { %v3297_v47 = vpop.f32.mrf.mxu1 }
 0x245   : > { %v3298_v21 = vadd.f32 %v3297_v47, %v3296_v49  ;;  %v3409_v6 = vpop.f32.mrf.mxu0  ;;  %v4561_v11 = vadd.f32 %v3407_v56, %v2223_v9 }
 0x246   : > { %v3410_v61 = vadd.f32 %v3409_v6, %v3408_v54  ;;  %v3299_v15 = vpop.f32.mrf.mxu1 }
 0x247   : > { %v2226_v32 = vadd.f32 %v3298_v21, %v4420_v7  ;;  %v3411_v1 = vpop.f32.mrf.mxu0 }
 0x248   : > { %v3300_v37 = vpop.f32.mrf.mxu1 }
 0x249   : > { %v3301_v25 = vadd.f32 %v3300_v37, %v3299_v15  ;;  %v3412_v39 = vpop.f32.mrf.mxu0  ;;  %v4564_v22 = vadd.f32 %v3410_v61, %v2226_v32 }
 0x24a   : > { %v3413_v58 = vadd.f32 %v3412_v39, %v3411_v1  ;;  %v3302_v29 = vpop.f32.mrf.mxu1 }
 0x24b   : > { %v2231_v41 = vadd.f32 %v3301_v25, %v4426_v53  ;;  %v3414_v55 = vpop.f32.mrf.mxu0 }
 0x24c   : > { %v3303_v59 = vpop.f32.mrf.mxu1 }
 0x24d   : > { %v3304_v44 = vadd.f32 %v3303_v59, %v3302_v29  ;;  %v3415_v2 = vpop.f32.mrf.mxu0  ;;  %v4567_v62 = vadd.f32 %v3413_v58, %v2231_v41 }
 0x24e   : > { %v3416_v23 = vadd.f32 %v3415_v2, %v3414_v55  ;;  %v3305_v8 = vpop.f32.mrf.mxu1 }
 0x24f   : > { %v2234_v7 = vadd.f32 %v3304_v44, %v4437_v46  ;;  %v3417_v45 = vpop.f32.mrf.mxu0 }
 0x250   : > { %v3306_v52 = vpop.f32.mrf.mxu1 }
 0x251   : > { %v3307_v19 = vadd.f32 %v3306_v52, %v3305_v8  ;;  %v3418_v36 = vpop.f32.mrf.mxu0  ;;  %v4570_v17 = vadd.f32 %v3416_v23, %v2234_v7 }
 0x252   : > { %v3419_v28 = vadd.f32 %v3418_v36, %v3417_v45  ;;  %v3308_v43 = vpop.f32.mrf.mxu1 }
 0x253   : > { %v2239_v53 = vadd.f32 %v3307_v19, %v4444_v34  ;;  %v3420_v56 = vpop.f32.mrf.mxu0 }
 0x254   : > { %v3309_v49 = vpop.f32.mrf.mxu1 }
 0x255   : > { %v3310_v9 = vadd.f32 %v3309_v49, %v3308_v43  ;;  %v3421_v54 = vpop.f32.mrf.mxu0  ;;  %v4573_v47 = vadd.f32 %v3419_v28, %v2239_v53 }
 0x256   : > { %v3422_v21 = vadd.f32 %v3421_v54, %v3420_v56  ;;  %v3311_v6 = vpop.f32.mrf.mxu1 }
 0x257   : > { %v2242_v46 = vadd.f32 %v3310_v9, %v4452_v27  ;;  %v3423_v61 = vpop.f32.mrf.mxu0 }
 0x258   : > { %v3312_v15 = vpop.f32.mrf.mxu1 }
 0x259   : > { %v3313_v32 = vadd.f32 %v3312_v15, %v3311_v6  ;;  %v3424_v1 = vpop.f32.mrf.mxu0  ;;  %v4576_v37 = vadd.f32 %v3422_v21, %v2242_v46 }
 0x25a   : > { %v3425_v25 = vadd.f32 %v3424_v1, %v3423_v61  ;;  %v3314_v39 = vpop.f32.mrf.mxu1 }
 0x25b   : > { %v2247_v34 = vadd.f32 %v3313_v32, %v4457_v13  ;;  %v3426_v58 = vpop.f32.mrf.mxu0 }
 0x25c   : > { %v3315_v29 = vpop.f32.mrf.mxu1 }
 0x25d   : > { %v3316_v41 = vadd.f32 %v3315_v29, %v3314_v39  ;;  %v3427_v55 = vpop.f32.mrf.mxu0  ;;  %v4579_v59 = vadd.f32 %v3425_v25, %v2247_v34 }
 0x25e   : > { %v3428_v44 = vadd.f32 %v3427_v55, %v3426_v58  ;;  %v3317_v2 = vpop.f32.mrf.mxu1 }
 0x25f   : > { %v2250_v27 = vadd.f32 %v3316_v41, %v4467_v26  ;;  %v3429_v23 = vpop.f32.mrf.mxu0 }
 0x260   : > { %v3318_v8 = vpop.f32.mrf.mxu1 }
 0x261   : > { %v3319_v7 = vadd.f32 %v3318_v8, %v3317_v2  ;;  %v3430_v45 = vpop.f32.mrf.mxu0  ;;  %v4582_v52 = vadd.f32 %v3428_v44, %v2250_v27 }
 0x262   : > { %v3431_v19 = vadd.f32 %v3430_v45, %v3429_v23  ;;  %v3320_v36 = vpop.f32.mrf.mxu1 }
 0x263   : > { %v2255_v13 = vadd.f32 %v3319_v7, %v4470_v14  ;;  %v3432_v28 = vpop.f32.mrf.mxu0 }
 0x264   : > { %v3321_v43 = vpop.f32.mrf.mxu1 }
 0x265   : > { %v3322_v53 = vadd.f32 %v3321_v43, %v3320_v36  ;;  %v3433_v56 = vpop.f32.mrf.mxu0  ;;  %v4585_v49 = vadd.f32 %v3431_v19, %v2255_v13 }
 0x266   : > { %v3434_v9 = vadd.f32 %v3433_v56, %v3432_v28  ;;  %v3323_v54 = vpop.f32.mrf.mxu1 }
 0x267   : > { %v2258_v26 = vadd.f32 %v3322_v53, %v4476_v38  ;;  %v3435_v21 = vpop.f32.mrf.mxu0 }
 0x268   : > { %v3324_v6 = vpop.f32.mrf.mxu1 }
 0x269   : > { %v3325_v46 = vadd.f32 %v3324_v6, %v3323_v54  ;;  %v3436_v61 = vpop.f32.mrf.mxu0  ;;  %v4588_v15 = vadd.f32 %v3434_v9, %v2258_v26 }
 0x26a   : > { %v3437_v32 = vadd.f32 %v3436_v61, %v3435_v21  ;;  %v3326_v1 = vpop.f32.mrf.mxu1 }
 0x26b   : > { %v2263_v14 = vadd.f32 %v3325_v46, %v4479_v57  ;;  %v3438_v25 = vpop.f32.mrf.mxu0 }
 0x26c   : > { %v3327_v39 = vpop.f32.mrf.mxu1 }
 0x26d   : > { %v3328_v34 = vadd.f32 %v3327_v39, %v3326_v1  ;;  %v3439_v58 = vpop.f32.mrf.mxu0  ;;  %v4591_v29 = vadd.f32 %v3437_v32, %v2263_v14 }
 0x26e   : > { %v3440_v41 = vadd.f32 %v3439_v58, %v3438_v25  ;;  %v3329_v55 = vpop.f32.mrf.mxu1 }
 0x26f   : > { %v2266_v38 = vadd.f32 %v3328_v34, %v4485_v16  ;;  %v3441_v44 = vpop.f32.mrf.mxu0 }
 0x270   : > { %v3330_v2 = vpop.f32.mrf.mxu1 }
 0x271   : > { %v3331_v27 = vadd.f32 %v3330_v2, %v3329_v55  ;;  %v3442_v23 = vpop.f32.mrf.mxu0  ;;  %v4594_v8 = vadd.f32 %v3440_v41, %v2266_v38 }
 0x272   : > { %v3443_v7 = vadd.f32 %v3442_v23, %v3441_v44  ;;  %v3332_v45 = vpop.f32.mrf.mxu1 }
 0x273   : > { %v2271_v57 = vadd.f32 %v3331_v27, %v4488_v35  ;;  %v3444_v19 = vpop.f32.mrf.mxu0 }
 0x274   : > { %v3333_v36 = vpop.f32.mrf.mxu1 }
 0x275   : > { %v3334_v13 = vadd.f32 %v3333_v36, %v3332_v45  ;;  %v3445_v28 = vpop.f32.mrf.mxu0  ;;  %v4597_v43 = vadd.f32 %v3443_v7, %v2271_v57 }
 0x276   : > { %v3446_v53 = vadd.f32 %v3445_v28, %v3444_v19  ;;  %v3335_v56 = vpop.f32.mrf.mxu1 }
 0x277   : > { %v2274_v16 = vadd.f32 %v3334_v13, %v4493_v42  ;;  %v3447_v9 = vpop.f32.mrf.mxu0 }
 0x278   : > { %v3336_v54 = vpop.f32.mrf.mxu1 }
 0x279   : > { %v3337_v26 = vadd.f32 %v3336_v54, %v3335_v56  ;;  %v3448_v21 = vpop.f32.mrf.mxu0  ;;  %v4600_v6 = vadd.f32 %v3446_v53, %v2274_v16 }
 0x27a   : > { %v3449_v46 = vadd.f32 %v3448_v21, %v3447_v9  ;;  %v3338_v61 = vpop.f32.mrf.mxu1 }
 0x27b   : > { %v2279_v35 = vadd.f32 %v3337_v26, %v4496_v10  ;;  %v3450_v32 = vpop.f32.mrf.mxu0 }
 0x27c   : > { %v3339_v1 = vpop.f32.mrf.mxu1 }
 0x27d   : > { %v3340_v14 = vadd.f32 %v3339_v1, %v3338_v61  ;;  %v3451_v25 = vpop.f32.mrf.mxu0  ;;  %v4603_v39 = vadd.f32 %v3449_v46, %v2279_v35 }
 0x27e   : > { %v3452_v34 = vadd.f32 %v3451_v25, %v3450_v32  ;;  %v3341_v58 = vpop.f32.mrf.mxu1 }
 0x27f   : > { %v2282_v42 = vadd.f32 %v3340_v14, %v4501_v18  ;;  %v3453_v41 = vpop.f32.mrf.mxu0 }
 0x280   : > { %v3342_v55 = vpop.f32.mrf.mxu1 }
 0x281   : > { %v3343_v38 = vadd.f32 %v3342_v55, %v3341_v58  ;;  %v3454_v44 = vpop.f32.mrf.mxu0  ;;  %v4606_v2 = vadd.f32 %v3452_v34, %v2282_v42 }
 0x282   : > { %v3455_v27 = vadd.f32 %v3454_v44, %v3453_v41  ;;  %v3344_v23 = vpop.f32.mrf.mxu1 }
 0x283   : > { %v2287_v10 = vadd.f32 %v3343_v38, %v4504_v50  ;;  %v3456_v7 = vpop.f32.mrf.mxu0 }
 0x284   : > { %v3345_v45 = vpop.f32.mrf.mxu1 }
 0x285   : > { %v3346_v57 = vadd.f32 %v3345_v45, %v3344_v23  ;;  %v3457_v19 = vpop.f32.mrf.mxu0  ;;  %v4609_v36 = vadd.f32 %v3455_v27, %v2287_v10 }
 0x286   : > { %v3458_v13 = vadd.f32 %v3457_v19, %v3456_v7  ;;  %v3347_v28 = vpop.f32.mrf.mxu1 }
 0x287   : > { %v2290_v18 = vadd.f32 %v3346_v57, %v4509_v20  ;;  %v3459_v53 = vpop.f32.mrf.mxu0 }
 0x288   : > { %v3348_v56 = vpop.f32.mrf.mxu1 }
 0x289   : > { %v3349_v16 = vadd.f32 %v3348_v56, %v3347_v28  ;;  %v3460_v9 = vpop.f32.mrf.mxu0  ;;  %v4612_v54 = vadd.f32 %v3458_v13, %v2290_v18 }
 0x28a   : > { %v3461_v26 = vadd.f32 %v3460_v9, %v3459_v53  ;;  %v3350_v21 = vpop.f32.mrf.mxu1 }
 0x28b   : > { %v2295_v50 = vadd.f32 %v3349_v16, %v4512_v30  ;;  %v3462_v46 = vpop.f32.mrf.mxu0 }
 0x28c   : > { %v3351_v61 = vpop.f32.mrf.mxu1 }
 0x28d   : > { %v3352_v35 = vadd.f32 %v3351_v61, %v3350_v21  ;;  %v3463_v32 = vpop.f32.mrf.mxu0  ;;  %v4615_v1 = vadd.f32 %v3461_v26, %v2295_v50 }
 0x28e   : > { %v3464_v14 = vadd.f32 %v3463_v32, %v3462_v46  ;;  %v3353_v25 = vpop.f32.mrf.mxu1 }
 0x28f   : > { %v2298_v20 = vadd.f32 %v3352_v35, %v4517_v12  ;;  %v3465_v34 = vpop.f32.mrf.mxu0 }
 0x290   : > { %v3354_v58 = vpop.f32.mrf.mxu1 }
 0x291   : > { %v3355_v42 = vadd.f32 %v3354_v58, %v3353_v25  ;;  %v3466_v41 = vpop.f32.mrf.mxu0  ;;  %v4618_v55 = vadd.f32 %v3464_v14, %v2298_v20 }
 0x292   : > { %v3467_v38 = vadd.f32 %v3466_v41, %v3465_v34  ;;  %v3356_v44 = vpop.f32.mrf.mxu1 }
 0x293   : > { %v2303_v30 = vadd.f32 %v3355_v42, %v4520_v0  ;;  %v3468_v27 = vpop.f32.mrf.mxu0 }
 0x294   : > { %v3357_v23 = vpop.f32.mrf.mxu1 }
 0x295   : > { %v3358_v10 = vadd.f32 %v3357_v23, %v3356_v44  ;;  %v3469_v7 = vpop.f32.mrf.mxu0  ;;  %v4621_v45 = vadd.f32 %v3467_v38, %v2303_v30 }
 0x296   : > { %v3470_v57 = vadd.f32 %v3469_v7, %v3468_v27  ;;  %v4623_v19 = vpop.f32.mrf.mxu1 }
 0x297   : > { %v2306_v12 = vadd.f32 %v3358_v10, %v4527_v3  ;;  %v4626_v13 = vpop.f32.mrf.mxu0 }
 0x298   : > { %v4628_v28 = vpop.f32.mrf.mxu1 }
 0x299   : > { %v4630_v18 = vpop.f32.mrf.mxu0  ;;  %v4632_v53 = vadd.f32 %v3470_v57, %v2306_v12 }
 0x29a   : > { %v4634_v0 = vpop.f32.mrf.mxu1 }
 0x29b   : > { %4819 = vst [vmem:[#allocation5_spill] sm:$0xff] %v4632_v53  ;;  %v4636_v56 = vpop.f32.mrf.mxu0 }
 0x29c   : > { %v4638_v16 = vpop.f32.mrf.mxu1 }
 0x29d   : > { %v4640_v9 = vpop.f32.mrf.mxu0 }
 0x29e   : > { %v4642_v26 = vpop.f32.mrf.mxu1 }
 0x29f   : > { %v4644_v3 = vpop.f32.mrf.mxu0 }
 0x2a0   : > { %v4646_v21 = vpop.f32.mrf.mxu1 }
 0x2a1   : > { %v4648_v50 = vpop.f32.mrf.mxu0 }
 0x2a2   : > { %v4650_v46 = vpop.f32.mrf.mxu1 }
 0x2a3   : > { %v4652_v61 = vpop.f32.mrf.mxu0 }
 0x2a4   : > { %4820 = vst [vmem:[#allocation6_spill] sm:$0xff] %v4652_v61  ;;  %v4654_v35 = vpop.f32.mrf.mxu1 }
 0x2a5   : > { %v4656_v32 = vpop.f32.mrf.mxu0 }
 0x2a6   : > { %4821 = vst [vmem:[#allocation7_spill] sm:$0xff] %v4656_v32  ;;  %v4658_v14 = vpop.f32.mrf.mxu1 }
 0x2a7   : > { %v4660_v25 = vpop.f32.mrf.mxu0 }
 0x2a8   : > { %v4662_v20 = vpop.f32.mrf.mxu1 }
 0x2a9   : > { %v4664_v34 = vpop.f32.mrf.mxu0 }
 0x2aa   : > { %v4666_v58 = vpop.f32.mrf.mxu1 }
 0x2ab   : > { %v4668_v42 = vpop.f32.mrf.mxu0 }
 0x2ac   : > { %4822 = vst [vmem:[#allocation8_spill] sm:$0xff] %v4668_v42  ;;  %v4671_v41 = vpop.f32.mrf.mxu1 }
 0x2ad   : > { %v4673_v38 = vpop.f32.mrf.mxu0 }
 0x2ae   : > { %4823 = vst [vmem:[#allocation9_spill] sm:$0xff] %v4673_v38  ;;  %v3573_v44 = vpop.f32.mrf.mxu1 }
 0x2af   : > { %v2553_v30 = vadd.f32 %v3573_v44, %v4567_v62  ;;  %v3569_v27 = vpop.f32.mrf.mxu0 }
 0x2b0   : > { %v2537_v23 = vadd.f32 %v3569_v27, %v4555_v63  ;;  %v2544_v10 = vpop.f32.mrf.mxu1 }
 0x2b1   : > { %2661 = vst [vmem:[%s4678_s18 + $0x30] sm:$0xff] %v2553_v30  ;;  %v2545_v7 = vadd.f32 %v2544_v10, %v4561_v11  ;;  %v2528_v57 = vpop.f32.mrf.mxu0 }
 0x2b2   : > { %2657 = vst [vmem:[%s4678_s18 + $0x10] sm:$0xff] %v2537_v23  ;;  %v2529_v12 = vadd.f32 %v2528_v57, %v4549_v31  ;;  %v3574_v32 = vpop.f32.mrf.mxu1 }
 0x2b3   : > { %2659 = vst [vmem:[%s4678_s18 + $0x20] sm:$0xff] %v2545_v7  ;;  %v2556_v61 = vadd.f32 %v3574_v32, %v4570_v17  ;;  %v3570_v62 = vpop.f32.mrf.mxu0 }
 0x2b4   : > { %2655 = vst [vmem:[%s4678_s18] sm:$0xff] %v2529_v12  ;;  %v2540_v63 = vadd.f32 %v3570_v62, %v4558_v51  ;;  %v2547_v44 = vpop.f32.mrf.mxu1  ;;  %v2725_v24 = vmul.f32 %v2529_v12, %v2529_v12  ;;  %v2727_v62 = vmul.f32 %v2537_v23, %v2537_v23 }
 0x2b5   : > { %2662 = vst [vmem:[%s4678_s18 + $0x38] sm:$0xff] %v2556_v61  ;;  %v2548_v27 = vadd.f32 %v2547_v44, %v4564_v22  ;;  %v2531_v11 = vpop.f32.mrf.mxu0 }
 0x2b6   : > { %2658 = vst [vmem:[%s4678_s18 + $0x18] sm:$0xff] %v2540_v63  ;;  %v2532_v10 = vadd.f32 %v2531_v11, %v4552_v40  ;;  %v3577_v31 = vpop.f32.mrf.mxu1  ;;  %v2728_v11 = vmul.f32 %v2540_v63, %v2540_v63 }
 0x2b7   : > { %2660 = vst [vmem:[%s4678_s18 + $0x28] sm:$0xff] %v2548_v27  ;;  %v2569_v57 = vadd.f32 %v3577_v31, %v4579_v59 }
 0x2b8   : > { %2656 = vst [vmem:[%s4678_s18 + $0x8] sm:$0xff] %v2532_v10  ;;  %v2687_v17 = vadd.f32 %v2532_v10, %v2529_v12  ;;  %v2726_v32 = vmul.f32 %v2532_v10, %v2532_v10  ;;  %v2560_v53 = vpop.f32.mrf.mxu1  ;;  %v2729_v10 = vmul.f32 %v2545_v7, %v2545_v7 }
 0x2b9   : > { %2665 = vst [vmem:[%s4678_s18 + $0x50] sm:$0xff] %v2569_v57  ;;  %v2561_v51 = vadd.f32 %v2560_v53, %v4573_v47 }
 0x2ba   : > { %v2688_v22 = vadd.f32 %v2687_v17, %v2537_v23  ;;  %v2757_v44 = vadd.f32 %v2726_v32, %v2725_v24  ;;  %v3578_v38 = vpop.f32.mrf.mxu1  ;;  %v2730_v23 = vmul.f32 %v2548_v27, %v2548_v27  ;;  %v2731_v32 = vmul.f32 %v2553_v30, %v2553_v30 }
 0x2bb   : > { %2663 = vst [vmem:[%s4678_s18 + $0x40] sm:$0xff] %v2561_v51  ;;  %v2572_v40 = vadd.f32 %v3578_v38, %v4582_v52 }
 0x2bc   : > { %v2689_v59 = vadd.f32 %v2688_v22, %v2540_v63  ;;  %v2758_v31 = vadd.f32 %v2757_v44, %v2727_v62  ;;  %v2563_v42 = vpop.f32.mrf.mxu1  ;;  %v2732_v22 = vmul.f32 %v2556_v61, %v2556_v61 }
 0x2bd   : > { %2666 = vst [vmem:[%s4678_s18 + $0x58] sm:$0xff] %v2572_v40  ;;  %v2564_v12 = vadd.f32 %v2563_v42, %v4576_v37 }
 0x2be   : > { %v2690_v60 = vadd.f32 %v2689_v59, %v2545_v7  ;;  %v2759_v47 = vadd.f32 %v2758_v31, %v2728_v11  ;;  %v3581_v53 = vpop.f32.mrf.mxu1  ;;  %v2733_v59 = vmul.f32 %v2561_v51, %v2561_v51 }
 0x2bf   : > { %2664 = vst [vmem:[%s4678_s18 + $0x48] sm:$0xff] %v2564_v12  ;;  %v2585_v24 = vadd.f32 %v3581_v53, %v4591_v29 }
 0x2c0   : > { %v2760_v17 = vadd.f32 %v2759_v47, %v2729_v10  ;;  %v2691_v52 = vadd.f32 %v2690_v60, %v2548_v27  ;;  %v2576_v38 = vpop.f32.mrf.mxu1 }
 0x2c1   : > { %2669 = vst [vmem:[%s4678_s18 + $0x70] sm:$0xff] %v2585_v24  ;;  %v2577_v63 = vadd.f32 %v2576_v38, %v4585_v49 }
 0x2c2   : > { %v2692_v62 = vadd.f32 %v2691_v52, %v2553_v30  ;;  %v2761_v37 = vadd.f32 %v2760_v17, %v2730_v23  ;;  %v3582_v42 = vpop.f32.mrf.mxu1  ;;  %v2735_v23 = vmul.f32 %v2569_v57, %v2569_v57 }
 0x2c3   : > { %2667 = vst [vmem:[%s4678_s18 + $0x60] sm:$0xff] %v2577_v63  ;;  %v2588_v7 = vadd.f32 %v3582_v42, %v4594_v8  ;;  %v2734_v8 = vmul.f32 %v2564_v12, %v2564_v12 }
 0x2c4   : > { %v2693_v44 = vadd.f32 %v2692_v62, %v2556_v61  ;;  %v2762_v29 = vadd.f32 %v2761_v37, %v2731_v32  ;;  %v2579_v11 = vpop.f32.mrf.mxu1  ;;  %v2737_v37 = vmul.f32 %v2577_v63, %v2577_v63 }
 0x2c5   : > { %2670 = vst [vmem:[%s4678_s18 + $0x78] sm:$0xff] %v2588_v7  ;;  %v2580_v60 = vadd.f32 %v2579_v11, %v4588_v15 }
 0x2c6   : > { %v2694_v27 = vadd.f32 %v2693_v44, %v2561_v51  ;;  %v2763_v49 = vadd.f32 %v2762_v29, %v2732_v22  ;;  %v3585_v31 = vpop.f32.mrf.mxu1 }
 0x2c7   : > { %2668 = vst [vmem:[%s4678_s18 + $0x68] sm:$0xff] %v2580_v60  ;;  %v4713_v30 = vadd.f32 %v3585_v31, %v4603_v39  ;;  %v2736_v39 = vmul.f32 %v2572_v40, %v2572_v40 }
 0x2c8   : > { %v2764_v10 = vadd.f32 %v2763_v49, %v2733_v59  ;;  %v2695_v47 = vadd.f32 %v2694_v27, %v2564_v12  ;;  %v2592_v53 = vpop.f32.mrf.mxu1  ;;  %v3361_v12 = vadd.f32 %v4628_v28, %v4623_v19  ;;  %v2738_v19 = vmul.f32 %v2580_v60, %v2580_v60 }
 0x2c9   : > { %2673 = vst [vmem:[%s4678_s18 + $0x90] sm:$0xff] %v4713_v30  ;;  %v2593_v61 = vadd.f32 %v2592_v53, %v4597_v43  ;;  %v2739_v27 = vmul.f32 %v2585_v24, %v2585_v24 }
 0x2ca   : > { %v2696_v15 = vadd.f32 %v2695_v47, %v2569_v57  ;;  %v2765_v17 = vadd.f32 %v2764_v10, %v2734_v8  ;;  %v3586_v51 = vpop.f32.mrf.mxu1  ;;  %v2311_v11 = vadd.f32 %v3361_v12, %v4531_v33  ;;  %v4825_v12 = vld [vmem:[#allocation8_spill] sm:$0xff] }
 0x2cb   : > { %2671 = vst [vmem:[%s4678_s18 + $0x80] sm:$0xff] %v2593_v61  ;;  %v4720_v52 = vadd.f32 %v3586_v51, %v4606_v2 }
 0x2cc   : > { %v2766_v38 = vadd.f32 %v2765_v17, %v2735_v23  ;;  %v2697_v32 = vadd.f32 %v2696_v15, %v2572_v40  ;;  %v2595_v62 = vpop.f32.mrf.mxu1  ;;  %v3364_v40 = vadd.f32 %v4638_v16, %v4634_v0  ;;  %v3476_v0 = vadd.f32 %v4640_v9, %v4636_v56 }
 0x2cd   : > { %2674 = vst [vmem:[%s4678_s18 + $0x98] sm:$0xff] %v4720_v52  ;;  %v2596_v43 = vadd.f32 %v2595_v62, %v4600_v6  ;;  %v3473_v6 = vadd.f32 %v4630_v18, %v4626_v13  ;;  %v2740_v13 = vmul.f32 %v2588_v7, %v2588_v7  ;;  %v2741_v9 = vmul.f32 %v2593_v61, %v2593_v61 }
 0x2ce   : > { %v2698_v57 = vadd.f32 %v2697_v32, %v2577_v63  ;;  %v2767_v42 = vadd.f32 %v2766_v38, %v2736_v39  ;;  %v3589_v22 = vpop.f32.mrf.mxu1  ;;  %v2314_v33 = vadd.f32 %v3364_v40, %v4534_v4  ;;  %v3367_v4 = vadd.f32 %v4646_v21, %v4642_v26  ;;  %v4824_v32 = vld [vmem:[#allocation4_spill] sm:$0xff] }
 0x2cf   : > { %2672 = vst [vmem:[%s4678_s18 + $0x88] sm:$0xff] %v2596_v43  ;;  %v4729_v2 = vadd.f32 %v3589_v22, %v4615_v1  ;;  %v2472_v10 = vadd.f32 %v3473_v6, %v2311_v11  ;;  %v3485_v15 = vadd.f32 %v4664_v34, %v4660_v25  ;;  %v2743_v21 = vmul.f32 %v4713_v30, %v4713_v30  ;;  %v4828_v22 = vld [vmem:[#allocation3_spill] sm:$0xff] }
 0x2d0   : > { %v2768_v44 = vadd.f32 %v2767_v42, %v2737_v37  ;;  %v2699_v29 = vadd.f32 %v2698_v57, %v2580_v60  ;;  %v2608_v28 = vpop.f32.mrf.mxu1  ;;  %v2475_v23 = vadd.f32 %v3476_v0, %v2314_v33  ;;  %v3479_v25 = vadd.f32 %v4648_v50, %v4644_v3  ;;  %v4827_v3 = vld [vmem:[#allocation5_spill] sm:$0xff] }
 0x2d1   : > { %2677 = vst [vmem:[%s4678_s18 + $0xb0] sm:$0xff] %v4729_v2  ;;  %v2609_v63 = vadd.f32 %v2608_v28, %v4609_v36  ;;  %v3373_v36 = vadd.f32 %v4662_v20, %v4658_v14  ;;  %v2742_v14 = vmul.f32 %v2596_v43, %v2596_v43  ;;  %v3370_v34 = vadd.f32 %v4654_v35, %v4650_v46 }
 0x2d2   : > { %v2700_v1 = vadd.f32 %v2699_v29, %v2585_v24  ;;  %v2769_v59 = vadd.f32 %v2768_v44, %v2738_v19  ;;  %v3590_v49 = vpop.f32.mrf.mxu1  ;;  %v4829_v44 = vld [vmem:[#allocation6_spill] sm:$0xff]  ;;  %v4830_v29 = vld [vmem:[#allocation7_spill] sm:$0xff] }
 0x2d3   : > { %2675 = vst [vmem:[%s4678_s18 + $0xa0] sm:$0xff] %v2609_v63  ;;  %v4743_v16 = vadd.f32 %v3590_v49, %v4618_v55  ;;  %v2745_v57 = vmul.f32 %v2609_v63, %v2609_v63  ;;  %v2322_v40 = vadd.f32 %v3370_v34, %v4828_v22 }
 0x2d4   : > { %v2770_v18 = vadd.f32 %v2769_v59, %v2739_v27  ;;  %v2701_v60 = vadd.f32 %v2700_v1, %v2588_v7  ;;  %v2611_v31 = vpop.f32.mrf.mxu1 }
 0x2d5   : > { %2678 = vst [vmem:[%s4678_s18 + $0xb8] sm:$0xff] %v4743_v16  ;;  %v2612_v24 = vadd.f32 %v2611_v31, %v4612_v54  ;;  %v2327_v54 = vadd.f32 %v3373_v36, %v4543_v5  ;;  %v2319_v5 = vadd.f32 %v3367_v4, %v4537_v48  ;;  %v4826_v48 = vld [vmem:[#allocation9_spill] sm:$0xff]  ;;  %v2748_v31 = vmul.f32 %v4743_v16, %v4743_v16 }
 0x2d6   : > { %v2702_v56 = vadd.f32 %v2701_v60, %v2593_v61  ;;  %v2771_v47 = vadd.f32 %v2770_v18, %v2740_v13  ;;  %v3593_v55 = vpop.f32.mrf.mxu1  ;;  %v3376_v61 = vadd.f32 %v4671_v41, %v4666_v58 }
 0x2d7   : > { %2676 = vst [vmem:[%s4678_s18 + $0xa8] sm:$0xff] %v2612_v24  ;;  %v4754_v8 = vadd.f32 %v3593_v55, %v2472_v10  ;;  %v2488_v46 = vadd.f32 %v3485_v15, %v2327_v54  ;;  %v2480_v28 = vadd.f32 %v3479_v25, %v2319_v5  ;;  %v2746_v27 = vmul.f32 %v2612_v24, %v2612_v24 }
 0x2d8   : > { %v2772_v7 = vadd.f32 %v2771_v47, %v2741_v9  ;;  %v2703_v53 = vadd.f32 %v2702_v56, %v2596_v43  ;;  %v2624_v20 = vpop.f32.mrf.mxu1  ;;  %v2330_v62 = vadd.f32 %v3376_v61, %v4824_v32  ;;  %v3488_v43 = vadd.f32 %v4826_v48, %v4825_v12 }
 0x2d9   : > { %2681 = vst [vmem:[%s4678_s18 + $0xd0] sm:$0xff] %v4754_v8  ;;  %v2625_v26 = vadd.f32 %v2624_v20, %v4621_v45  ;;  %v2744_v45 = vmul.f32 %v4720_v52, %v4720_v52 }
 0x2da   : > { %v2704_v17 = vadd.f32 %v2703_v53, %v4713_v30  ;;  %v2773_v51 = vadd.f32 %v2772_v7, %v2742_v14  ;;  %v3594_v39 = vpop.f32.mrf.mxu1  ;;  %v2491_v49 = vadd.f32 %v3488_v43, %v2330_v62  ;;  %v2751_v53 = vmul.f32 %v4754_v8, %v4754_v8 }
 0x2db   : > { %2679 = vst [vmem:[%s4678_s18 + $0xc0] sm:$0xff] %v2625_v26  ;;  %v2636_v58 = vadd.f32 %v3594_v39, %v2475_v23  ;;  %v2749_v47 = vmul.f32 %v2625_v26, %v2625_v26 }
 0x2dc   : > { %v2774_v41 = vadd.f32 %v2773_v51, %v2743_v21  ;;  %v2705_v38 = vadd.f32 %v2704_v17, %v4720_v52  ;;  %v2627_v30 = vpop.f32.mrf.mxu1  ;;  %v3482_v52 = vadd.f32 %v4830_v29, %v4829_v44 }
 0x2dd   : > { %2682 = vst [vmem:[%s4678_s18 + $0xd8] sm:$0xff] %v2636_v58  ;;  %v2628_v50 = vadd.f32 %v2627_v30, %v4827_v3  ;;  %v2752_v23 = vmul.f32 %v2636_v58, %v2636_v58 }
 0x2de   : > { %v2706_v35 = vadd.f32 %v2705_v38, %v2609_v63  ;;  %v2775_v37 = vadd.f32 %v2774_v41, %v2744_v45  ;;  %v3597_v42 = vpop.f32.mrf.mxu1  ;;  %v2747_v63 = vmul.f32 %v4729_v2, %v4729_v2  ;;  %v2483_v60 = vadd.f32 %v3482_v52, %v2322_v40 }
 0x2df   : > { %2680 = vst [vmem:[%s4678_s18 + $0xc8] sm:$0xff] %v2628_v50  ;;  %v2649_v19 = vadd.f32 %v3597_v42, %v2488_v46  ;;  %v2750_v7 = vmul.f32 %v2628_v50, %v2628_v50 }
 0x2e0   : > { %v2776_v11 = vadd.f32 %v2775_v37, %v2745_v57  ;;  %v2707_v6 = vadd.f32 %v2706_v35, %v2612_v24  ;;  %v2640_v1 = vpop.f32.mrf.mxu1 }
 0x2e1   : > { %2685 = vst [vmem:[%s4678_s18 + $0xf0] sm:$0xff] %v2649_v19  ;;  %v2641_v59 = vadd.f32 %v2640_v1, %v2480_v28  ;;  %v2755_v39 = vmul.f32 %v2649_v19, %v2649_v19 }
 0x2e2   : > { %v2708_v0 = vadd.f32 %v2707_v6, %v4729_v2  ;;  %v2777_v33 = vadd.f32 %v2776_v11, %v2746_v27  ;;  %v3598_v13 = vpop.f32.mrf.mxu1 }
 0x2e3   : > { %2683 = vst [vmem:[%s4678_s18 + $0xe0] sm:$0xff] %v2641_v59  ;;  %v2652_v18 = vadd.f32 %v3598_v13, %v2491_v49  ;;  %v2753_v61 = vmul.f32 %v2641_v59, %v2641_v59 }
 0x2e4   : > { %v2778_v36 = vadd.f32 %v2777_v33, %v2747_v63  ;;  %v2709_v24 = vadd.f32 %v2708_v0, %v4743_v16  ;;  %v2643_v10 = vpop.f32.mrf.mxu1 }
 0x2e5   : > { %2686 = vst [vmem:[%s4678_s18 + $0xf8] sm:$0xff] %v2652_v18  ;;  %v2644_v56 = vadd.f32 %v2643_v10, %v2483_v60  ;;  %v2756_v34 = vmul.f32 %v2652_v18, %v2652_v18 }
 0x2e6   : > { %v2710_v9 = vadd.f32 %v2709_v24, %v2625_v26  ;;  %v2779_v55 = vadd.f32 %v2778_v36, %v2748_v31 }
 0x2e7   : > { %2684 = vst [vmem:[%s4678_s18 + $0xe8] sm:$0xff] %v2644_v56  ;;  %v2754_v26 = vmul.f32 %v2644_v56, %v2644_v56 }
 0x2e8   : > { %v2780_v4 = vadd.f32 %v2779_v55, %v2749_v47  ;;  %v2711_v2 = vadd.f32 %v2710_v9, %v2628_v50 }
 0x2ea   : > { %v2712_v14 = vadd.f32 %v2711_v2, %v4754_v8  ;;  %v2781_v20 = vadd.f32 %v2780_v4, %v2750_v7 }
 0x2ec   : > { %v2782_v54 = vadd.f32 %v2781_v20, %v2751_v53  ;;  %v2713_v15 = vadd.f32 %v2712_v14, %v2636_v58 }
 0x2ee   : > { %v2714_v16 = vadd.f32 %v2713_v15, %v2641_v59  ;;  %v2783_v21 = vadd.f32 %v2782_v54, %v2752_v23 }
 0x2f0   : > { %v2784_v17 = vadd.f32 %v2783_v21, %v2753_v61  ;;  %v2715_v51 = vadd.f32 %v2714_v16, %v2644_v56 }
 0x2f2   : > { %v2716_v5 = vadd.f32 %v2715_v51, %v2649_v19  ;;  %v2785_v25 = vadd.f32 %v2784_v17, %v2754_v26 }
 0x2f4   : > { %v2717_v45 = vadd.f32 %v2716_v5, %v2652_v18  ;;  %v2786_v41 = vadd.f32 %v2785_v25, %v2755_v39 }
 0x2f6   : > { %v2718_v38 = vrot.slane %v2717_v45, 4  ;;  %v2787_v8 = vadd.f32 %v2786_v41, %v2756_v34 }
 0x2f8   : > { %v2719_v30 = vadd.f32 %v2718_v38, %v2717_v45  ;;  %v2788_v32 = vrot.slane %v2787_v8, 4 }
 0x2fa   : > { %v2720_v62 = vrot.slane %v2719_v30, 2  ;;  %v2789_v58 = vadd.f32 %v2788_v32, %v2787_v8 }
 0x2fc   : > { %v2721_v12 = vadd.f32 %v2720_v62, %v2719_v30  ;;  %v2790_v48 = vrot.slane %v2789_v58, 2 }
 0x2fe   : > { %v2722_v43 = vrot.slane %v2721_v12, 1  ;;  %v2791_v3 = vadd.f32 %v2790_v48, %v2789_v58 }
 0x300   : > { %v2723_v50 = vadd.f32 %v2722_v43, %v2721_v12  ;;  %v2792_v46 = vrot.slane %v2791_v3, 1 }
 0x302   : > { %2724 = vst [vmem:[%s292_s21] sm:$0x1] %v2723_v50  ;;  %v2793_v35 = vadd.f32 %v2792_v46, %v2791_v3 }
 0x304   : > { %2794 = vst [vmem:[%s295_s26] sm:$0x1] %v2793_v35 }
 0x305 PF: > { %s18_s24 = sadd.s32 1, %s3723_s24  }
 0x306   : > { %p15_p4 = scmp.ge.s32.totalorder %s18_s24, 4  }
 0x308   :  { %17 = sbr.rel (!%p15_p4) target bundleno = 1 (0x1), region = 95 }

</bundles_post_ra>
